<compile_context>
chip_gen: v6e
topology: v6e:2x2x1
jax: 0.10.0
libtpu: 0.0.40
codegen_flags: <defaults>
</compile_context>

<pallas_src>
import functools
import numpy as np
import jax
import jax.numpy as jnp
from jax.experimental import pallas as pl
from jax.experimental.pallas import tpu as pltpu

# DecoderBlock(in_channels=4, out_channels=8, kernel_size=3, stride=1,
#              padding=1, activation='relu', upsample=True)
IN_CH, OUT_CH = 4, 8
K, STRIDE, PAD = 3, 1, 1


def _bilinear_matrix(n_in: int, n_out: int) -> np.ndarray:
    """1-D bilinear interpolation matrix, align_corners=True (matches nn.Upsample)."""
    A = np.zeros((n_out, n_in), dtype=np.float32)
    if n_in == 1:
        A[:, 0] = 1.0
        return A
    src = np.arange(n_out, dtype=np.float64) * (n_in - 1) / (n_out - 1)
    lo = np.clip(np.floor(src).astype(np.int64), 0, n_in - 2)
    frac = (src - lo).astype(np.float32)
    A[np.arange(n_out), lo] = 1.0 - frac
    A[np.arange(n_out), lo + 1] += frac
    return A


def _decoder_block_kernel(x_ref, ah_ref, awt_ref, w_ref, b_ref, o_ref,
                          up_scr, patch_scr, *, C_in, C_out, H_out, W_out, K):
    # x_ref:   (1, C_in, H, W)           raw input image (one batch item)
    # ah_ref:  (Hp, H)                   zero-padded bilinear matrix (rows 0/Hp-1 are zero)
    # awt_ref: (W, Wp)                   transposed zero-padded bilinear matrix
    # w_ref:   (C_out, C_in*K*K)         conv weights, rows ordered (kh, kw) major, c minor
    # b_ref:   (C_out, 1)                bias
    # o_ref:   (1, C_out, H_out*W_out)   lane-dense channels-first output
    # up_scr:  (C_in, Hp, Wp)            fused upsampled + zero-padded image
    # patch_scr: (C_in*K*K, H_out*W_out) im2col slab

    # --- Step 1: fused bilinear 2x upsample + zero pad (two small matmuls / channel).
    #     Zero rows/cols of ah/awt produce the conv padding for free.
    for c in range(C_in):
        t = jnp.dot(ah_ref[...], x_ref[0, c],
                    preferred_element_type=jnp.float32)               # (Hp, W)
        up_scr[c] = jnp.dot(t, awt_ref[...],
                            preferred_element_type=jnp.float32)        # (Hp, Wp)

    # --- Step 2: im2col into a lane-dense (C_in*K*K, H_out*W_out) slab in VMEM.
    for kh in range(K):
        for kw in range(K):
            tap = kh * K + kw
            sl = up_scr[:, kh:kh + H_out, kw:kw + W_out]               # (C_in, H_out, W_out)
            patch_scr[tap * C_in:(tap + 1) * C_in, :] = sl.reshape(C_in, H_out * W_out)

    # --- Step 3: single MXU matmul with weights as LHS -> lane-dense output,
    #     then bias + ReLU.
    acc = jnp.dot(w_ref[...], patch_scr[...],
                  preferred_element_type=jnp.float32)                  # (C_out, H_out*W_out)
    acc = acc + b_ref[...]
    o_ref[0] = jnp.maximum(acc, 0.0)


def decoder_block_forward(x, weight, bias):
    """x: (N, C_in, H, W); weight: (C_out, C_in, K, K); bias: (C_out,). Returns NCHW."""
    N, C_in, H, W = x.shape
    C_out = weight.shape[0]
    assert STRIDE == 1  # kernel implements the stride-1 configuration of this module

    H_up, W_up = 2 * H, 2 * W
    Hp, Wp = H_up + 2 * PAD, W_up + 2 * PAD
    H_out = (Hp - K) // STRIDE + 1
    W_out = (Wp - K) // STRIDE + 1

    # Interpolation matrices with the conv zero-padding baked in (align_corners=True,
    # exactly as nn.Upsample(scale_factor=2, mode='bilinear', align_corners=True)).
    Ah = _bilinear_matrix(H, H_up)                      # (H_up, H)
    Aw = _bilinear_matrix(W, W_up)                      # (W_up, W)
    Ah_pad = np.zeros((Hp, H), dtype=np.float32)
    Ah_pad[PAD:PAD + H_up, :] = Ah
    AwT_pad = np.zeros((W, Wp), dtype=np.float32)
    AwT_pad[:, PAD:PAD + W_up] = Aw.T
    ah = jnp.asarray(Ah_pad)
    awt = jnp.asarray(AwT_pad)

    # Weight rows ordered to match the im2col slab row order: (kh, kw) major, c minor.
    w2d = jnp.transpose(weight, (0, 2, 3, 1)).reshape(C_out, K * K * C_in).astype(jnp.float32)
    b2d = bias.reshape(C_out, 1).astype(jnp.float32)

    kernel = functools.partial(_decoder_block_kernel, C_in=C_in, C_out=C_out,
                               H_out=H_out, W_out=W_out, K=K)

    out_flat = pl.pallas_call(
        kernel,
        out_shape=jax.ShapeDtypeStruct((N, C_out, H_out * W_out), jnp.float32),
        grid_spec=pltpu.PrefetchScalarGridSpec(
            num_scalar_prefetch=0,
            grid=(N,),
            in_specs=[
                pl.BlockSpec((1, C_in, H, W), lambda n: (n, 0, 0, 0)),
                pl.BlockSpec((Hp, H), lambda n: (0, 0)),
                pl.BlockSpec((W, Wp), lambda n: (0, 0)),
                pl.BlockSpec((C_out, K * K * C_in), lambda n: (0, 0)),
                pl.BlockSpec((C_out, 1), lambda n: (0, 0)),
            ],
            out_specs=pl.BlockSpec((1, C_out, H_out * W_out), lambda n: (n, 0, 0)),
            scratch_shapes=[
                pltpu.VMEM((C_in, Hp, Wp), jnp.float32),
                pltpu.VMEM((K * K * C_in, H_out * W_out), jnp.float32),
            ],
        ),
        compiler_params=pltpu.CompilerParams(dimension_semantics=("parallel",)),
    )(x.astype(jnp.float32), ah, awt, w2d, b2d)

    # Output is already channels-first and lane-dense; just un-flatten the spatial dims.
    return out_flat.reshape(N, C_out, H_out, W_out)


if __name__ == "__main__":
    key = jax.random.PRNGKey(0)
    kx, kw, kb = jax.random.split(key, 3)

    N, H, W = 2, 16, 16
    x = jax.random.normal(kx, (N, IN_CH, H, W), dtype=jnp.float32)

    # Deterministic Conv2d-style parameter init (uniform in +/- 1/sqrt(fan_in)).
    fan_in = IN_CH * K * K
    bound = float(1.0 / np.sqrt(fan_in))
    weight = jax.random.uniform(kw, (OUT_CH, IN_CH, K, K), jnp.float32, -bound, bound)
    bias = jax.random.uniform(kb, (OUT_CH,), jnp.float32, -bound, bound)

    out = jax.jit(decoder_block_forward)(x, weight, bias)
    out = jax.block_until_ready(out)

    assert out.shape == (N, OUT_CH, 2 * H, 2 * W), out.shape
    assert bool(jnp.all(out >= 0.0))   # ReLU post-condition
    print("KERNEL_OK")
</pallas_src>

<mosaic_0001>
module attributes {stable_mosaic.version = 11 : i64} {
  func.func @_decoder_block_kernel(%arg0: i32, %arg1: memref<1x4x16x16xf32, #tpu.memory_space<vmem>>, %arg2: memref<34x16xf32, #tpu.memory_space<vmem>>, %arg3: memref<16x34xf32, #tpu.memory_space<vmem>>, %arg4: memref<8x36xf32, #tpu.memory_space<vmem>>, %arg5: memref<8x1xf32, #tpu.memory_space<vmem>>, %arg6: memref<1x8x1024xf32, #tpu.memory_space<vmem>>, %arg7: memref<4x34x34xf32, #tpu.memory_space<vmem>>, %arg8: memref<36x1024xf32, #tpu.memory_space<vmem>>) attributes {dimension_semantics = [#tpu.dimension_semantics<parallel>], iteration_bounds = array<i64: 2>, scalar_prefetch = 0 : i64, scratch_operands = 2 : i64, tpu.core_type = #tpu.core_type<tc>, window_params = [{transform_indices = @transform_0, window_bounds = array<i64: 1, 4, 16, 16>}, {pipeline_mode = #tpu.pipeline_mode<synchronous>, transform_indices = @transform_1, window_bounds = array<i64: 34, 16>}, {pipeline_mode = #tpu.pipeline_mode<synchronous>, transform_indices = @transform_2, window_bounds = array<i64: 16, 34>}, {pipeline_mode = #tpu.pipeline_mode<synchronous>, transform_indices = @transform_3, window_bounds = array<i64: 8, 36>}, {pipeline_mode = #tpu.pipeline_mode<synchronous>, transform_indices = @transform_4, window_bounds = array<i64: 8, 1>}, {transform_indices = @transform_5, window_bounds = array<i64: 1, 8, 1024>}]} {
    %c0 = arith.constant 0 : index
    %c0_0 = arith.constant 0 : index
    %0 = vector.load %arg2[%c0, %c0_0] : memref<34x16xf32, #tpu.memory_space<vmem>>, vector<34x16xf32>
    %c0_1 = arith.constant 0 : index
    %c0_2 = arith.constant 0 : index
    %c0_3 = arith.constant 0 : index
    %c0_4 = arith.constant 0 : index
    %1 = vector.load %arg1[%c0_1, %c0_2, %c0_3, %c0_4] : memref<1x4x16x16xf32, #tpu.memory_space<vmem>>, vector<1x1x16x16xf32>
    %2 = vector.shape_cast %1 : vector<1x1x16x16xf32> to vector<16x16xf32>
    %cst = arith.constant dense<0.000000e+00> : vector<34x16xf32>
    %3 = tpu.matmul %0, %2, %cst {dimension_numbers = #tpu.dot_dimension_numbers<[1], [0], [0], [1], [0, 0, 1, 1], [], []>} : vector<34x16xf32>, vector<16x16xf32>, vector<34x16xf32> -> vector<34x16xf32>
    %c0_5 = arith.constant 0 : index
    %c0_6 = arith.constant 0 : index
    %4 = vector.load %arg3[%c0_5, %c0_6] : memref<16x34xf32, #tpu.memory_space<vmem>>, vector<16x34xf32>
    %cst_7 = arith.constant dense<0.000000e+00> : vector<34x34xf32>
    %5 = tpu.matmul %3, %4, %cst_7 {dimension_numbers = #tpu.dot_dimension_numbers<[1], [0], [0], [1], [0, 0, 1, 1], [], []>} : vector<34x16xf32>, vector<16x34xf32>, vector<34x34xf32> -> vector<34x34xf32>
    %c0_8 = arith.constant 0 : index
    %c0_9 = arith.constant 0 : index
    %c0_10 = arith.constant 0 : index
    %6 = vector.load %arg7[%c0_8, %c0_9, %c0_10] : memref<4x34x34xf32, #tpu.memory_space<vmem>>, vector<1x34x34xf32>
    %7 = vector.shape_cast %6 : vector<1x34x34xf32> to vector<34x34xf32>
    %8 = vector.shape_cast %5 : vector<34x34xf32> to vector<1x34x34xf32>
    tpu.vector_store %arg7[%c0_8, %c0_9, %c0_10], %8 {strides = array<i32>} : memref<4x34x34xf32, #tpu.memory_space<vmem>>, vector<1x34x34xf32>,
    %c0_11 = arith.constant 0 : index
    %c0_12 = arith.constant 0 : index
    %9 = vector.load %arg2[%c0_11, %c0_12] : memref<34x16xf32, #tpu.memory_space<vmem>>, vector<34x16xf32>
    %c0_13 = arith.constant 0 : index
    %c1 = arith.constant 1 : index
    %c0_14 = arith.constant 0 : index
    %c0_15 = arith.constant 0 : index
    %10 = vector.load %arg1[%c0_13, %c1, %c0_14, %c0_15] : memref<1x4x16x16xf32, #tpu.memory_space<vmem>>, vector<1x1x16x16xf32>
    %11 = vector.shape_cast %10 : vector<1x1x16x16xf32> to vector<16x16xf32>
    %cst_16 = arith.constant dense<0.000000e+00> : vector<34x16xf32>
    %12 = tpu.matmul %9, %11, %cst_16 {dimension_numbers = #tpu.dot_dimension_numbers<[1], [0], [0], [1], [0, 0, 1, 1], [], []>} : vector<34x16xf32>, vector<16x16xf32>, vector<34x16xf32> -> vector<34x16xf32>
    %c0_17 = arith.constant 0 : index
    %c0_18 = arith.constant 0 : index
    %13 = vector.load %arg3[%c0_17, %c0_18] : memref<16x34xf32, #tpu.memory_space<vmem>>, vector<16x34xf32>
    %cst_19 = arith.constant dense<0.000000e+00> : vector<34x34xf32>
    %14 = tpu.matmul %12, %13, %cst_19 {dimension_numbers = #tpu.dot_dimension_numbers<[1], [0], [0], [1], [0, 0, 1, 1], [], []>} : vector<34x16xf32>, vector<16x34xf32>, vector<34x34xf32> -> vector<34x34xf32>
    %c1_20 = arith.constant 1 : index
    %c0_21 = arith.constant 0 : index
    %c0_22 = arith.constant 0 : index
    %15 = vector.load %arg7[%c1_20, %c0_21, %c0_22] : memref<4x34x34xf32, #tpu.memory_space<vmem>>, vector<1x34x34xf32>
    %16 = vector.shape_cast %15 : vector<1x34x34xf32> to vector<34x34xf32>
    %17 = vector.shape_cast %14 : vector<34x34xf32> to vector<1x34x34xf32>
    tpu.vector_store %arg7[%c1_20, %c0_21, %c0_22], %17 {strides = array<i32>} : memref<4x34x34xf32, #tpu.memory_space<vmem>>, vector<1x34x34xf32>,
    %c0_23 = arith.constant 0 : index
    %c0_24 = arith.constant 0 : index
    %18 = vector.load %arg2[%c0_23, %c0_24] : memref<34x16xf32, #tpu.memory_space<vmem>>, vector<34x16xf32>
    %c0_25 = arith.constant 0 : index
    %c2 = arith.constant 2 : index
    %c0_26 = arith.constant 0 : index
    %c0_27 = arith.constant 0 : index
    %19 = vector.load %arg1[%c0_25, %c2, %c0_26, %c0_27] : memref<1x4x16x16xf32, #tpu.memory_space<vmem>>, vector<1x1x16x16xf32>
    %20 = vector.shape_cast %19 : vector<1x1x16x16xf32> to vector<16x16xf32>
    %cst_28 = arith.constant dense<0.000000e+00> : vector<34x16xf32>
    %21 = tpu.matmul %18, %20, %cst_28 {dimension_numbers = #tpu.dot_dimension_numbers<[1], [0], [0], [1], [0, 0, 1, 1], [], []>} : vector<34x16xf32>, vector<16x16xf32>, vector<34x16xf32> -> vector<34x16xf32>
    %c0_29 = arith.constant 0 : index
    %c0_30 = arith.constant 0 : index
    %22 = vector.load %arg3[%c0_29, %c0_30] : memref<16x34xf32, #tpu.memory_space<vmem>>, vector<16x34xf32>
    %cst_31 = arith.constant dense<0.000000e+00> : vector<34x34xf32>
    %23 = tpu.matmul %21, %22, %cst_31 {dimension_numbers = #tpu.dot_dimension_numbers<[1], [0], [0], [1], [0, 0, 1, 1], [], []>} : vector<34x16xf32>, vector<16x34xf32>, vector<34x34xf32> -> vector<34x34xf32>
    %c2_32 = arith.constant 2 : index
    %c0_33 = arith.constant 0 : index
    %c0_34 = arith.constant 0 : index
    %24 = vector.load %arg7[%c2_32, %c0_33, %c0_34] : memref<4x34x34xf32, #tpu.memory_space<vmem>>, vector<1x34x34xf32>
    %25 = vector.shape_cast %24 : vector<1x34x34xf32> to vector<34x34xf32>
    %26 = vector.shape_cast %23 : vector<34x34xf32> to vector<1x34x34xf32>
    tpu.vector_store %arg7[%c2_32, %c0_33, %c0_34], %26 {strides = array<i32>} : memref<4x34x34xf32, #tpu.memory_space<vmem>>, vector<1x34x34xf32>,
    %c0_35 = arith.constant 0 : index
    %c0_36 = arith.constant 0 : index
    %27 = vector.load %arg2[%c0_35, %c0_36] : memref<34x16xf32, #tpu.memory_space<vmem>>, vector<34x16xf32>
    %c0_37 = arith.constant 0 : index
    %c3 = arith.constant 3 : index
    %c0_38 = arith.constant 0 : index
    %c0_39 = arith.constant 0 : index
    %28 = vector.load %arg1[%c0_37, %c3, %c0_38, %c0_39] : memref<1x4x16x16xf32, #tpu.memory_space<vmem>>, vector<1x1x16x16xf32>
    %29 = vector.shape_cast %28 : vector<1x1x16x16xf32> to vector<16x16xf32>
    %cst_40 = arith.constant dense<0.000000e+00> : vector<34x16xf32>
    %30 = tpu.matmul %27, %29, %cst_40 {dimension_numbers = #tpu.dot_dimension_numbers<[1], [0], [0], [1], [0, 0, 1, 1], [], []>} : vector<34x16xf32>, vector<16x16xf32>, vector<34x16xf32> -> vector<34x16xf32>
    %c0_41 = arith.constant 0 : index
    %c0_42 = arith.constant 0 : index
    %31 = vector.load %arg3[%c0_41, %c0_42] : memref<16x34xf32, #tpu.memory_space<vmem>>, vector<16x34xf32>
    %cst_43 = arith.constant dense<0.000000e+00> : vector<34x34xf32>
    %32 = tpu.matmul %30, %31, %cst_43 {dimension_numbers = #tpu.dot_dimension_numbers<[1], [0], [0], [1], [0, 0, 1, 1], [], []>} : vector<34x16xf32>, vector<16x34xf32>, vector<34x34xf32> -> vector<34x34xf32>
    %c3_44 = arith.constant 3 : index
    %c0_45 = arith.constant 0 : index
    %c0_46 = arith.constant 0 : index
    %33 = vector.load %arg7[%c3_44, %c0_45, %c0_46] : memref<4x34x34xf32, #tpu.memory_space<vmem>>, vector<1x34x34xf32>
    %34 = vector.shape_cast %33 : vector<1x34x34xf32> to vector<34x34xf32>
    %35 = vector.shape_cast %32 : vector<34x34xf32> to vector<1x34x34xf32>
    tpu.vector_store %arg7[%c3_44, %c0_45, %c0_46], %35 {strides = array<i32>} : memref<4x34x34xf32, #tpu.memory_space<vmem>>, vector<1x34x34xf32>,
    %c0_47 = arith.constant 0 : index
    %c0_48 = arith.constant 0 : index
    %c0_49 = arith.constant 0 : index
    %36 = vector.load %arg7[%c0_47, %c0_48, %c0_49] : memref<4x34x34xf32, #tpu.memory_space<vmem>>, vector<4x32x32xf32>
    %37 = vector.shape_cast %36 : vector<4x32x32xf32> to vector<4x1024xf32>
    %c0_50 = arith.constant 0 : index
    %c0_51 = arith.constant 0 : index
    %38 = vector.load %arg8[%c0_50, %c0_51] : memref<36x1024xf32, #tpu.memory_space<vmem>>, vector<4x1024xf32>
    tpu.vector_store %arg8[%c0_50, %c0_51], %37 {strides = array<i32>} : memref<36x1024xf32, #tpu.memory_space<vmem>>, vector<4x1024xf32>,
    %c0_52 = arith.constant 0 : index
    %c0_53 = arith.constant 0 : index
    %c1_54 = arith.constant 1 : index
    %39 = vector.load %arg7[%c0_52, %c0_53, %c1_54] : memref<4x34x34xf32, #tpu.memory_space<vmem>>, vector<4x32x32xf32>
    %40 = vector.shape_cast %39 : vector<4x32x32xf32> to vector<4x1024xf32>
    %c4 = arith.constant 4 : index
    %c0_55 = arith.constant 0 : index
    %41 = vector.load %arg8[%c4, %c0_55] : memref<36x1024xf32, #tpu.memory_space<vmem>>, vector<4x1024xf32>
    tpu.vector_store %arg8[%c4, %c0_55], %40 {strides = array<i32>} : memref<36x1024xf32, #tpu.memory_space<vmem>>, vector<4x1024xf32>,
    %c0_56 = arith.constant 0 : index
    %c0_57 = arith.constant 0 : index
    %c2_58 = arith.constant 2 : index
    %42 = vector.load %arg7[%c0_56, %c0_57, %c2_58] : memref<4x34x34xf32, #tpu.memory_space<vmem>>, vector<4x32x32xf32>
    %43 = vector.shape_cast %42 : vector<4x32x32xf32> to vector<4x1024xf32>
    %c8 = arith.constant 8 : index
    %c0_59 = arith.constant 0 : index
    %44 = vector.load %arg8[%c8, %c0_59] : memref<36x1024xf32, #tpu.memory_space<vmem>>, vector<4x1024xf32>
    tpu.vector_store %arg8[%c8, %c0_59], %43 {strides = array<i32>} : memref<36x1024xf32, #tpu.memory_space<vmem>>, vector<4x1024xf32>,
    %c0_60 = arith.constant 0 : index
    %c1_61 = arith.constant 1 : index
    %c0_62 = arith.constant 0 : index
    %45 = vector.load %arg7[%c0_60, %c1_61, %c0_62] : memref<4x34x34xf32, #tpu.memory_space<vmem>>, vector<4x32x32xf32>
    %46 = vector.shape_cast %45 : vector<4x32x32xf32> to vector<4x1024xf32>
    %c12 = arith.constant 12 : index
    %c0_63 = arith.constant 0 : index
    %47 = vector.load %arg8[%c12, %c0_63] : memref<36x1024xf32, #tpu.memory_space<vmem>>, vector<4x1024xf32>
    tpu.vector_store %arg8[%c12, %c0_63], %46 {strides = array<i32>} : memref<36x1024xf32, #tpu.memory_space<vmem>>, vector<4x1024xf32>,
    %c0_64 = arith.constant 0 : index
    %c1_65 = arith.constant 1 : index
    %c1_66 = arith.constant 1 : index
    %48 = vector.load %arg7[%c0_64, %c1_65, %c1_66] : memref<4x34x34xf32, #tpu.memory_space<vmem>>, vector<4x32x32xf32>
    %49 = vector.shape_cast %48 : vector<4x32x32xf32> to vector<4x1024xf32>
    %c16 = arith.constant 16 : index
    %c0_67 = arith.constant 0 : index
    %50 = vector.load %arg8[%c16, %c0_67] : memref<36x1024xf32, #tpu.memory_space<vmem>>, vector<4x1024xf32>
    tpu.vector_store %arg8[%c16, %c0_67], %49 {strides = array<i32>} : memref<36x1024xf32, #tpu.memory_space<vmem>>, vector<4x1024xf32>,
    %c0_68 = arith.constant 0 : index
    %c1_69 = arith.constant 1 : index
    %c2_70 = arith.constant 2 : index
    %51 = vector.load %arg7[%c0_68, %c1_69, %c2_70] : memref<4x34x34xf32, #tpu.memory_space<vmem>>, vector<4x32x32xf32>
    %52 = vector.shape_cast %51 : vector<4x32x32xf32> to vector<4x1024xf32>
    %c20 = arith.constant 20 : index
    %c0_71 = arith.constant 0 : index
    %53 = vector.load %arg8[%c20, %c0_71] : memref<36x1024xf32, #tpu.memory_space<vmem>>, vector<4x1024xf32>
    tpu.vector_store %arg8[%c20, %c0_71], %52 {strides = array<i32>} : memref<36x1024xf32, #tpu.memory_space<vmem>>, vector<4x1024xf32>,
    %c0_72 = arith.constant 0 : index
    %c2_73 = arith.constant 2 : index
    %c0_74 = arith.constant 0 : index
    %54 = vector.load %arg7[%c0_72, %c2_73, %c0_74] : memref<4x34x34xf32, #tpu.memory_space<vmem>>, vector<4x32x32xf32>
    %55 = vector.shape_cast %54 : vector<4x32x32xf32> to vector<4x1024xf32>
    %c24 = arith.constant 24 : index
    %c0_75 = arith.constant 0 : index
    %56 = vector.load %arg8[%c24, %c0_75] : memref<36x1024xf32, #tpu.memory_space<vmem>>, vector<4x1024xf32>
    tpu.vector_store %arg8[%c24, %c0_75], %55 {strides = array<i32>} : memref<36x1024xf32, #tpu.memory_space<vmem>>, vector<4x1024xf32>,
    %c0_76 = arith.constant 0 : index
    %c2_77 = arith.constant 2 : index
    %c1_78 = arith.constant 1 : index
    %57 = vector.load %arg7[%c0_76, %c2_77, %c1_78] : memref<4x34x34xf32, #tpu.memory_space<vmem>>, vector<4x32x32xf32>
    %58 = vector.shape_cast %57 : vector<4x32x32xf32> to vector<4x1024xf32>
    %c28 = arith.constant 28 : index
    %c0_79 = arith.constant 0 : index
    %59 = vector.load %arg8[%c28, %c0_79] : memref<36x1024xf32, #tpu.memory_space<vmem>>, vector<4x1024xf32>
    tpu.vector_store %arg8[%c28, %c0_79], %58 {strides = array<i32>} : memref<36x1024xf32, #tpu.memory_space<vmem>>, vector<4x1024xf32>,
    %c0_80 = arith.constant 0 : index
    %c2_81 = arith.constant 2 : index
    %c2_82 = arith.constant 2 : index
    %60 = vector.load %arg7[%c0_80, %c2_81, %c2_82] : memref<4x34x34xf32, #tpu.memory_space<vmem>>, vector<4x32x32xf32>
    %61 = vector.shape_cast %60 : vector<4x32x32xf32> to vector<4x1024xf32>
    %c32 = arith.constant 32 : index
    %c0_83 = arith.constant 0 : index
    %62 = vector.load %arg8[%c32, %c0_83] : memref<36x1024xf32, #tpu.memory_space<vmem>>, vector<4x1024xf32>
    tpu.vector_store %arg8[%c32, %c0_83], %61 {strides = array<i32>} : memref<36x1024xf32, #tpu.memory_space<vmem>>, vector<4x1024xf32>,
    %c0_84 = arith.constant 0 : index
    %c0_85 = arith.constant 0 : index
    %63 = vector.load %arg4[%c0_84, %c0_85] : memref<8x36xf32, #tpu.memory_space<vmem>>, vector<8x36xf32>
    %c0_86 = arith.constant 0 : index
    %c0_87 = arith.constant 0 : index
    %64 = vector.load %arg8[%c0_86, %c0_87] : memref<36x1024xf32, #tpu.memory_space<vmem>>, vector<36x1024xf32>
    %cst_88 = arith.constant dense<0.000000e+00> : vector<8x1024xf32>
    %65 = tpu.matmul %63, %64, %cst_88 {dimension_numbers = #tpu.dot_dimension_numbers<[1], [0], [0], [1], [0, 0, 1, 1], [], []>} : vector<8x36xf32>, vector<36x1024xf32>, vector<8x1024xf32> -> vector<8x1024xf32>
    %c0_89 = arith.constant 0 : index
    %c0_90 = arith.constant 0 : index
    %66 = vector.load %arg5[%c0_89, %c0_90] : memref<8x1xf32, #tpu.memory_space<vmem>>, vector<8x1xf32>
    %67 = vector.broadcast %66 : vector<8x1xf32> to vector<8x1024xf32>
    %68 = arith.addf %65, %67 : vector<8x1024xf32>
    %cst_91 = arith.constant 0.000000e+00 : f32
    %69 = vector.broadcast %cst_91 : f32 to vector<8x1024xf32>
    %70 = arith.maximumf %68, %69 : vector<8x1024xf32>
    %c0_92 = arith.constant 0 : index
    %c0_93 = arith.constant 0 : index
    %c0_94 = arith.constant 0 : index
    %71 = vector.load %arg6[%c0_92, %c0_93, %c0_94] : memref<1x8x1024xf32, #tpu.memory_space<vmem>>, vector<1x8x1024xf32>
    %72 = vector.shape_cast %71 : vector<1x8x1024xf32> to vector<8x1024xf32>
    %73 = vector.shape_cast %70 : vector<8x1024xf32> to vector<1x8x1024xf32>
    tpu.vector_store %arg6[%c0_92, %c0_93, %c0_94], %73 {strides = array<i32>} : memref<1x8x1024xf32, #tpu.memory_space<vmem>>, vector<1x8x1024xf32>,
    return
  }
  func.func @transform_0(%arg0: i32) -> (i32, i32, i32, i32) {
    %c0_i32 = arith.constant 0 : i32
    %c0_i32_0 = arith.constant 0 : i32
    %c0_i32_1 = arith.constant 0 : i32
    %c0_i32_2 = arith.constant 0 : i32
    return %arg0, %c0_i32, %c0_i32_0, %c0_i32_1 : i32, i32, i32, i32
  }
  func.func @transform_1(%arg0: i32) -> (i32, i32) {
    %c0_i32 = arith.constant 0 : i32
    %c0_i32_0 = arith.constant 0 : i32
    %c0_i32_1 = arith.constant 0 : i32
    return %c0_i32, %c0_i32_0 : i32, i32
  }
  func.func @transform_2(%arg0: i32) -> (i32, i32) {
    %c0_i32 = arith.constant 0 : i32
    %c0_i32_0 = arith.constant 0 : i32
    %c0_i32_1 = arith.constant 0 : i32
    return %c0_i32, %c0_i32_0 : i32, i32
  }
  func.func @transform_3(%arg0: i32) -> (i32, i32) {
    %c0_i32 = arith.constant 0 : i32
    %c0_i32_0 = arith.constant 0 : i32
    %c0_i32_1 = arith.constant 0 : i32
    return %c0_i32, %c0_i32_0 : i32, i32
  }
  func.func @transform_4(%arg0: i32) -> (i32, i32) {
    %c0_i32 = arith.constant 0 : i32
    %c0_i32_0 = arith.constant 0 : i32
    %c0_i32_1 = arith.constant 0 : i32
    return %c0_i32, %c0_i32_0 : i32, i32
  }
  func.func @transform_5(%arg0: i32) -> (i32, i32, i32) {
    %c0_i32 = arith.constant 0 : i32
    %c0_i32_0 = arith.constant 0 : i32
    %c0_i32_1 = arith.constant 0 : i32
    return %arg0, %c0_i32, %c0_i32_0 : i32, i32, i32
  }
}

</mosaic_0001>

<bundles_post_ra>
// kernel: decoder_block_forward.1
= control target key start
LH: loop header
LB: loop body
LE: loop exit
PB: predicated region body
PF: predicated region fallthrough
CT: control target
= control target key end

     0   :  { %10 = vsyncpa [#allocation5], 0  ;;  %s9259_s0 = inlined_call_operand.vmem [shape: f32[2,4,16,16], index: 0, kind: input, shape index: {}]   ;;  %s9260_s1 = inlined_call_operand.hbm [shape: f32[34,16], index: 1, kind: input, shape index: {}]   ;;  %s9261_s2 = inlined_call_operand.hbm [shape: f32[16,34], index: 2, kind: input, shape index: {}]   ;;  %s9262_s3 = inlined_call_operand.vmem [shape: f32[8,36], index: 3, kind: input, shape index: {}]   ;;  %s9263_s4 = inlined_call_operand.vmem [shape: f32[8,1], index: 4, kind: input, shape index: {}]   ;;  %s9264_s5 = inlined_call_operand.vmem [shape: f32[2,8,1024], index: 5, kind: output, shape index: {}]  }
   0x1   :  { %11 = vsyncpa [#allocation7], 0  ;;  %s6306_s18 = smov 0  }
   0x2 LB: > { %s6312_s19 = sadd.s32 4294967295, %s6260_s18   ;;  %p5842_p0 = scmp.ge.s32.totalorder %s6260_s18, 1  ;;  %s6260_s18 = sphi %s6306_s18, %s17_s18  }
   0x3   : > { %p158_p1 = scmp.lt.s32.totalorder %s6260_s18, 3  ;;  %s6262_s20 = smov [#allocation4]  }
   0x4   : > { %s170_s21 = sshll.u32 %s6262_s20, 4  ;;  %p6138_p3 = scmp.eq.s32.totalorder %s6312_s19, 0  ;;  %s171_s21 = int_to_ptr.vmem [resolvable:$true] %s170_s21 }
   0x5   : > { %p6316_p2 = pnand %p5842_p0, %p158_p1  ;;  %s6263_s23 = smov [#allocation6]  }
   0x6   : > { %s183_s24 = sshll.u32 %s6263_s23, 4  ;;  %s6205_s26 = scalar_lea.vmem %s171_s21, 640  ;;  %s184_s24 = int_to_ptr.vmem [resolvable:$true] %s183_s24 }
   0x7   : > { %p6131_p4 = pneg %p6316_p2  ;;  %p6206_p7 = scmp.ne.s32.totalorder %s171_s21, %s6205_s26 }
   0x8   : > { %p6213_p10 = scmp.lt.s32.totalorder %s171_s21, %s171_s21  ;;  %p6214_p11 = scmp.lt.s32.totalorder %s6205_s26, %s6205_s26 }
   0x9   : > { %p6325_p5 = pnand %p6138_p3, %p6131_p4 }
   0xa   : > { %p6215_p12 = por %p6214_p11, %p6213_p10 }
   0xb   : > { %p6196_p6 = pneg %p6325_p5 }
   0xd   : > { %p6208_p8 = pnand %p6206_p7, %p6196_p6 }
   0xf   : > { %p6209_p9 = pneg %p6208_p8 }
  0x11   : > { %p6216_p13 = pnand %p6215_p12, %p6209_p9 }
  0x13   : > { %6219 = shalt.err (!%p6216_p13)
}
  0x14   : > { %s6264_s27 = smov 128   ;;  %s6265_s28 = smov 8  }
  0x15   : > { %6134 = dma.hbm_to_vmem [thread:$0]  (!%p6325_p5), %s9260_s1, 640, %s171_s21, [#allocation5], %s6264_s27, %s6264_s27, %s6265_s28  }
  0x16   : > { %s6231_s6 = scalar_lea.vmem %s184_s24, 256  ;;  %p6239_p7 = scmp.lt.s32.totalorder %s184_s24, %s184_s24 }
  0x17   : > { %p6232_p0 = scmp.ne.s32.totalorder %s184_s24, %s6231_s6  ;;  %p6240_p8 = scmp.lt.s32.totalorder %s6231_s6, %s6231_s6 }
  0x19   : > { %p6234_p1 = pnand %p6232_p0, %p6196_p6  ;;  %p6241_p10 = por %p6240_p8, %p6239_p7 }
  0x1b   : > { %p6235_p4 = pneg %p6234_p1 }
  0x1d   : > { %p6242_p9 = pnand %p6241_p10, %p6235_p4 }
  0x1f   : > { %6245 = shalt.err (!%p6242_p9)
}
  0x20   : > { %6137 = dma.hbm_to_vmem [thread:$0]  (!%p6325_p5), %s9261_s2, 256, %s184_s24, [#allocation7], %s6264_s27, %s6264_s27, %s6265_s28  }
  0x21   : > { %213 = sbr.rel (%p6316_p2) target bundleno = 1398 (0x576), region = 40 }
  0x26   : > { %6251 = dma.done.wait (%p6138_p3), [#allocation5], 640  }
  0x27   : > { %6253 = vsyncadd (%p6138_p3), [#allocation5], 4294966656 }
  0x28   : > { %6255 = dma.done.wait (%p6138_p3), [#allocation7], 256  }
  0x29   : > { %6257 = vsyncadd (%p6138_p3), [#allocation7], 4294967040  ;;  %p245_p6 = scmp.lt.s32.totalorder %s6312_s19, 1  ;;  %v9265_v0 = vmov 0.0   ;;  %vm6267_vm0 = vmmov 0   ;;  %v255_v3 = vld [vmem:[#allocation4] sm:$0xff] }
  0x2a   : > { %5971 = vmatprep.subr.mxu0 %v9265_v0  ;;  %5975 = vmatprep.mubr.msk.f32.mxu0 %vm6267_vm0, %v9265_v0  ;;  %vm262_vm1 = vcmask 130048   ;;  %v256_v6 = vld [vmem:[#allocation4 + $0x8] sm:$0xff]  ;;  %v6384_v7 = vld [vmem:[#allocation6 + $0x8] sm:$0xff]  ;;  %v258_v9 = vld [vmem:[#allocation4 + $0x18] sm:$0xff]  ;;  %vm475_vm2 = vcmask 277504   ;;  %s6268_s13 = smov 127  }
  0x2b   : > { %s9618_s19 = smov (!%p245_p6, %s6312_s19), 1  ;;  %5990 = vmatprep.subr.mxu1 %v9265_v0  ;;  %5994 = vmatprep.mubr.msk.f32.mxu1 %vm6267_vm0, %v9265_v0  ;;  %v257_v8 = vld [vmem:[#allocation4 + $0x10] sm:$0xff]  ;;  %v259_v10 = vld [vmem:[#allocation4 + $0x20] sm:$0x3]  ;;  %v6442_v17 = vld [vmem:[#allocation6] sm:$0xff]  ;;  %s6269_s14 = smov 126  }
  0x2c   : > { %s5913_s9 = sshll.u32 %s9618_s19, 6  ;;  %5991 = vmatpush3.msra.mxu1 %v6384_v7  ;;  %v486_v13 = vld [vmem:[#allocation4 + $0x20] sm:$0x3]  ;;  %vm480_vm3 = vcmask 271360   ;;  %s6272_s15 = smov 64   ;;  %vm1544_vm4 = vcmask 261120  }
  0x2d   : > { %s6373_s12 = scalar_lea.vmem %s9259_s0, %s5913_s9  ;;  %5992 = vmatprep.subr.mxu1 %v9265_v0  ;;  %v712_v16 = vld [vmem:[#allocation4 + $0x20] sm:$0x3]  ;;  %s6273_s16 = smov 96   ;;  %vm1546_vm5 = vcmask 523264   ;;  %vm1548_vm6 = vcmask 785408   ;;  %vm5438_vm7 = vcmask 1043456  }
  0x2e   : > { %v261_v1 = vld [vmem:[%s6373_s12 + $0x8] sm:$0xff]  ;;  %v260_v2 = vld [vmem:[%s6373_s12] sm:$0xff]  ;;  %v5864_v4 = vld [vmem:[%s6373_s12 + $0x18] sm:$0xff]  ;;  %5993 = vmatpush3.msra.mxu1 %v6442_v17  ;;  %s6274_s17 = smov 32   ;;  %vm5434_vm8 = vcmask 293888   ;;  %s254_s26 = scalar_lea.vmem %s9264_s5, %s5913_s9 }
  0x2f   : > { %5972 = vmatpush3.msra.mxu0 %v261_v1  ;;  %v5863_v5 = vld [vmem:[%s6373_s12 + $0x10] sm:$0xff]  ;;  %v5876_v11 = vld [vmem:[%s6373_s12 + $0x28] sm:$0xff]  ;;  %v5875_v12 = vld [vmem:[%s6373_s12 + $0x20] sm:$0xff]  ;;  %6028 = vmatprep.subr.mxu1 %v9265_v0 }
  0x30   : > { %5973 = vmatprep.subr.mxu0 %v9265_v0  ;;  %v5888_v14 = vld [vmem:[%s6373_s12 + $0x38] sm:$0xff]  ;;  %v5887_v15 = vld [vmem:[%s6373_s12 + $0x30] sm:$0xff]  ;;  %v938_v18 = vld [vmem:[#allocation4 + $0x20] sm:$0x3] }
  0x31   : > { %5974 = vmatpush3.msra.mxu0 %v260_v2 }
  0x32   : > { %5976 = vmatmul.mubr.msk.f32.vlgmr.msra.gmra.mxu0 %vm262_vm1, %v255_v3  ;;  %6009 = vmatprep.subr.mxu0 %v9265_v0 }
  0x33   : > { %5978 = vmatprep.mubr.msk.f32.mxu0 %vm6267_vm0, %v9265_v0  ;;  %6010 = vmatpush3.msra.mxu0 %v5864_v4 }
  0x34   : > { %6011 = vmatprep.subr.mxu0 %v9265_v0 }
  0x35   : > { %6012 = vmatpush3.msra.mxu0 %v5863_v5 }
  0x36   : > { %5979 = vmatmul.mubr.msk.f32.gmra.mxu0 %vm262_vm1, %v256_v6  ;;  %6047 = vmatprep.subr.mxu0 %v9265_v0 }
  0x37   : > { %5981 = vmatprep.mubr.msk.f32.mxu0 %vm6267_vm0, %v9265_v0 }
  0x3a   : > { %5982 = vmatmul.mubr.msk.f32.gmra.mxu0 %vm262_vm1, %v257_v8 }
  0x3b   : > { %5984 = vmatprep.mubr.msk.f32.mxu0 %vm6267_vm0, %v9265_v0 }
  0x3e   : > { %5985 = vmatmul.mubr.msk.f32.gmra.mxu0 %vm262_vm1, %v258_v9 }
  0x3f   : > { %5987 = vmatprep.mubr.msk.f32.mxu0 %vm6267_vm0, %v9265_v0 }
  0x42   : > { %5988 = vmatmul.mubr.msk.f32.gmra.mxu0 %vm262_vm1, %v259_v10 }
  0x43   : > { %6013 = vmatprep.mubr.msk.f32.mxu0 %vm6267_vm0, %v9265_v0 }
  0x46   : > { %6014 = vmatmul.mubr.msk.f32.vlgmr.msra.gmra.mxu0 %vm262_vm1, %v255_v3 }
  0x47   : > { %6016 = vmatprep.mubr.msk.f32.mxu0 %vm6267_vm0, %v9265_v0  ;;  %6048 = vmatpush3.msra.mxu0 %v5876_v11 }
  0x48   : > { %6049 = vmatprep.subr.mxu0 %v9265_v0 }
  0x49   : > { %6050 = vmatpush3.msra.mxu0 %v5875_v12 }
  0x4a   : > { %6017 = vmatmul.mubr.msk.f32.gmra.mxu0 %vm262_vm1, %v256_v6  ;;  %6085 = vmatprep.subr.mxu0 %v9265_v0 }
  0x4b   : > { %6019 = vmatprep.mubr.msk.f32.mxu0 %vm6267_vm0, %v9265_v0 }
  0x4e   : > { %6020 = vmatmul.mubr.msk.f32.gmra.mxu0 %vm262_vm1, %v257_v8 }
  0x4f   : > { %6022 = vmatprep.mubr.msk.f32.mxu0 %vm6267_vm0, %v9265_v0 }
  0x52   : > { %6023 = vmatmul.mubr.msk.f32.gmra.mxu0 %vm262_vm1, %v258_v9 }
  0x53   : > { %6025 = vmatprep.mubr.msk.f32.mxu0 %vm6267_vm0, %v9265_v0 }
  0x56   : > { %6026 = vmatmul.mubr.msk.f32.gmra.mxu0 %vm262_vm1, %v486_v13 }
  0x57   : > { %6051 = vmatprep.mubr.msk.f32.mxu0 %vm6267_vm0, %v9265_v0 }
  0x5a   : > { %6052 = vmatmul.mubr.msk.f32.vlgmr.msra.gmra.mxu0 %vm262_vm1, %v255_v3 }
  0x5b   : > { %6054 = vmatprep.mubr.msk.f32.mxu0 %vm6267_vm0, %v9265_v0  ;;  %6086 = vmatpush3.msra.mxu0 %v5888_v14 }
  0x5c   : > { %6087 = vmatprep.subr.mxu0 %v9265_v0 }
  0x5d   : > { %6088 = vmatpush3.msra.mxu0 %v5887_v15 }
  0x5e   : > { %6055 = vmatmul.mubr.msk.f32.gmra.mxu0 %vm262_vm1, %v256_v6 }
  0x5f   : > { %6057 = vmatprep.mubr.msk.f32.mxu0 %vm6267_vm0, %v9265_v0 }
  0x62   : > { %6058 = vmatmul.mubr.msk.f32.gmra.mxu0 %vm262_vm1, %v257_v8 }
  0x63   : > { %6060 = vmatprep.mubr.msk.f32.mxu0 %vm6267_vm0, %v9265_v0 }
  0x66   : > { %6061 = vmatmul.mubr.msk.f32.gmra.mxu0 %vm262_vm1, %v258_v9 }
  0x67   : > { %6063 = vmatprep.mubr.msk.f32.mxu0 %vm6267_vm0, %v9265_v0 }
  0x6a   : > { %6064 = vmatmul.mubr.msk.f32.gmra.mxu0 %vm262_vm1, %v712_v16 }
  0x6b   : > { %6089 = vmatprep.mubr.msk.f32.mxu0 %vm6267_vm0, %v9265_v0 }
  0x6e   : > { %6090 = vmatmul.mubr.msk.f32.vlgmr.msra.gmra.mxu0 %vm262_vm1, %v255_v3 }
  0x6f   : > { %6092 = vmatprep.mubr.msk.f32.mxu0 %vm6267_vm0, %v9265_v0 }
  0x72   : > { %6093 = vmatmul.mubr.msk.f32.gmra.mxu0 %vm262_vm1, %v256_v6 }
  0x73   : > { %6095 = vmatprep.mubr.msk.f32.mxu0 %vm6267_vm0, %v9265_v0 }
  0x76   : > { %6096 = vmatmul.mubr.msk.f32.gmra.mxu0 %vm262_vm1, %v257_v8 }
  0x77   : > { %6098 = vmatprep.mubr.msk.f32.mxu0 %vm6267_vm0, %v9265_v0 }
  0x7a   : > { %6099 = vmatmul.mubr.msk.f32.gmra.mxu0 %vm262_vm1, %v258_v9 }
  0x7b   : > { %6101 = vmatprep.mubr.msk.f32.mxu0 %vm6267_vm0, %v9265_v0 }
  0x7e   : > { %6102 = vmatmul.mubr.msk.f32.gmra.mxu0 %vm262_vm1, %v938_v18 }
  0x7f   : > { %5527 = vmatprep.mubr.f32.mxu0 %v9265_v0 }
  0xf2   : > { %v344_v19 = vpop.f32.mrf.mxu0 }
  0xf3   : > { %5995 = vmatmul.mubr.msk.f32.vlgmr.msra.gmra.mxu1 %vm262_vm1, %v344_v19 }
  0xf4   : > { %v5977_v20 = vpop.f32.mrf.mxu0  ;;  %5997 = vmatprep.mubr.msk.f32.mxu1 %vm6267_vm0, %v9265_v0  ;;  %6029 = vmatpush3.msra.mxu1 %v6384_v7 }
  0xf5   : > { %6030 = vmatprep.subr.mxu1 %v9265_v0 }
  0xf6   : > { %v349_v21 = vpop.f32.mrf.mxu0  ;;  %6031 = vmatpush3.msra.mxu1 %v6442_v17 }
  0xf7   : > { %5998 = vmatmul.mubr.msk.f32.gmra.mxu1 %vm262_vm1, %v349_v21  ;;  %6066 = vmatprep.subr.mxu1 %v9265_v0 }
  0xf8   : > { %v5980_v22 = vpop.f32.mrf.mxu0  ;;  %6000 = vmatprep.mubr.msk.f32.mxu1 %vm6267_vm0, %v9265_v0 }
  0xfa   : > { %v354_v23 = vpop.f32.mrf.mxu0 }
  0xfb   : > { %6001 = vmatmul.mubr.msk.f32.gmra.mxu1 %vm262_vm1, %v354_v23 }
  0xfc   : > { %v5983_v24 = vpop.f32.mrf.mxu0  ;;  %6003 = vmatprep.mubr.msk.f32.mxu1 %vm6267_vm0, %v9265_v0 }
  0xfe   : > { %v359_v25 = vpop.f32.mrf.mxu0 }
  0xff   : > { %6004 = vmatmul.mubr.msk.f32.gmra.mxu1 %vm262_vm1, %v359_v25 }
 0x100   : > { %v5986_v26 = vpop.f32.mrf.mxu0  ;;  %6006 = vmatprep.mubr.msk.f32.mxu1 %vm6267_vm0, %v9265_v0 }
 0x102   : > { %v364_v27 = vpop.f32.mrf.mxu0 }
 0x103   : > { %6007 = vmatmul.mubr.msk.f32.gmra.mxu1 %vm262_vm1, %v364_v27 }
 0x104   : > { %v5989_v28 = vpop.f32.mrf.mxu0  ;;  %6032 = vmatprep.mubr.msk.f32.mxu1 %vm6267_vm0, %v9265_v0 }
 0x106   : > { %v571_v29 = vpop.f32.mrf.mxu0 }
 0x107   : > { %6033 = vmatmul.mubr.msk.f32.vlgmr.msra.gmra.mxu1 %vm262_vm1, %v571_v29 }
 0x108   : > { %v6015_v30 = vpop.f32.mrf.mxu0  ;;  %6035 = vmatprep.mubr.msk.f32.mxu1 %vm6267_vm0, %v9265_v0  ;;  %6067 = vmatpush3.msra.mxu1 %v6384_v7 }
 0x109   : > { %6068 = vmatprep.subr.mxu1 %v9265_v0 }
 0x10a   : > { %v576_v31 = vpop.f32.mrf.mxu0  ;;  %6069 = vmatpush3.msra.mxu1 %v6442_v17 }
 0x10b   : > { %6036 = vmatmul.mubr.msk.f32.gmra.mxu1 %vm262_vm1, %v576_v31  ;;  %6104 = vmatprep.subr.mxu1 %v9265_v0 }
 0x10c   : > { %v6018_v32 = vpop.f32.mrf.mxu0  ;;  %6038 = vmatprep.mubr.msk.f32.mxu1 %vm6267_vm0, %v9265_v0 }
 0x10e   : > { %v581_v33 = vpop.f32.mrf.mxu0 }
 0x10f   : > { %6039 = vmatmul.mubr.msk.f32.gmra.mxu1 %vm262_vm1, %v581_v33 }
 0x110   : > { %v6021_v34 = vpop.f32.mrf.mxu0  ;;  %6041 = vmatprep.mubr.msk.f32.mxu1 %vm6267_vm0, %v9265_v0 }
 0x112   : > { %v586_v35 = vpop.f32.mrf.mxu0 }
 0x113   : > { %6042 = vmatmul.mubr.msk.f32.gmra.mxu1 %vm262_vm1, %v586_v35 }
 0x114   : > { %v6024_v36 = vpop.f32.mrf.mxu0  ;;  %6044 = vmatprep.mubr.msk.f32.mxu1 %vm6267_vm0, %v9265_v0 }
 0x116   : > { %v591_v37 = vpop.f32.mrf.mxu0 }
 0x117   : > { %6045 = vmatmul.mubr.msk.f32.gmra.mxu1 %vm262_vm1, %v591_v37 }
 0x118   : > { %v6027_v38 = vpop.f32.mrf.mxu0  ;;  %6070 = vmatprep.mubr.msk.f32.mxu1 %vm6267_vm0, %v9265_v0 }
 0x11a   : > { %v797_v39 = vpop.f32.mrf.mxu0 }
 0x11b   : > { %6071 = vmatmul.mubr.msk.f32.vlgmr.msra.gmra.mxu1 %vm262_vm1, %v797_v39 }
 0x11c   : > { %v6053_v40 = vpop.f32.mrf.mxu0  ;;  %6073 = vmatprep.mubr.msk.f32.mxu1 %vm6267_vm0, %v9265_v0  ;;  %6105 = vmatpush3.msra.mxu1 %v6384_v7 }
 0x11d   : > { %6106 = vmatprep.subr.mxu1 %v9265_v0 }
 0x11e   : > { %v802_v41 = vpop.f32.mrf.mxu0  ;;  %6107 = vmatpush3.msra.mxu1 %v6442_v17 }
 0x11f   : > { %6074 = vmatmul.mubr.msk.f32.gmra.mxu1 %vm262_vm1, %v802_v41 }
 0x120   : > { %v6056_v42 = vpop.f32.mrf.mxu0  ;;  %6076 = vmatprep.mubr.msk.f32.mxu1 %vm6267_vm0, %v9265_v0 }
 0x122   : > { %v807_v43 = vpop.f32.mrf.mxu0 }
 0x123   : > { %6077 = vmatmul.mubr.msk.f32.gmra.mxu1 %vm262_vm1, %v807_v43 }
 0x124   : > { %v6059_v44 = vpop.f32.mrf.mxu0  ;;  %6079 = vmatprep.mubr.msk.f32.mxu1 %vm6267_vm0, %v9265_v0 }
 0x126   : > { %v812_v45 = vpop.f32.mrf.mxu0 }
 0x127   : > { %6080 = vmatmul.mubr.msk.f32.gmra.mxu1 %vm262_vm1, %v812_v45 }
 0x128   : > { %v6062_v46 = vpop.f32.mrf.mxu0  ;;  %6082 = vmatprep.mubr.msk.f32.mxu1 %vm6267_vm0, %v9265_v0 }
 0x12a   : > { %v817_v47 = vpop.f32.mrf.mxu0 }
 0x12b   : > { %6083 = vmatmul.mubr.msk.f32.gmra.mxu1 %vm262_vm1, %v817_v47 }
 0x12c   : > { %v6065_v48 = vpop.f32.mrf.mxu0  ;;  %6108 = vmatprep.mubr.msk.f32.mxu1 %vm6267_vm0, %v9265_v0 }
 0x12e   : > { %v1023_v49 = vpop.f32.mrf.mxu0 }
 0x12f   : > { %6109 = vmatmul.mubr.msk.f32.vlgmr.msra.gmra.mxu1 %vm262_vm1, %v1023_v49  ;;  %v6270_v49 = vmov 1983009808  }
 0x130   : > { %v6091_v50 = vpop.f32.mrf.mxu0  ;;  %6111 = vmatprep.mubr.msk.f32.mxu1 %vm6267_vm0, %v9265_v0 }
 0x131   : > { %v1179_v50 = vunpack.c.l.s4 %v6270_v49 }
 0x132   : > { %v1028_v51 = vpop.f32.mrf.mxu0 }
 0x133   : > { %6112 = vmatmul.mubr.msk.f32.gmra.mxu1 %vm262_vm1, %v1028_v51  ;;  %v1181_v51 = vlaneseq }
 0x134   : > { %v6094_v52 = vpop.f32.mrf.mxu0  ;;  %6114 = vmatprep.mubr.msk.f32.mxu1 %vm6267_vm0, %v9265_v0 }
 0x136   : > { %v1033_v53 = vpop.f32.mrf.mxu0 }
 0x137   : > { %6115 = vmatmul.mubr.msk.f32.gmra.mxu1 %vm262_vm1, %v1033_v53 }
 0x138   : > { %v6097_v54 = vpop.f32.mrf.mxu0  ;;  %6117 = vmatprep.mubr.msk.f32.mxu1 %vm6267_vm0, %v9265_v0 }
 0x139   : > { %v1180_v54 = vunpack.c.0.s8 %v1179_v50 }
 0x13a   : > { %v1038_v55 = vpop.f32.mrf.mxu0 }
 0x13b   : > { %6118 = vmatmul.mubr.msk.f32.gmra.mxu1 %vm262_vm1, %v1038_v55  ;;  %v6612_v55 = vshrl.u32 %v1181_v51, 7 }
 0x13c   : > { %v6100_v56 = vpop.f32.mrf.mxu0  ;;  %6120 = vmatprep.mubr.msk.f32.mxu1 %vm6267_vm0, %v9265_v0 }
 0x13e   : > { %v1043_v57 = vpop.f32.mrf.mxu0 }
 0x13f   : > { %6121 = vmatmul.mubr.msk.f32.gmra.mxu1 %vm262_vm1, %v1043_v57 }
 0x140   : > { %v6103_v58 = vpop.f32.mrf.mxu0  ;;  %5598 = vmatprep.mubr.f32.mxu1 %v9265_v0 }
 0x1b3   : > { %v451_v59 = vpop.f32.mrf.mxu1 }
 0x1b4   : > { %476 = vst.msk [vmem:[#allocation2] sm:$0xff] %vm475_vm2, %v451_v59  ;;  %v6618_v59 = vsub.s32 %v1180_v54, %v6612_v55 }
 0x1b5   : > { %v5996_v60 = vpop.f32.mrf.mxu1 }
 0x1b7   : > { %v456_v61 = vpop.f32.mrf.mxu1 }
 0x1b8   : > { %477 = vst.msk [vmem:[#allocation2 + $0x8] sm:$0xff] %vm475_vm2, %v456_v61 }
 0x1b9   : > { %v5999_v62 = vpop.f32.mrf.mxu1 }
 0x1bb   : > { %v461_v63 = vpop.f32.mrf.mxu1  ;;  %v6529_v1 = vld [vmem:[#allocation2] sm:$0xff] }
 0x1bc   : > { %478 = vst.msk [vmem:[#allocation2 + $0x10] sm:$0xff] %vm475_vm2, %v461_v63  ;;  %1611 = vrot.lane.b32.xlu0 %v6529_v1, %s6268_s13 }
 0x1bd   : > { %v6002_v2 = vpop.f32.mrf.mxu1 }
 0x1bf   : > { %v466_v3 = vpop.f32.mrf.mxu1  ;;  %v6534_v4 = vld [vmem:[#allocation2 + $0x8] sm:$0xff] }
 0x1c0   : > { %479 = vst.msk [vmem:[#allocation2 + $0x18] sm:$0xff] %vm475_vm2, %v466_v3  ;;  %2115 = vrot.lane.b32.xlu0 %v6529_v1, %s6269_s14  ;;  %1613 = vrot.lane.b32.xlu1 %v6534_v4, %s6268_s13  ;;  %v6541_v7 = vld [vmem:[#allocation2 + $0x1] sm:$0xff] }
 0x1c1   : > { %v6005_v5 = vpop.f32.mrf.mxu1  ;;  %v6548_v10 = vld [vmem:[#allocation2 + $0x2] sm:$0xff] }
 0x1c3   : > { %v471_v6 = vpop.f32.mrf.mxu1  ;;  %v6550_v11 = vld [vmem:[#allocation2 + $0x9] sm:$0xff] }
 0x1c4   : > { %481 = vst.msk [vmem:[#allocation2 + $0x20] sm:$0x3] %vm480_vm3, %v471_v6  ;;  %3035 = vrot.lane.b32.xlu0 %v6541_v7, %s6268_s13  ;;  %2117 = vrot.lane.b32.xlu1 %v6534_v4, %s6269_s14  ;;  %v4404_v14 = vld [vmem:[#allocation2 + $0xa] sm:$0xff] }
 0x1c5   : > { %v6008_v8 = vpop.f32.mrf.mxu1  ;;  %v6565_v19 = vld [vmem:[#allocation2 + $0x10] sm:$0xff] }
 0x1c7   : > { %v678_v9 = vpop.f32.mrf.mxu1  ;;  %v1582_v21 = vld [vmem:[#allocation2 + $0x18] sm:$0xff] }
 0x1c8   : > { %703 = vst.msk [vmem:[#allocation2 + $0x28] sm:$0xff] %vm475_vm2, %v678_v9  ;;  %4435 = vrot.lane.b32.xlu0 %v6548_v10, %s6268_s13  ;;  %3037 = vrot.lane.b32.xlu1 %v6550_v11, %s6268_s13  ;;  %v3005_v25 = vld [vmem:[#allocation2 + $0x11] sm:$0xff] }
 0x1c9   : > { %v6034_v12 = vpop.f32.mrf.mxu1  ;;  %v4405_v28 = vld [vmem:[#allocation2 + $0x12] sm:$0xff] }
 0x1cb   : > { %v683_v13 = vpop.f32.mrf.mxu1  ;;  %v3006_v29 = vld [vmem:[#allocation2 + $0x19] sm:$0xff] }
 0x1cc   : > { %704 = vst.msk [vmem:[#allocation2 + $0x30] sm:$0xff] %vm475_vm2, %v683_v13  ;;  %4939 = vrot.lane.b32.xlu0 %v6548_v10, %s6269_s14  ;;  %4437 = vrot.lane.b32.xlu1 %v4404_v14, %s6268_s13  ;;  %v4406_v32 = vld [vmem:[#allocation2 + $0x1a] sm:$0xff] }
 0x1cd   : > { %v6037_v15 = vpop.f32.mrf.mxu1 }
 0x1cf   : > { %v688_v16 = vpop.f32.mrf.mxu1  ;;  %v1583_v43 = vld [vmem:[#allocation2 + $0x28] sm:$0xff] }
 0x1d0   : > { %705 = vst.msk [vmem:[#allocation2 + $0x38] sm:$0xff] %vm475_vm2, %v688_v16  ;;  %3515 = vrot.lane.b32.xlu0 %v6541_v7, %s6269_s14  ;;  %4941 = vrot.lane.b32.xlu1 %v4404_v14, %s6269_s14 }
 0x1d1   : > { %v6040_v17 = vpop.f32.mrf.mxu1 }
 0x1d3   : > { %v693_v18 = vpop.f32.mrf.mxu1  ;;  %v1584_v48 = vld [vmem:[#allocation2 + $0x30] sm:$0xff] }
 0x1d4   : > { %706 = vst.msk [vmem:[#allocation2 + $0x40] sm:$0xff] %vm475_vm2, %v693_v18  ;;  %3517 = vrot.lane.b32.xlu1 %v6550_v11, %s6269_s14  ;;  %1615 = vrot.lane.b32.xlu0 %v6565_v19, %s6268_s13  ;;  %v3007_v57 = vld [vmem:[#allocation2 + $0x29] sm:$0xff] }
 0x1d5   : > { %v6043_v20 = vpop.f32.mrf.mxu1  ;;  %v6620_v61 = vld [vmem:[#allocation2 + $0x2a] sm:$0xff] }
 0x1d7   : > { %v698_v22 = vpop.f32.mrf.mxu1  ;;  %v6622_v62 = vld [vmem:[#allocation2 + $0x31] sm:$0xff] }
 0x1d8   : > { %707 = vst.msk [vmem:[#allocation2 + $0x48] sm:$0x3] %vm480_vm3, %v698_v22  ;;  %2119 = vrot.lane.b32.xlu0 %v6565_v19, %s6269_s14  ;;  %1617 = vrot.lane.b32.xlu1 %v1582_v21, %s6268_s13  ;;  %v6647_v14 = vld [vmem:[#allocation2 + $0x32] sm:$0xff] }
 0x1d9   : > { %v6046_v23 = vpop.f32.mrf.mxu1  ;;  %v1585_v49 = vld [vmem:[#allocation2 + $0x38] sm:$0xff] }
 0x1db   : > { %v904_v24 = vpop.f32.mrf.mxu1  ;;  %v1586_v54 = vld [vmem:[#allocation2 + $0x40] sm:$0xff] }
 0x1dc   : > { %929 = vst.msk [vmem:[#allocation2 + $0x50] sm:$0xff] %vm475_vm2, %v904_v24  ;;  %3039 = vrot.lane.b32.xlu0 %v3005_v25, %s6268_s13  ;;  %2121 = vrot.lane.b32.xlu1 %v1582_v21, %s6269_s14 }
 0x1dd   : > { %v6072_v26 = vpop.f32.mrf.mxu1 }
 0x1df   : > { %v909_v27 = vpop.f32.mrf.mxu1 }
 0x1e0   : > { %930 = vst.msk [vmem:[#allocation2 + $0x58] sm:$0xff] %vm475_vm2, %v909_v27  ;;  %4439 = vrot.lane.b32.xlu0 %v4405_v28, %s6268_s13  ;;  %3041 = vrot.lane.b32.xlu1 %v3006_v29, %s6268_s13 }
 0x1e1   : > { %v6075_v30 = vpop.f32.mrf.mxu1 }
 0x1e3   : > { %v914_v31 = vpop.f32.mrf.mxu1  ;;  %v6582_v33 = vld [vmem:[#allocation2 + $0x50] sm:$0xff] }
 0x1e4   : > { %931 = vst.msk [vmem:[#allocation2 + $0x60] sm:$0xff] %vm475_vm2, %v914_v31  ;;  %4943 = vrot.lane.b32.xlu0 %v4405_v28, %s6269_s14  ;;  %4441 = vrot.lane.b32.xlu1 %v4406_v32, %s6268_s13  ;;  %v1176_v34 = vcombine.low %v6529_v1, %v6582_v33  ;;  %v1177_v35 = vcombine.high %v6529_v1, %v6582_v33 }
 0x1e5   : > { %v6078_v36 = vpop.f32.mrf.mxu1 }
 0x1e6   : > { %v6636_v6 = vrot.slane %v1176_v34, %v6618_v59  ;;  %v6642_v9 = vrot.slane %v1177_v35, %v6618_v59 }
 0x1e7   : > { %v919_v37 = vpop.f32.mrf.mxu1  ;;  %v6591_v38 = vld [vmem:[#allocation2 + $0x58] sm:$0xff] }
 0x1e8   : > { %v6593_v39 = vld [vmem:[#allocation2 + $0x52] sm:$0xff]  ;;  %932 = vst.msk [vmem:[#allocation2 + $0x68] sm:$0xff] %vm475_vm2, %v919_v37  ;;  %3519 = vrot.lane.b32.xlu0 %v3005_v25, %s6269_s14  ;;  %4945 = vrot.lane.b32.xlu1 %v4406_v32, %s6269_s14  ;;  %v1244_v40 = vcombine.low %v6534_v4, %v6591_v38  ;;  %v1245_v41 = vcombine.high %v6534_v4, %v6591_v38  ;;  %v6271_v37 = vmov 1934713408  }
 0x1e9   : > { %v6081_v42 = vpop.f32.mrf.mxu1  ;;  %v4004_v44 = vcombine.high %v6548_v10, %v6593_v39  ;;  %v4003_v45 = vcombine.low %v6548_v10, %v6593_v39  ;;  %v6631_v1 = vld [vmem:[#allocation2 + $0x51] sm:$0xff]  ;;  %v1211_v24 = vunpack.c.l.s4 %v6271_v37 }
 0x1ea   : > { %v2580_v17 = vcombine.high %v6541_v7, %v6631_v1  ;;  %v2579_v18 = vcombine.low %v6541_v7, %v6631_v1  ;;  %v6674_v27 = vrot.slane %v1244_v40, %v6618_v59  ;;  %v6684_v31 = vrot.slane %v1245_v41, %v6618_v59 }
 0x1eb   : > { %v924_v46 = vpop.f32.mrf.mxu1  ;;  %v6719_v50 = vld [vmem:[#allocation2 + $0x60] sm:$0xff]  ;;  %v1212_v0 = vunpack.c.0.s8 %v1211_v24 }
 0x1ec   : > { %933 = vst.msk [vmem:[#allocation2 + $0x70] sm:$0x3] %vm480_vm3, %v924_v46  ;;  %3521 = vrot.lane.b32.xlu1 %v3006_v29, %s6269_s14  ;;  %1619 = vrot.lane.b32.xlu0 %v1583_v43, %s6268_s13  ;;  %v6699_v36 = vrot.slane %v2580_v17, %v6618_v59  ;;  %v6708_v41 = vrot.slane %v2579_v18, %v6618_v59 }
 0x1ed   : > { %v6084_v47 = vpop.f32.mrf.mxu1 }
 0x1ef   : > { %v1130_v52 = vpop.f32.mrf.mxu1 }
 0x1f0   : > { %1155 = vst.msk [vmem:[#allocation2 + $0x78] sm:$0xff] %vm475_vm2, %v1130_v52  ;;  %2123 = vrot.lane.b32.xlu0 %v1583_v43, %s6269_s14  ;;  %1621 = vrot.lane.b32.xlu1 %v1584_v48, %s6268_s13 }
 0x1f1   : > { %v6110_v53 = vpop.f32.mrf.mxu1 }
 0x1f3   : > { %v1135_v56 = vpop.f32.mrf.mxu1  ;;  %v3494_v46 = vld [vmem:[#allocation2 + $0x69] sm:$0xff] }
 0x1f4   : > { %1156 = vst.msk [vmem:[#allocation2 + $0x80] sm:$0xff] %vm475_vm2, %v1135_v56  ;;  %3043 = vrot.lane.b32.xlu0 %v3007_v57, %s6268_s13  ;;  %2125 = vrot.lane.b32.xlu1 %v1584_v48, %s6269_s14  ;;  %v6730_v56 = vld [vmem:[#allocation2 + $0x59] sm:$0xff] }
 0x1f5   : > { %v6113_v58 = vpop.f32.mrf.mxu1  ;;  %v2647_v18 = vcombine.low %v6550_v11, %v6730_v56 }
 0x1f7   : > { %v1140_v60 = vpop.f32.mrf.mxu1  ;;  %v6624_v63 = vld [vmem:[#allocation2 + $0x78] sm:$0xff]  ;;  %v6797_v4 = vrot.slane %v2647_v18, %v6618_v59 }
 0x1f8   : > { %1157 = vst.msk [vmem:[#allocation2 + $0x88] sm:$0xff] %vm475_vm2, %v1140_v60  ;;  %4443 = vrot.lane.b32.xlu0 %v6620_v61, %s6268_s13  ;;  %3045 = vrot.lane.b32.xlu1 %v6622_v62, %s6268_s13  ;;  %v1192_v2 = vcombine.low %v1583_v43, %v6624_v63  ;;  %v1193_v3 = vcombine.high %v1583_v43, %v6624_v63 }
 0x1f9   : > { %v6116_v5 = vpop.f32.mrf.mxu1  ;;  %v6740_v60 = vrot.slane %v4004_v44, %v6618_v59 }
 0x1fa   : > { %v6639_v8 = vrot.slane %v1192_v2, %v6618_v59  ;;  %v6645_v12 = vrot.slane %v1193_v3, %v6618_v59  ;;  %v6745_v2 = vld [vmem:[#allocation2 + $0x5a] sm:$0xff]  ;;  %v6751_v3 = vrot.slane %v4003_v45, %v6618_v59 }
 0x1fb   : > { %v1145_v13 = vpop.f32.mrf.mxu1  ;;  %v6649_v15 = vld [vmem:[#allocation2 + $0x80] sm:$0xff] }
 0x1fc   : > { %v6651_v16 = vld [vmem:[#allocation2 + $0x79] sm:$0xff]  ;;  %1158 = vst.msk [vmem:[#allocation2 + $0x90] sm:$0xff] %vm475_vm2, %v1145_v13  ;;  %4947 = vrot.lane.b32.xlu0 %v6620_v61, %s6269_s14  ;;  %4445 = vrot.lane.b32.xlu1 %v6647_v14, %s6268_s13  ;;  %v1209_v20 = vcombine.high %v6636_v6, %v6639_v8  ;;  %v1260_v7 = vcombine.low %v1584_v48, %v6649_v15 }
 0x1fd   : > { %v6119_v23 = vpop.f32.mrf.mxu1  ;;  %v1261_v25 = vcombine.high %v1584_v48, %v6649_v15  ;;  %v2596_v26 = vcombine.high %v3007_v57, %v6651_v16  ;;  %v2595_v28 = vcombine.low %v3007_v57, %v6651_v16  ;;  %v6696_v35 = vld [vmem:[#allocation2 + $0x7a] sm:$0xff]  ;;  %v1312_v13 = vcombine.low %v6565_v19, %v6719_v50 }
 0x1fe   : > { %v6678_v30 = vrot.slane %v1260_v7, %v6618_v59  ;;  %v4020_v51 = vcombine.high %v6620_v61, %v6696_v35  ;;  %v4019_v52 = vcombine.low %v6620_v61, %v6696_v35  ;;  %v3988_v23 = vld [vmem:[#allocation2 + $0xa] sm:$0xff]  ;;  %v1313_v7 = vcombine.high %v6565_v19, %v6719_v50 }
 0x1ff   : > { %v1150_v29 = vpop.f32.mrf.mxu1  ;;  %v6687_v32 = vrot.slane %v1261_v25, %v6618_v59  ;;  %v6690_v34 = vrot.slane %v2596_v26, %v6618_v59  ;;  %v6717_v48 = vrot.slane %v2595_v28, %v6618_v59  ;;  %v6758_v17 = vld [vmem:[#allocation2 + $0x81] sm:$0xff]  ;;  %v2648_v25 = vcombine.high %v6550_v11, %v6730_v56 }
 0x200   : > { %1159 = vst.msk [vmem:[#allocation2 + $0x98] sm:$0x3] %vm480_vm3, %v1150_v29  ;;  %3523 = vrot.lane.b32.xlu0 %v3007_v57, %s6269_s14  ;;  %4949 = vrot.lane.b32.xlu1 %v6647_v14, %s6269_s14  ;;  %v6732_v57 = vld [vmem:[#allocation2 + $0x88] sm:$0xff]  ;;  %v6743_v61 = vrot.slane %v4020_v51, %v6618_v59  ;;  %v6754_v5 = vrot.slane %v4019_v52, %v6618_v59  ;;  %v3009_v52 = vld [vmem:[#allocation2 + $0x39] sm:$0xff] }
 0x201   : > { %v6122_v42 = vpop.f32.mrf.mxu1  ;;  %v1328_v45 = vcombine.low %v1585_v49, %v6732_v57  ;;  %v4072_v26 = vcombine.high %v3988_v23, %v6745_v2  ;;  %v6775_v28 = vrot.slane %v1312_v13, %v6618_v59  ;;  %v6784_v53 = vld [vmem:[#allocation2 + $0x82] sm:$0xff]  ;;  %v1329_v19 = vcombine.high %v1585_v49, %v6732_v57 }
 0x202   : > { %v2663_v42 = vcombine.low %v6622_v62, %v6758_v17  ;;  %v2664_v13 = vcombine.high %v6622_v62, %v6758_v17  ;;  %v4088_v18 = vcombine.high %v6647_v14, %v6784_v53  ;;  %v3010_v51 = vld [vmem:[#allocation2 + $0x41] sm:$0xff] }
 0x203   : > { %v6778_v29 = vrot.slane %v1328_v45, %v6618_v59  ;;  %v4071_v45 = vcombine.low %v3988_v23, %v6745_v2  ;;  %v6809_v23 = vrot.slane %v2648_v25, %v6618_v59  ;;  %v4087_v25 = vcombine.low %v6647_v14, %v6784_v53 }
 0x204   : > { %3525 = vrot.lane.b32.xlu1 %v6622_v62, %s6269_s14  ;;  %1623 = vrot.lane.b32.xlu0 %v1585_v49, %s6268_s13  ;;  %v6800_v10 = vrot.slane %v2663_v42, %v6618_v59  ;;  %v6806_v62 = vrot.slane %v1329_v19, %v6618_v59  ;;  %v4409_v42 = vld [vmem:[#allocation2 + $0x3a] sm:$0xff]  ;;  %v6830_v11 = vrot.slane %v4088_v18, %v6618_v59  ;;  %v4410_v18 = vld [vmem:[#allocation2 + $0x42] sm:$0xff] }
 0x205   : > { %v6838_v19 = vrot.slane %v4087_v25, %v6618_v59  ;;  %v4414_v25 = vld [vmem:[#allocation2 + $0x6a] sm:$0xff] }
 0x208   : > { %2127 = vrot.lane.b32.xlu0 %v1585_v49, %s6269_s14  ;;  %1625 = vrot.lane.b32.xlu1 %v1586_v54, %s6268_s13  ;;  %v6803_v49 = vrot.slane %v1313_v7, %v6618_v59  ;;  %v6835_v7 = vrot.slane %v4071_v45, %v6618_v59 }
 0x20c   : > { %3047 = vrot.lane.b32.xlu0 %v3009_v52, %s6268_s13  ;;  %2129 = vrot.lane.b32.xlu1 %v1586_v54, %s6269_s14  ;;  %v6812_v54 = vrot.slane %v2664_v13, %v6618_v59  ;;  %v6827_v13 = vrot.slane %v4072_v26, %v6618_v59  ;;  %v3493_v26 = vld [vmem:[#allocation2 + $0x61] sm:$0xff] }
 0x210   : > { %4447 = vrot.lane.b32.xlu0 %v4409_v42, %s6268_s13  ;;  %3049 = vrot.lane.b32.xlu1 %v3010_v51, %s6268_s13 }
 0x214   : > { %4951 = vrot.lane.b32.xlu0 %v4409_v42, %s6269_s14  ;;  %4449 = vrot.lane.b32.xlu1 %v4410_v18, %s6268_s13 }
 0x218   : > { %3527 = vrot.lane.b32.xlu0 %v3009_v52, %s6269_s14  ;;  %4953 = vrot.lane.b32.xlu1 %v4410_v18, %s6269_s14  ;;  %v4413_v18 = vld [vmem:[#allocation2 + $0x62] sm:$0xff] }
 0x21c   : > { %3529 = vrot.lane.b32.xlu1 %v3010_v51, %s6269_s14  ;;  %1627 = vrot.lane.b32.xlu0 %v6582_v33, %s6268_s13  ;;  %v1590_v51 = vld [vmem:[#allocation2 + $0x68] sm:$0xff] }
 0x220   : > { %2131 = vrot.lane.b32.xlu0 %v6582_v33, %s6269_s14  ;;  %1629 = vrot.lane.b32.xlu1 %v6591_v38, %s6268_s13 }
 0x224   : > { %4451 = vrot.lane.b32.xlu0 %v6593_v39, %s6268_s13  ;;  %2133 = vrot.lane.b32.xlu1 %v6591_v38, %s6269_s14 }
 0x228   : > { %4955 = vrot.lane.b32.xlu0 %v6593_v39, %s6269_s14  ;;  %4453 = vrot.lane.b32.xlu1 %v6745_v2, %s6268_s13 }
 0x22c   : > { %3531 = vrot.lane.b32.xlu0 %v6631_v1, %s6269_s14  ;;  %4957 = vrot.lane.b32.xlu1 %v6745_v2, %s6269_s14 }
 0x22e   : > { %v6877_v33 = vpop.permute.xlu0 %1611 }
 0x230   : > { %3051 = vrot.lane.b32.xlu0 %v6631_v1, %s6268_s13  ;;  %3533 = vrot.lane.b32.xlu1 %v6730_v56, %s6269_s14 }
 0x232   : > { %v6883_v38 = vpop.permute.xlu0 %2115  ;;  %v6885_v39 = vpop.permute.xlu1 %1613 }
 0x234   : > { %3053 = vrot.lane.b32.xlu1 %v6730_v56, %s6268_s13  ;;  %1631 = vrot.lane.b32.xlu0 %v6719_v50, %s6268_s13 }
 0x236   : > { %v6891_v2 = vpop.permute.xlu0 %3035  ;;  %v6893_v52 = vpop.permute.xlu1 %2117 }
 0x237   : > { %9373 = vst [vmem:[#allocation10_spill] sm:$0xff] %v6891_v2  ;;  %v6177_v2 = vld [vmem:[#allocation2 + $0x12] ss:$80 sps:$4 sm:$0xff]  }
 0x238   : > { %2135 = vrot.lane.b32.xlu0 %v6719_v50, %s6269_s14  ;;  %1633 = vrot.lane.b32.xlu1 %v1590_v51, %s6268_s13 }
 0x23a   : > { %v6898_v1 = vpop.permute.xlu0 %4435  ;;  %v6900_v42 = vpop.permute.xlu1 %3037 }
 0x23b   : > { %9374 = vst [vmem:[#allocation11_spill] sm:$0xff] %v6900_v42 }
 0x23c   : > { %4455 = vrot.lane.b32.xlu0 %v4413_v18, %s6268_s13  ;;  %2137 = vrot.lane.b32.xlu1 %v1590_v51, %s6269_s14 }
 0x23e   : > { %v6904_v56 = vpop.permute.xlu0 %4939  ;;  %v6906_v14 = vpop.permute.xlu1 %4437 }
 0x23f   : > { %9375 = vst [vmem:[#allocation12_spill] sm:$0xff] %v6906_v14  ;;  %v7095_v14 = vld [vmem:[#allocation2 + $0x89] sm:$0xff] }
 0x240   : > { %4959 = vrot.lane.b32.xlu0 %v4413_v18, %s6269_s14  ;;  %4457 = vrot.lane.b32.xlu1 %v4414_v25, %s6268_s13 }
 0x242   : > { %v6910_v50 = vpop.permute.xlu0 %3515  ;;  %v6912_v45 = vpop.permute.xlu1 %4941 }
 0x243   : > { %9376 = vst [vmem:[#allocation13_spill] sm:$0xff] %v6910_v50  ;;  %9377 = vst [vmem:[#allocation14_spill] sm:$0xff] %v6912_v45 }
 0x244   : > { %3535 = vrot.lane.b32.xlu0 %v3493_v26, %s6269_s14  ;;  %4961 = vrot.lane.b32.xlu1 %v4414_v25, %s6269_s14 }
 0x246   : > { %v6916_v44 = vpop.permute.xlu1 %3517  ;;  %v6918_v51 = vpop.permute.xlu0 %1615 }
 0x247   : > { %9378 = vst [vmem:[#allocation15_spill] sm:$0xff] %v6916_v44  ;;  %9379 = vst [vmem:[#allocation16_spill] sm:$0xff] %v6918_v51 }
 0x248   : > { %3055 = vrot.lane.b32.xlu0 %v3493_v26, %s6268_s13  ;;  %3537 = vrot.lane.b32.xlu1 %v3494_v46, %s6269_s14 }
 0x24a   : > { %v6922_v18 = vpop.permute.xlu0 %2119  ;;  %v6924_v40 = vpop.permute.xlu1 %1617 }
 0x24b   : > { %9380 = vst [vmem:[#allocation17_spill] sm:$0xff] %v6922_v18  ;;  %9381 = vst [vmem:[#allocation18_spill] sm:$0xff] %v6924_v40 }
 0x24c   : > { %3057 = vrot.lane.b32.xlu1 %v3494_v46, %s6268_s13  ;;  %1635 = vrot.lane.b32.xlu0 %v6624_v63, %s6268_s13 }
 0x24e   : > { %v6929_v58 = vpop.permute.xlu0 %3039  ;;  %v6931_v25 = vpop.permute.xlu1 %2121 }
 0x24f   : > { %9382 = vst [vmem:[#allocation19_spill] sm:$0xff] %v6929_v58  ;;  %9383 = vst [vmem:[#allocation20_spill] sm:$0xff] %v6931_v25 }
 0x250   : > { %2139 = vrot.lane.b32.xlu0 %v6624_v63, %s6269_s14  ;;  %1637 = vrot.lane.b32.xlu1 %v6649_v15, %s6268_s13 }
 0x252   : > { %v6937_v26 = vpop.permute.xlu0 %4439  ;;  %v6939_v47 = vpop.permute.xlu1 %3041 }
 0x253   : > { %9384 = vst [vmem:[#allocation21_spill] sm:$0xff] %v6937_v26  ;;  %9385 = vst [vmem:[#allocation22_spill] sm:$0xff] %v6939_v47 }
 0x254   : > { %4459 = vrot.lane.b32.xlu0 %v6696_v35, %s6268_s13  ;;  %2141 = vrot.lane.b32.xlu1 %v6649_v15, %s6269_s14 }
 0x256   : > { %v6945_v46 = vpop.permute.xlu0 %4943  ;;  %v6947_v43 = vpop.permute.xlu1 %4441 }
 0x257   : > { %9386 = vst [vmem:[#allocation23_spill] sm:$0xff] %v6945_v46  ;;  %9387 = vst [vmem:[#allocation24_spill] sm:$0xff] %v6947_v43  ;;  %v9400_v46 = vcombine.high %v6674_v27, %v6678_v30 }
 0x258   : > { %4963 = vrot.lane.b32.xlu0 %v6696_v35, %s6269_s14  ;;  %4461 = vrot.lane.b32.xlu1 %v6784_v53, %s6268_s13  ;;  %v6966_v35 = vsub.s32 %v1212_v0, %v6612_v55 }
 0x25a   : > { %v6953_v63 = vpop.permute.xlu0 %3519  ;;  %v6955_v22 = vpop.permute.xlu1 %4945 }
 0x25b   : > { %9388 = vst [vmem:[#allocation25_spill] sm:$0xff] %v6953_v63  ;;  %9389 = vst [vmem:[#allocation26_spill] sm:$0xff] %v6955_v22 }
 0x25c   : > { %3539 = vrot.lane.b32.xlu0 %v6651_v16, %s6269_s14  ;;  %4965 = vrot.lane.b32.xlu1 %v6784_v53, %s6269_s14  ;;  %v1223_v53 = vrot.slane %v1209_v20, %v6966_v35  ;;  %v9394_v20 = vcombine.low %v6642_v9, %v6645_v12 }
 0x25e   : > { %v6961_v15 = vpop.permute.xlu1 %3521  ;;  %v6963_v37 = vpop.permute.xlu0 %1619  ;;  %v6996_v43 = vrot.slane %v9394_v20, %v6966_v35 }
 0x25f   : > { %9390 = vst [vmem:[#allocation27_spill] sm:$0xff] %v6961_v15  ;;  %v9393_v15 = vmov 0.0  }
 0x260   : > { %3059 = vrot.lane.b32.xlu0 %v6651_v16, %s6268_s13  ;;  %3541 = vrot.lane.b32.xlu1 %v6758_v17, %s6269_s14  ;;  %v9392_v16 = vcombine.high %v6642_v9, %v6645_v12  ;;  %v1241_v22 = vcombine.high %v1223_v53, %v9393_v15 }
 0x262   : > { %v6972_v24 = vpop.permute.xlu0 %2123  ;;  %v6974_v21 = vpop.permute.xlu1 %1621  ;;  %v1239_v47 = vrot.slane %v9392_v16, %v6966_v35  ;;  %v1242_v16 = vcombine.high %v6996_v43, %v9393_v15 }
 0x264   : > { %1453 = vrot.lane.b32.xlu0 %v1223_v53, %s6272_s15  ;;  %3061 = vrot.lane.b32.xlu1 %v6758_v17, %s6268_s13  ;;  %v1243_v53 = vcombine.high %v1239_v47, %v9393_v15 }
 0x266   : > { %v6983_v0 = vpop.permute.xlu0 %3043  ;;  %v6985_v55 = vpop.permute.xlu1 %2125 }
 0x267   : > { %9391 = vst [vmem:[#allocation28_spill] sm:$0xff] %v6983_v0 }
 0x268   : > { %1465 = vrot.lane.b32.xlu0 %v1239_v47, %s6272_s15  ;;  %1457 = vrot.lane.b32.xlu1 %v1241_v22, %s6273_s16  ;;  %v9397_v22 = vcombine.low %v6636_v6, %v6639_v8  ;;  %v1291_v47 = vrot.slane %v9400_v46, %v6966_v35 }
 0x26a   : > { %v7000_v17 = vpop.permute.xlu0 %4443  ;;  %v7002_v58 = vpop.permute.xlu1 %3045  ;;  %v7018_v20 = vrot.slane %v9397_v22, %v6966_v35  ;;  %v7043_v22 = vld [vmem:[#allocation2 + $0x90] sm:$0xff] }
 0x26b   : > { %9395 = vst [vmem:[#allocation29_spill] sm:$0xff] %v7002_v58  ;;  %v9409_v58 = vcombine.high %v6708_v41, %v6717_v48 }
 0x26c   : > { %1461 = vrot.lane.b32.xlu1 %v1242_v16, %s6274_s17  ;;  %1639 = vrot.lane.b32.xlu0 %v6732_v57, %s6268_s13  ;;  %v1240_v26 = vcombine.high %v7018_v20, %v9393_v15 }
 0x26d   : > { %v2626_v44 = vrot.slane %v9409_v58, %v6966_v35  ;;  %v9413_v58 = vcombine.low %v6684_v31, %v6687_v32 }
 0x26e   : > { %v7009_v9 = vpop.permute.xlu0 %4947  ;;  %v7011_v12 = vpop.permute.xlu1 %4445 }
 0x26f   : > { %9396 = vst [vmem:[#allocation30_spill] sm:$0xff] %v7011_v12  ;;  %v7084_v45 = vrot.slane %v9413_v58, %v6966_v35  ;;  %v9418_v58 = vcombine.low %v6699_v36, %v6690_v34 }
 0x270   : > { %1469 = vrot.lane.b32.xlu1 %v1243_v53, %s6273_s16  ;;  %2143 = vrot.lane.b32.xlu0 %v6732_v57, %s6269_s14  ;;  %v9403_v57 = vcombine.high %v6684_v31, %v6687_v32 }
 0x272   : > { %v7023_v16 = vpop.permute.xlu0 %3523  ;;  %v7025_v63 = vpop.permute.xlu1 %4949  ;;  %v1307_v53 = vrot.slane %v9403_v57, %v6966_v35 }
 0x273   : > { %9398 = vst [vmem:[#allocation31_spill] sm:$0xff] %v7023_v16  ;;  %9399 = vst [vmem:[#allocation32_spill] sm:$0xff] %v7025_v63 }
 0x274   : > { %1477 = vrot.lane.b32.xlu1 %v1291_v47, %s6272_s15  ;;  %1449 = vrot.lane.b32.xlu0 %v1240_v26, %s6274_s17  ;;  %v9406_v26 = vcombine.high %v6699_v36, %v6690_v34  ;;  %v1311_v31 = vcombine.high %v1307_v53, %v9393_v15  ;;  %v9421_v34 = vcombine.low %v6674_v27, %v6678_v30 }
 0x275   : > { %v1309_v27 = vcombine.high %v1291_v47, %v9393_v15 }
 0x276   : > { %v7035_v6 = vpop.permute.xlu1 %3525  ;;  %v7037_v8 = vpop.permute.xlu0 %1623  ;;  %v2642_v40 = vrot.slane %v9406_v26, %v6966_v35  ;;  %v7128_v36 = vrot.slane %v9421_v34, %v6966_v35 }
 0x277   : > { %9401 = vst [vmem:[#allocation33_spill] sm:$0xff] %v7035_v6  ;;  %9402 = vst [vmem:[#allocation34_spill] sm:$0xff] %v7037_v8 }
 0x278   : > { %1489 = vrot.lane.b32.xlu0 %v1307_v53, %s6272_s15  ;;  %1641 = vrot.lane.b32.xlu1 %v7043_v22, %s6268_s13  ;;  %v9420_v53 = vcombine.high %v6751_v3, %v6754_v5 }
 0x27a   : > { %v7048_v46 = vpop.permute.xlu0 %2127  ;;  %v7050_v25 = vpop.permute.xlu1 %1625 }
 0x27b   : > { %9404 = vst [vmem:[#allocation35_spill] sm:$0xff] %v7048_v46  ;;  %9405 = vst [vmem:[#allocation36_spill] sm:$0xff] %v7050_v25  ;;  %v7067_v25 = vld [vmem:[#allocation2 + $0x8a] sm:$0xff] }
 0x27c   : > { %2868 = vrot.lane.b32.xlu0 %v2642_v40, %s6272_s15  ;;  %2145 = vrot.lane.b32.xlu1 %v7043_v22, %s6269_s14 }
 0x27e   : > { %v7059_v57 = vpop.permute.xlu0 %3047  ;;  %v7061_v42 = vpop.permute.xlu1 %2129 }
 0x27f   : > { %9407 = vst [vmem:[#allocation37_spill] sm:$0xff] %v7059_v57  ;;  %9408 = vst [vmem:[#allocation38_spill] sm:$0xff] %v7061_v42  ;;  %v9412_v57 = vcombine.high %v6740_v60, %v6743_v61 }
 0x280   : > { %4463 = vrot.lane.b32.xlu0 %v7067_v25, %s6268_s13  ;;  %2856 = vrot.lane.b32.xlu1 %v2626_v44, %s6272_s15 }
 0x281   : > { %v4066_v42 = vrot.slane %v9412_v57, %v6966_v35 }
 0x282   : > { %v7072_v26 = vpop.permute.xlu0 %4447  ;;  %v7074_v6 = vpop.permute.xlu1 %3049 }
 0x283   : > { %9410 = vst [vmem:[#allocation39_spill] sm:$0xff] %v7072_v26  ;;  %9411 = vst [vmem:[#allocation40_spill] sm:$0xff] %v7074_v6  ;;  %v1310_v6 = vcombine.high %v7084_v45, %v9393_v15 }
 0x284   : > { %4967 = vrot.lane.b32.xlu0 %v7067_v25, %s6269_s14  ;;  %4292 = vrot.lane.b32.xlu1 %v4066_v42, %s6272_s15 }
 0x286   : > { %v7089_v63 = vpop.permute.xlu0 %4951  ;;  %v7091_v26 = vpop.permute.xlu1 %4449 }
 0x287   : > { %9414 = vst [vmem:[#allocation41_spill] sm:$0xff] %v7089_v63  ;;  %9415 = vst [vmem:[#allocation42_spill] sm:$0xff] %v7091_v26  ;;  %v7109_v26 = vrot.slane %v9418_v58, %v6966_v35 }
 0x288   : > { %3543 = vrot.lane.b32.xlu0 %v7095_v14, %s6269_s14  ;;  %1485 = vrot.lane.b32.xlu1 %v1310_v6, %s6274_s17 }
 0x28a   : > { %v7101_v32 = vpop.permute.xlu0 %3527  ;;  %v7103_v57 = vpop.permute.xlu1 %4953 }
 0x28b   : > { %9416 = vst [vmem:[#allocation43_spill] sm:$0xff] %v7101_v32  ;;  %9417 = vst [vmem:[#allocation44_spill] sm:$0xff] %v7103_v57  ;;  %v4050_v57 = vrot.slane %v9420_v53, %v6966_v35  ;;  %v2645_v32 = vcombine.high %v7109_v26, %v9393_v15  ;;  %v1308_v53 = vcombine.high %v7128_v36, %v9393_v15 }
 0x28c   : > { %3063 = vrot.lane.b32.xlu0 %v7095_v14, %s6268_s13  ;;  %1493 = vrot.lane.b32.xlu1 %v1311_v31, %s6273_s16  ;;  %v2646_v31 = vcombine.high %v2642_v40, %v9393_v15  ;;  %v9422_v40 = vcombine.low %v6708_v41, %v6717_v48  ;;  %v2644_v41 = vcombine.high %v2626_v44, %v9393_v15 }
 0x28e   : > { %v7114_v63 = vpop.permute.xlu1 %3529  ;;  %v7116_v6 = vpop.permute.xlu0 %1627  ;;  %v7151_v12 = vrot.slane %v9422_v40, %v6966_v35 }
 0x28f   : > { %9419 = vst [vmem:[#allocation45_spill] sm:$0xff] %v7114_v63 }
 0x290   : > { %4280 = vrot.lane.b32.xlu0 %v4050_v57, %s6272_s15  ;;  %2864 = vrot.lane.b32.xlu1 %v2645_v32, %s6274_s17  ;;  %v4070_v32 = vcombine.high %v4066_v42, %v9393_v15  ;;  %v2643_v47 = vcombine.high %v7151_v12, %v9393_v15  ;;  %v9424_v42 = vcombine.high %v6775_v28, %v6778_v29 }
 0x292   : > { %v7133_v58 = vpop.permute.xlu0 %2131  ;;  %v7135_v63 = vpop.permute.xlu1 %1629  ;;  %v1359_v18 = vrot.slane %v9424_v42, %v6966_v35  ;;  %v9428_v42 = vcombine.low %v6740_v60, %v6743_v61  ;;  %v7199_v60 = vld [vmem:[#allocation2 + $0x92] sm:$0xff] }
 0x294   : > { %1473 = vrot.lane.b32.xlu0 %v1308_v53, %s6274_s17  ;;  %2872 = vrot.lane.b32.xlu1 %v2646_v31, %s6273_s16 }
 0x296   : > { %v7142_v30 = vpop.permute.xlu0 %4451  ;;  %v7144_v34 = vpop.permute.xlu1 %2133 }
 0x298   : > { %1481 = vrot.lane.b32.xlu0 %v1309_v27, %s6273_s16  ;;  %4296 = vrot.lane.b32.xlu1 %v4070_v32, %s6273_s16  ;;  %v9427_v32 = vcombine.high %v6797_v4, %v6800_v10 }
 0x29a   : > { %v7155_v53 = vpop.permute.xlu0 %4955  ;;  %v7157_v31 = vpop.permute.xlu1 %4453  ;;  %v7176_v40 = vrot.slane %v9427_v32, %v6966_v35  ;;  %v9431_v32 = vcombine.low %v6751_v3, %v6754_v5 }
 0x29b   : > { %9423 = vst [vmem:[#allocation46_spill] sm:$0xff] %v7157_v31  ;;  %v7182_v31 = vrot.slane %v9428_v42, %v6966_v35 }
 0x29c   : > { %2852 = vrot.lane.b32.xlu0 %v2643_v47, %s6274_s17  ;;  %1501 = vrot.lane.b32.xlu1 %v1359_v18, %s6272_s15  ;;  %v7197_v46 = vrot.slane %v9431_v32, %v6966_v35  ;;  %v7218_v32 = vld [vmem:[#allocation2 + $0x91] sm:$0xff] }
 0x29e   : > { %v7168_v48 = vpop.permute.xlu0 %3531  ;;  %v7170_v27 = vpop.permute.xlu1 %4957  ;;  %v4067_v42 = vcombine.high %v7197_v46, %v9393_v15 }
 0x29f   : > { %9425 = vst [vmem:[#allocation47_spill] sm:$0xff] %v7168_v48  ;;  %9426 = vst [vmem:[#allocation48_spill] sm:$0xff] %v7170_v27  ;;  %v4069_v27 = vcombine.high %v7182_v31, %v9393_v15 }
 0x2a0   : > { %2860 = vrot.lane.b32.xlu0 %v2644_v41, %s6273_s16  ;;  %2880 = vrot.lane.b32.xlu1 %v7176_v40, %s6272_s15 }
 0x2a2   : > { %v7187_v44 = vpop.permute.xlu0 %3051  ;;  %v7189_v47 = vpop.permute.xlu1 %3533 }
 0x2a3   : > { %9429 = vst [vmem:[#allocation49_spill] sm:$0xff] %v7187_v44  ;;  %9430 = vst [vmem:[#allocation50_spill] sm:$0xff] %v7189_v47 }
 0x2a4   : > { %4288 = vrot.lane.b32.xlu0 %v4069_v27, %s6274_s17  ;;  %4465 = vrot.lane.b32.xlu1 %v7199_v60, %s6268_s13  ;;  %v4068_v27 = vcombine.high %v4050_v57, %v9393_v15 }
 0x2a6   : > { %v7204_v61 = vpop.permute.xlu1 %3053  ;;  %v7206_v41 = vpop.permute.xlu0 %1631 }
 0x2a7   : > { %9432 = vst [vmem:[#allocation51_spill] sm:$0xff] %v7204_v61  ;;  %9433 = vst [vmem:[#allocation52_spill] sm:$0xff] %v7206_v41 }
 0x2a8   : > { %4276 = vrot.lane.b32.xlu0 %v4067_v42, %s6274_s17  ;;  %4969 = vrot.lane.b32.xlu1 %v7199_v60, %s6269_s14  ;;  %v9438_v42 = vcombine.high %v6803_v49, %v6806_v62 }
 0x2aa   : > { %v7213_v3 = vpop.permute.xlu0 %2135  ;;  %v7215_v5 = vpop.permute.xlu1 %1633 }
 0x2ab   : > { %9434 = vst [vmem:[#allocation53_spill] sm:$0xff] %v7213_v3  ;;  %9435 = vst [vmem:[#allocation54_spill] sm:$0xff] %v7215_v5  ;;  %v1375_v3 = vrot.slane %v9438_v42, %v6966_v35  ;;  %v9443_v42 = vcombine.low %v6803_v49, %v6806_v62  ;;  %v9448_v49 = vcombine.low %v6775_v28, %v6778_v29 }
 0x2ac   : > { %4284 = vrot.lane.b32.xlu0 %v4068_v27, %s6273_s16  ;;  %3545 = vrot.lane.b32.xlu1 %v7218_v32, %s6269_s14  ;;  %v9452_v28 = vcombine.low %v6809_v23, %v6812_v54 }
 0x2ad   : > { %v7250_v41 = vrot.slane %v9443_v42, %v6966_v35  ;;  %v7270_v62 = vrot.slane %v9448_v49, %v6966_v35 }
 0x2ae   : > { %v7223_v61 = vpop.permute.xlu0 %4455  ;;  %v7225_v47 = vpop.permute.xlu1 %2137  ;;  %v7286_v29 = vrot.slane %v9452_v28, %v6966_v35 }
 0x2af   : > { %9436 = vst [vmem:[#allocation55_spill] sm:$0xff] %v7223_v61  ;;  %9437 = vst [vmem:[#allocation56_spill] sm:$0xff] %v7225_v47  ;;  %v9441_v61 = vcombine.high %v6809_v23, %v6812_v54  ;;  %v9442_v47 = vcombine.high %v6827_v13, %v6830_v11  ;;  %v1167_v54 = vld [vmem:[#allocation2 + $0x40] sm:$0xff] }
 0x2b0   : > { %1513 = vrot.lane.b32.xlu0 %v1375_v3, %s6272_s15  ;;  %3065 = vrot.lane.b32.xlu1 %v7218_v32, %s6268_s13  ;;  %9444 = vst [vmem:[#allocation59_spill] sm:$0xff] %v7250_v41  ;;  %9449 = vst [vmem:[#allocation62_spill] sm:$0xff] %v7270_v62  ;;  %v1397_v28 = vcombine.high %v1167_v54, %v7043_v22 }
 0x2b1   : > { %v2710_v5 = vrot.slane %v9441_v61, %v6966_v35  ;;  %v4134_v51 = vrot.slane %v9442_v47, %v6966_v35  ;;  %v9447_v61 = vcombine.high %v6835_v7, %v6838_v19  ;;  %v1378_v47 = vcombine.high %v7250_v41, %v9393_v15  ;;  %9453 = vst [vmem:[#allocation65_spill] sm:$0xff] %v7286_v29 }
 0x2b2   : > { %v7234_v57 = vpop.permute.xlu0 %4959  ;;  %v7236_v27 = vpop.permute.xlu1 %4457 }
 0x2b3   : > { %9439 = vst [vmem:[#allocation57_spill] sm:$0xff] %v7234_v57  ;;  %9440 = vst [vmem:[#allocation58_spill] sm:$0xff] %v7236_v27  ;;  %v7262_v8 = vrot.slane %v9447_v61, %v6966_v35  ;;  %v1376_v61 = vcombine.high %v7270_v62, %v9393_v15  ;;  %v6172_v62 = vld [vmem:[#allocation2 + $0x15] ss:$80 sps:$4 sm:$0xff]  }
 0x2b4   : > { %2892 = vrot.lane.b32.xlu0 %v2710_v5, %s6272_s15  ;;  %4316 = vrot.lane.b32.xlu1 %v4134_v51, %s6272_s15 }
 0x2b6   : > { %v7254_v27 = vpop.permute.xlu0 %3535  ;;  %v7256_v57 = vpop.permute.xlu1 %4961 }
 0x2b7   : > { %9445 = vst [vmem:[#allocation60_spill] sm:$0xff] %v7254_v27  ;;  %9446 = vst [vmem:[#allocation61_spill] sm:$0xff] %v7256_v57  ;;  %v1379_v27 = vcombine.high %v1375_v3, %v9393_v15  ;;  %v9455_v3 = vcombine.low %v6797_v4, %v6800_v10  ;;  %v9457_v4 = vcombine.low %v6827_v13, %v6830_v11 }
 0x2b8   : > { %4304 = vrot.lane.b32.xlu0 %v7262_v8, %s6272_s15  ;;  %1509 = vrot.lane.b32.xlu1 %v1378_v47, %s6274_s17  ;;  %v7334_v13 = vrot.slane %v1397_v28, %v6618_v59 }
 0x2b9   : > { %v7301_v23 = vrot.slane %v9455_v3, %v6966_v35  ;;  %v7317_v10 = vrot.slane %v9457_v4, %v6966_v35  ;;  %v1396_v4 = vcombine.low %v1167_v54, %v7043_v22  ;;  %v4138_v54 = vcombine.high %v4134_v51, %v9393_v15 }
 0x2ba   : > { %v7275_v42 = vpop.permute.xlu0 %3055  ;;  %v7277_v57 = vpop.permute.xlu1 %3537 }
 0x2bb   : > { %9450 = vst [vmem:[#allocation63_spill] sm:$0xff] %v7275_v42  ;;  %9451 = vst [vmem:[#allocation64_spill] sm:$0xff] %v7277_v57  ;;  %v1377_v57 = vcombine.high %v1359_v18, %v9393_v15  ;;  %v2713_v42 = vcombine.high %v7286_v29, %v9393_v15  ;;  %v2711_v18 = vcombine.high %v7301_v23, %v9393_v15 }
 0x2bc   : > { %1497 = vrot.lane.b32.xlu0 %v1376_v61, %s6274_s17  ;;  %1517 = vrot.lane.b32.xlu1 %v1379_v27, %s6273_s16  ;;  %9456 = vst [vmem:[#allocation67_spill] sm:$0xff] %v7301_v23  ;;  %9458 = vst [vmem:[#allocation68_spill] sm:$0xff] %v7317_v10  ;;  %v2712_v23 = vcombine.high %v7176_v40, %v9393_v15 }
 0x2be   : > { %v7290_v47 = vpop.permute.xlu1 %3057  ;;  %v7292_v49 = vpop.permute.xlu0 %1635 }
 0x2bf   : > { %9454 = vst [vmem:[#allocation66_spill] sm:$0xff] %v7290_v47  ;;  %v2714_v47 = vcombine.high %v2710_v5, %v9393_v15  ;;  %v9459_v5 = vcombine.low %v6835_v7, %v6838_v19  ;;  %v6175_v7 = vld [vmem:[#allocation2 + $0x18] ss:$80 sps:$4 sm:$0xff]  }
 0x2c0   : > { %1505 = vrot.lane.b32.xlu0 %v1377_v57, %s6273_s16  ;;  %2888 = vrot.lane.b32.xlu1 %v2713_v42, %s6274_s17  ;;  %v6169_v57 = vld [vmem:[#allocation2 + $0x1c] ss:$80 sps:$4 sm:$0xff]  }
 0x2c1   : > { %v2569_v42 = vld [vmem:[#allocation2 + $0x39] sm:$0xff]  ;;  %v7331_v11 = vrot.slane %v9459_v5, %v6966_v35  ;;  %v1395_v40 = vrot.slane %v6169_v57, %v6618_v59  ;;  %v1404_v57 = vrot.slane %v1396_v4, %v6618_v59 }
 0x2c2   : > { %v7305_v27 = vpop.permute.xlu0 %2139  ;;  %v7307_v61 = vpop.permute.xlu1 %1637  ;;  %v3993_v19 = vld [vmem:[#allocation2 + $0x3a] sm:$0xff] }
 0x2c3   : > { %9460 = vst [vmem:[#allocation69_spill] sm:$0xff] %v7331_v11  ;;  %v4135_v41 = vcombine.high %v7331_v11, %v9393_v15  ;;  %v1388_v11 = vrot.slane %v6175_v7, %v6618_v59  ;;  %v4156_v7 = vcombine.high %v3993_v19, %v7067_v25 }
 0x2c4   : > { %2876 = vrot.lane.b32.xlu0 %v2711_v18, %s6274_s17  ;;  %2896 = vrot.lane.b32.xlu1 %v2714_v47, %s6273_s16  ;;  %v2732_v18 = vcombine.high %v2569_v42, %v7095_v14  ;;  %v4137_v47 = vcombine.high %v7317_v10, %v9393_v15  ;;  %v1429_v10 = vcombine.high %v1395_v40, %v7334_v13 }
 0x2c5   : > { %v4170_v48 = vrot.slane %v4156_v7, %v6618_v59  ;;  %v1428_v7 = vcombine.low %v1395_v40, %v7334_v13 }
 0x2c6   : > { %v7321_v3 = vpop.permute.xlu0 %4459  ;;  %v7323_v29 = vpop.permute.xlu1 %2141  ;;  %v7351_v22 = vrot.slane %v2732_v18, %v6618_v59  ;;  %v6180_v18 = vld [vmem:[#allocation2 + $0x11] ss:$80 sps:$4 sm:$0xff]   ;;  %v1443_v51 = vrot.slane %v1429_v10, %v6966_v35 }
 0x2c7   : > { %v2723_v10 = vrot.slane %v6180_v18, %v6618_v59 }
 0x2c8   : > { %2884 = vrot.lane.b32.xlu0 %v2712_v23, %s6273_s16  ;;  %4312 = vrot.lane.b32.xlu1 %v4137_v47, %s6274_s17  ;;  %v4155_v23 = vcombine.low %v3993_v19, %v7067_v25  ;;  %v2731_v47 = vcombine.low %v2569_v42, %v7095_v14  ;;  %v1413_v42 = vcombine.high %v1388_v11, %v1404_v57 }
 0x2c9   : > { %v1412_v19 = vcombine.low %v1388_v11, %v1404_v57 }
 0x2ca   : > { %v7343_v5 = vpop.permute.xlu0 %4963  ;;  %v7345_v28 = vpop.permute.xlu1 %4461  ;;  %v2739_v4 = vrot.slane %v2731_v47, %v6618_v59  ;;  %v1427_v47 = vrot.slane %v1413_v42, %v6966_v35 }
 0x2cb   : > { %9461 = vst [vmem:[#allocation70_spill] sm:$0xff] %v7345_v28  ;;  %v7359_v28 = vrot.slane %v6172_v62, %v6618_v59  ;;  %v4136_v62 = vcombine.high %v7262_v8, %v9393_v15  ;;  %v7404_v11 = vrot.slane %v1412_v19, %v6966_v35  ;;  %v7417_v19 = vrot.slane %v1428_v7, %v6966_v35 }
 0x2cc   : > { %4300 = vrot.lane.b32.xlu0 %v4135_v41, %s6274_s17  ;;  %4320 = vrot.lane.b32.xlu1 %v4138_v54, %s6273_s16  ;;  %v7371_v41 = vrot.slane %v4155_v23, %v6618_v59  ;;  %v7379_v54 = vrot.slane %v6177_v2, %v6618_v59  ;;  %v2748_v2 = vcombine.high %v2723_v10, %v2739_v4 }
 0x2cd   : > { %v2764_v14 = vcombine.high %v7359_v28, %v7351_v22  ;;  %9467 = vst [vmem:[#allocation76_spill] sm:$0xff] %v7417_v19 }
 0x2ce   : > { %v7363_v44 = vpop.permute.xlu0 %3539  ;;  %v7365_v0 = vpop.permute.xlu1 %4965  ;;  %v4172_v25 = vcombine.high %v7379_v54, %v7371_v41  ;;  %v2762_v57 = vrot.slane %v2748_v2, %v6966_v35  ;;  %v1445_v2 = vcombine.high %v1427_v47, %v9393_v15 }
 0x2cf   : > { %9462 = vst [vmem:[#allocation71_spill] sm:$0xff] %v7365_v0  ;;  %v6182_v0 = vld [vmem:[#allocation2 + $0x16] ss:$80 sps:$4 sm:$0xff]   ;;  %v7388_v8 = vrot.slane %v2764_v14, %v6966_v35 }
 0x2d0   : > { %1537 = vrot.lane.b32.xlu0 %v1443_v51, %s6272_s15  ;;  %4308 = vrot.lane.b32.xlu1 %v4136_v62, %s6273_s16  ;;  %v4154_v18 = vrot.slane %v6182_v0, %v6618_v59  ;;  %v7401_v14 = vrot.slane %v4172_v25, %v6966_v35  ;;  %v2747_v25 = vcombine.low %v2723_v10, %v2739_v4 }
 0x2d1   : > { %v1446_v4 = vcombine.high %v7417_v19, %v9393_v15  ;;  %v2763_v10 = vcombine.low %v7359_v28, %v7351_v22  ;;  %v1447_v28 = vcombine.high %v1443_v51, %v9393_v15 }
 0x2d2   : > { %v7383_v23 = vpop.permute.xlu0 %3059  ;;  %v7385_v50 = vpop.permute.xlu1 %3541  ;;  %9466 = vst [vmem:[#allocation75_spill] sm:$0xff] %v7401_v14  ;;  %v4188_v42 = vcombine.high %v4154_v18, %v4170_v48 }
 0x2d3   : > { %9463 = vst [vmem:[#allocation72_spill] sm:$0xff] %v7383_v23  ;;  %9464 = vst [vmem:[#allocation73_spill] sm:$0xff] %v7385_v50  ;;  %v7443_v22 = vrot.slane %v2763_v10, %v6966_v35 }
 0x2d4   : > { %2916 = vrot.lane.b32.xlu0 %v7388_v8, %s6272_s15  ;;  %1525 = vrot.lane.b32.xlu1 %v1427_v47, %s6272_s15  ;;  %v7414_v16 = vrot.slane %v4188_v42, %v6966_v35 }
 0x2d5   : > { %v2781_v10 = vcombine.high %v7443_v22, %v9393_v15 }
 0x2d6   : > { %v1454_v62 = vpop.permute.xlu0 %1453  ;;  %v7398_v50 = vpop.permute.xlu1 %3061 }
 0x2d7   : > { %9465 = vst [vmem:[#allocation74_spill] sm:$0xff] %v7398_v50  ;;  %v1444_v50 = vcombine.high %v7404_v11, %v9393_v15 }
 0x2d8   : > { %4328 = vrot.lane.b32.xlu0 %v7401_v14, %s6272_s15  ;;  %2904 = vrot.lane.b32.xlu1 %v2762_v57, %s6272_s15  ;;  %v7426_v14 = vrot.slane %v2747_v25, %v6966_v35  ;;  %v4187_v25 = vcombine.low %v4154_v18, %v4170_v48  ;;  %v2780_v18 = vcombine.high %v2762_v57, %v9393_v15 }
 0x2da   : > { %v1466_v0 = vpop.permute.xlu0 %1465  ;;  %v1458_v23 = vpop.permute.xlu1 %1457  ;;  %v2779_v7 = vcombine.high %v7426_v14, %v9393_v15  ;;  %v7454_v51 = vrot.slane %v4187_v25, %v6966_v35 }
 0x2dc   : > { %1521 = vrot.lane.b32.xlu0 %v1444_v50, %s6274_s17  ;;  %4340 = vrot.lane.b32.xlu1 %v7414_v16, %s6272_s15  ;;  %9468 = vst [vmem:[#allocation77_spill] sm:$0xff] %v7454_v51 }
 0x2de   : > { %v1462_v13 = vpop.permute.xlu1 %1461  ;;  %v7422_v40 = vpop.permute.xlu0 %1639 }
 0x2df   : > { %v1550_v50 = vsel %vm1544_vm4, %v6996_v43, %v1462_v13  ;;  %v2570_v43 = vld [vmem:[#allocation2 + $0x41] sm:$0xff] }
 0x2e0   : > { %1529 = vrot.lane.b32.xlu0 %v1445_v2, %s6273_s16  ;;  %1533 = vrot.lane.b32.xlu1 %v1446_v4, %s6274_s17  ;;  %v1551_v19 = vsel %vm1546_vm5, %v1550_v50, %v1466_v0  ;;  %v4171_v2 = vcombine.low %v7379_v54, %v7371_v41  ;;  %v2800_v0 = vcombine.high %v2570_v43, %v7218_v32  ;;  %v6184_v41 = vld [vmem:[#allocation2 + $0x1d] ss:$80 sps:$4 sm:$0xff]  }
 0x2e1   : > { %v2799_v50 = vcombine.low %v2570_v43, %v7218_v32  ;;  %v4205_v32 = vcombine.high %v7454_v51, %v9393_v15 }
 0x2e2   : > { %v1470_v42 = vpop.permute.xlu1 %1469  ;;  %v7436_v47 = vpop.permute.xlu0 %2143  ;;  %v7466_v57 = vrot.slane %v4171_v2, %v6966_v35  ;;  %v2814_v43 = vrot.slane %v2800_v0, %v6618_v59  ;;  %v6192_v0 = vld [vmem:[#allocation2 + $0x1e] ss:$80 sps:$4 sm:$0xff]  }
 0x2e3   : > { %v1552_v13 = vsel %vm1548_vm6, %v1551_v19, %v1470_v42  ;;  %v3994_v42 = vld [vmem:[#allocation2 + $0x42] sm:$0xff]  ;;  %v2807_v2 = vrot.slane %v2799_v50, %v6618_v59 }
 0x2e4   : > { %2900 = vrot.lane.b32.xlu0 %v2779_v7, %s6274_s17  ;;  %1572 = vst [vmem:[#allocation3 + $0xd0] sm:$0xf] %v1552_v13  ;;  %1541 = vrot.lane.b32.xlu1 %v1447_v28, %s6273_s16  ;;  %9469 = vst [vmem:[#allocation78_spill] sm:$0xff] %v7466_v57  ;;  %v6187_v7 = vld [vmem:[#allocation2 + $0x19] ss:$80 sps:$4 sm:$0xff]   ;;  %v4223_v13 = vcombine.low %v3994_v42, %v7199_v60 }
 0x2e6   : > { %v7450_v4 = vpop.permute.xlu1 %1477  ;;  %v1450_v48 = vpop.permute.xlu0 %1449 }
 0x2e7   : > { %v1545_v19 = vsel %vm1544_vm4, %v7018_v20, %v1450_v48  ;;  %v4224_v48 = vcombine.high %v3994_v42, %v7199_v60  ;;  %v4231_v60 = vrot.slane %v4223_v13, %v6618_v59  ;;  %v4206_v42 = vcombine.high %v7414_v16, %v9393_v15 }
 0x2e8   : > { %2908 = vrot.lane.b32.xlu0 %v2780_v18, %s6273_s16  ;;  %v1547_v54 = vsel %vm1546_vm5, %v1545_v19, %v1454_v62  ;;  %2912 = vrot.lane.b32.xlu1 %v2781_v10, %s6274_s17  ;;  %v2782_v62 = vcombine.high %v7388_v8, %v9393_v15  ;;  %v6189_v18 = vld [vmem:[#allocation2 + $0x1a] ss:$80 sps:$4 sm:$0xff]   ;;  %v2791_v19 = vrot.slane %v6187_v7, %v6618_v59 }
 0x2e9   : > { %v1549_v25 = vsel %vm1548_vm6, %v1547_v54, %v1458_v23  ;;  %v2798_v23 = vrot.slane %v6184_v41, %v6618_v59  ;;  %v4203_v8 = vcombine.high %v7466_v57, %v9393_v15  ;;  %v4215_v7 = vrot.slane %v6189_v18, %v6618_v59 }
 0x2ea   : > { %v7469_v20 = vpop.permute.xlu0 %1489  ;;  %v7471_v28 = vpop.permute.xlu1 %1641  ;;  %1571 = vst [vmem:[#allocation3 + $0xb0] sm:$0xf] %v1549_v25  ;;  %v2816_v41 = vcombine.high %v2791_v19, %v2807_v2  ;;  %v4238_v25 = vrot.slane %v4224_v48, %v6618_v59 }
 0x2eb   : > { %9470 = vst [vmem:[#allocation79_spill] sm:$0xff] %v7471_v28  ;;  %v2832_v50 = vcombine.high %v2798_v23, %v2814_v43  ;;  %v2815_v28 = vcombine.low %v2791_v19, %v2807_v2  ;;  %v2831_v48 = vcombine.low %v2798_v23, %v2814_v43  ;;  %v1676_v43 = vcombine.high %v6963_v37, %v7292_v49 }
 0x2ec   : > { %4336 = vrot.lane.b32.xlu0 %v4205_v32, %s6274_s17  ;;  %2920 = vrot.lane.b32.xlu1 %v2782_v62, %s6273_s16  ;;  %v4222_v32 = vrot.slane %v6192_v0, %v6618_v59  ;;  %v2830_v16 = vrot.slane %v2816_v41, %v6966_v35 }
 0x2ed   : > { %v2846_v13 = vrot.slane %v2832_v50, %v6966_v35  ;;  %v7519_v19 = vrot.slane %v2831_v48, %v6966_v35  ;;  %v4239_v50 = vcombine.low %v4215_v7, %v4231_v60  ;;  %v1660_v48 = vcombine.high %v6877_v33, %v7116_v6 }
 0x2ee   : > { %v7485_v10 = vpop.permute.xlu0 %2868  ;;  %v7487_v54 = vpop.permute.xlu1 %2145  ;;  %v4256_v51 = vcombine.high %v4222_v32, %v4238_v25  ;;  %v4255_v41 = vcombine.low %v4222_v32, %v4238_v25  ;;  %v2180_v25 = vcombine.high %v6972_v24, %v7305_v27 }
 0x2ef   : > { %9471 = vst [vmem:[#allocation80_spill] sm:$0xff] %v7487_v54  ;;  %v4240_v54 = vcombine.high %v4215_v7, %v4231_v60  ;;  %v7542_v60 = vrot.slane %v1676_v43, %v6618_v59  ;;  %v2164_v43 = vcombine.high %v6883_v38, %v7133_v58 }
 0x2f0   : > { %4324 = vrot.lane.b32.xlu0 %v4203_v8, %s6274_s17  ;;  %4344 = vrot.lane.b32.xlu1 %v4206_v42, %s6273_s16  ;;  %v7515_v42 = vrot.slane %v2815_v28, %v6966_v35  ;;  %v4270_v2 = vrot.slane %v4256_v51, %v6966_v35  ;;  %v2849_v51 = vcombine.high %v7519_v19, %v9393_v15 }
 0x2f1   : > { %v7512_v0 = vrot.slane %v4240_v54, %v6966_v35 }
 0x2f2   : > { %v7499_v62 = vpop.permute.xlu0 %4463  ;;  %v7501_v57 = vpop.permute.xlu1 %2856  ;;  %v2847_v28 = vcombine.high %v7515_v42, %v9393_v15 }
 0x2f3   : > { %9472 = vst [vmem:[#allocation81_spill] sm:$0xff] %v7499_v62  ;;  %9474 = vst [vmem:[#allocation83_spill] sm:$0xff] %v7512_v0 }
 0x2f4   : > { %2940 = vrot.lane.b32.xlu0 %v2846_v13, %s6272_s15  ;;  %2928 = vrot.lane.b32.xlu1 %v2830_v16, %s6272_s15 }
 0x2f6   : > { %v7507_v18 = vpop.permute.xlu0 %4967  ;;  %v7509_v8 = vpop.permute.xlu1 %4292 }
 0x2f7   : > { %9473 = vst [vmem:[#allocation82_spill] sm:$0xff] %v7507_v18  ;;  %v1675_v18 = vcombine.low %v6963_v37, %v7292_v49  ;;  %v1659_v37 = vcombine.low %v6877_v33, %v7116_v6  ;;  %v1674_v49 = vrot.slane %v1660_v48, %v6618_v59 }
 0x2f8   : > { %4352 = vrot.lane.b32.xlu0 %v7512_v0, %s6272_s15  ;;  %4364 = vrot.lane.b32.xlu1 %v4270_v2, %s6272_s15 }
 0x2f9   : > { %v1667_v48 = vrot.slane %v1659_v37, %v6618_v59 }
 0x2fa   : > { %v7526_v23 = vpop.permute.xlu0 %3543  ;;  %v1486_v54 = vpop.permute.xlu1 %1485 }
 0x2fb   : > { %9475 = vst [vmem:[#allocation84_spill] sm:$0xff] %v7526_v23  ;;  %v1556_v0 = vsel %vm1544_vm4, %v7084_v45, %v1486_v54  ;;  %v2848_v23 = vcombine.high %v2830_v16, %v9393_v15  ;;  %v7549_v45 = vrot.slane %v4239_v50, %v6966_v35  ;;  %v2850_v16 = vcombine.high %v2846_v13, %v9393_v15 }
 0x2fc   : > { %2924 = vrot.lane.b32.xlu0 %v2847_v28, %s6274_s17  ;;  %2936 = vrot.lane.b32.xlu1 %v2849_v51, %s6274_s17  ;;  %v1557_v54 = vsel %vm1546_vm5, %v1556_v0, %v7469_v20  ;;  %v7555_v28 = vrot.slane %v4255_v41, %v6966_v35  ;;  %v1683_v20 = vrot.slane %v1675_v18, %v6618_v59 }
 0x2fd   : > { %9477 = vst [vmem:[#allocation86_spill] sm:$0xff] %v7549_v45  ;;  %v1708_v13 = vcombine.high %v1674_v49, %v7542_v60  ;;  %v7568_v0 = vrot.slane %v2180_v25, %v6618_v59  ;;  %v4271_v50 = vcombine.high %v7549_v45, %v9393_v15  ;;  %v2179_v41 = vcombine.low %v6972_v24, %v7305_v27  ;;  %v9489_v45 = vld [vmem:[#allocation10_spill] sm:$0xff] }
 0x2fe   : > { %v7546_v7 = vpop.permute.xlu0 %3063  ;;  %v1494_v32 = vpop.permute.xlu1 %1493  ;;  %v4273_v18 = vcombine.high %v7555_v28, %v9393_v15  ;;  %v7582_v25 = vrot.slane %v2164_v43, %v6618_v59  ;;  %v4274_v24 = vcombine.high %v4270_v2, %v9393_v15  ;;  %v1691_v27 = vcombine.low %v1667_v48, %v1683_v20 }
 0x2ff   : > { %9476 = vst [vmem:[#allocation85_spill] sm:$0xff] %v7546_v7  ;;  %v1558_v51 = vsel %vm1548_vm6, %v1557_v54, %v1494_v32  ;;  %v2163_v32 = vcombine.low %v6883_v38, %v7133_v58  ;;  %v1722_v43 = vrot.slane %v1708_v13, %v6966_v35 }
 0x300   : > { %2932 = vrot.lane.b32.xlu0 %v2848_v23, %s6273_s16  ;;  %1574 = vst [vmem:[#allocation3 + $0x48] sm:$0xf] %v1558_v51  ;;  %2944 = vrot.lane.b32.xlu1 %v2850_v16, %s6273_s16  ;;  %v1692_v51 = vcombine.high %v1667_v48, %v1683_v20 }
 0x302   : > { %v7570_v33 = vpop.permute.xlu0 %4280  ;;  %v2865_v6 = vpop.permute.xlu1 %2864 }
 0x303   : > { %v2950_v23 = vsel %vm1544_vm4, %v7109_v26, %v2865_v6  ;;  %v2212_v26 = vcombine.high %v7582_v25, %v7568_v0  ;;  %v2187_v6 = vrot.slane %v2179_v41, %v6618_v59 }
 0x304   : > { %4348 = vrot.lane.b32.xlu0 %v4271_v50, %s6274_s17  ;;  %4360 = vrot.lane.b32.xlu1 %v4273_v18, %s6274_s17  ;;  %v2951_v16 = vsel %vm1546_vm5, %v2950_v23, %v7485_v10  ;;  %v2171_v50 = vrot.slane %v2163_v32, %v6618_v59  ;;  %v1707_v23 = vcombine.low %v1674_v49, %v7542_v60 }
 0x305   : > { %v7604_v41 = vrot.slane %v2212_v26, %v6966_v35  ;;  %v1706_v32 = vrot.slane %v1692_v51, %v6966_v35 }
 0x306   : > { %v1474_v54 = vpop.permute.xlu0 %1473  ;;  %v2873_v37 = vpop.permute.xlu1 %2872  ;;  %v2196_v18 = vcombine.high %v2171_v50, %v2187_v6 }
 0x307   : > { %v1553_v38 = vsel %vm1544_vm4, %v7128_v36, %v1474_v54  ;;  %v2952_v58 = vsel %vm1548_vm6, %v2951_v16, %v2873_v37  ;;  %v7607_v36 = vrot.slane %v1691_v27, %v6966_v35  ;;  %v7623_v54 = vrot.slane %v1707_v23, %v6966_v35 }
 0x308   : > { %v2980_v2 = vrot.slane %v2952_v58, 4  ;;  %1948 = vrot.lane.b32.xlu0 %v1722_v43, %s6272_s15  ;;  %4368 = vrot.lane.b32.xlu1 %v4274_v24, %s6273_s16  ;;  %v1554_v10 = vsel %vm1546_vm5, %v1553_v38, %v7450_v4  ;;  %v2195_v4 = vcombine.low %v2171_v50, %v2187_v6  ;;  %v2210_v49 = vrot.slane %v2196_v18, %v6966_v35 }
 0x309   : > { %v1723_v27 = vcombine.high %v7607_v36, %v9393_v15  ;;  %v1744_v16 = vcombine.high %v6974_v21, %v7307_v61  ;;  %v2211_v58 = vcombine.low %v7582_v25, %v7568_v0  ;;  %v1725_v50 = vcombine.high %v7623_v54, %v9393_v15 }
 0x30a   : > { %2996 = vst [vmem:[#allocation3 + $0x108] sm:$0xf0] %v2980_v2  ;;  %v1482_v13 = vpop.permute.xlu0 %1481  ;;  %v4297_v20 = vpop.permute.xlu1 %4296  ;;  %v7635_v38 = vrot.slane %v2195_v4, %v6966_v35  ;;  %v2248_v23 = vcombine.high %v6985_v55, %v7323_v29  ;;  %v1726_v4 = vcombine.high %v1722_v43, %v9393_v15 }
 0x30b   : > { %v1555_v48 = vsel %vm1548_vm6, %v1554_v10, %v1482_v13  ;;  %v1728_v10 = vcombine.high %v6885_v39, %v7135_v63 }
 0x30c   : > { %1573 = vst [vmem:[#allocation3 + $0x10] sm:$0xf] %v1555_v48  ;;  %2452 = vrot.lane.b32.xlu0 %v7604_v41, %s6272_s15  ;;  %1936 = vrot.lane.b32.xlu1 %v1706_v32, %s6272_s15  ;;  %v2227_v18 = vcombine.high %v7635_v38, %v9393_v15  ;;  %v1743_v48 = vcombine.low %v6974_v21, %v7307_v61 }
 0x30d   : > { %v1727_v21 = vcombine.low %v6885_v39, %v7135_v63  ;;  %v2247_v63 = vcombine.low %v6985_v55, %v7323_v29  ;;  %v2231_v55 = vcombine.low %v6893_v52, %v7144_v34  ;;  %v4500_v29 = vcombine.high %v7000_v17, %v7321_v3 }
 0x30e   : > { %v2853_v24 = vpop.permute.xlu0 %2852  ;;  %v7615_v26 = vpop.permute.xlu1 %1501  ;;  %v7686_v39 = vrot.slane %v1743_v48, %v6618_v59  ;;  %v2230_v48 = vcombine.high %v7604_v41, %v9393_v15 }
 0x30f   : > { %v2947_v60 = vsel %vm1544_vm4, %v7151_v12, %v2853_v24  ;;  %v1724_v12 = vcombine.high %v1706_v32, %v9393_v15  ;;  %v7661_v24 = vrot.slane %v2211_v58, %v6966_v35  ;;  %v4483_v58 = vcombine.low %v6898_v1, %v7142_v30 }
 0x310   : > { %1932 = vrot.lane.b32.xlu0 %v1723_v27, %s6274_s17  ;;  %2440 = vrot.lane.b32.xlu1 %v2210_v49, %s6272_s15  ;;  %v2948_v51 = vsel %vm1546_vm5, %v2947_v60, %v7501_v57  ;;  %v7647_v57 = vrot.slane %v1744_v16, %v6618_v59  ;;  %v7664_v27 = vrot.slane %v1728_v10, %v6618_v59 }
 0x311   : > { %9479 = vst [vmem:[#allocation88_spill] sm:$0xff] %v7661_v24  ;;  %v2232_v60 = vcombine.high %v6893_v52, %v7144_v34  ;;  %v7725_v34 = vrot.slane %v2247_v63, %v6618_v59 }
 0x312   : > { %v2861_v37 = vpop.permute.xlu0 %2860  ;;  %v7631_v6 = vpop.permute.xlu1 %2880  ;;  %v1776_v43 = vcombine.high %v7664_v27, %v7647_v57 }
 0x313   : > { %v2949_v2 = vsel %vm1548_vm6, %v2948_v51, %v2861_v37  ;;  %v7680_v37 = vrot.slane %v2248_v23, %v6618_v59 }
 0x314   : > { %v2979_v13 = vrot.slane %v2949_v2, 4  ;;  %1940 = vrot.lane.b32.xlu0 %v1724_v12, %s6273_s16  ;;  %1944 = vrot.lane.b32.xlu1 %v1725_v50, %s6274_s17  ;;  %v2228_v12 = vcombine.high %v2210_v49, %v9393_v15  ;;  %v7695_v2 = vrot.slane %v2232_v60, %v6618_v59  ;;  %v7701_v49 = vrot.slane %v1727_v21, %v6618_v59  ;;  %v9482_v21 = vld [vmem:[#allocation31_spill] sm:$0xff] }
 0x315   : > { %v7720_v52 = vrot.slane %v1776_v43, %v6966_v35  ;;  %v7740_v60 = vrot.slane %v2231_v55, %v6618_v59 }
 0x316   : > { %2995 = vst [vmem:[#allocation3 + $0x80] sm:$0xf0] %v2979_v13  ;;  %v4289_v0 = vpop.permute.xlu0 %4288  ;;  %v7651_v25 = vpop.permute.xlu1 %4465  ;;  %v2280_v13 = vcombine.high %v7695_v2, %v7680_v37 }
 0x317   : > { %9478 = vst [vmem:[#allocation87_spill] sm:$0xff] %v7651_v25  ;;  %v4374_v32 = vsel %vm1544_vm4, %v7182_v31, %v4289_v0  ;;  %v4499_v31 = vcombine.low %v7000_v17, %v7321_v3  ;;  %v1760_v17 = vcombine.high %v7701_v49, %v7686_v39 }
 0x318   : > { %v4375_v16 = vsel %vm1546_vm5, %v4374_v32, %v7509_v8  ;;  %2436 = vrot.lane.b32.xlu0 %v2227_v18, %s6274_s17  ;;  %1952 = vrot.lane.b32.xlu1 %v1726_v4, %s6273_s16  ;;  %v7731_v32 = vrot.slane %v4483_v58, %v6618_v59  ;;  %v4484_v4 = vcombine.high %v6898_v1, %v7142_v30  ;;  %v9484_v58 = vld [vmem:[#allocation47_spill] sm:$0xff] }
 0x319   : > { %v4376_v61 = vsel %vm1548_vm6, %v4375_v16, %v4297_v20  ;;  %v2229_v20 = vcombine.high %v7661_v24, %v9393_v15  ;;  %v7708_v10 = vrot.slane %v4499_v31, %v6618_v59  ;;  %v3579_v31 = vcombine.low %v9482_v21, %v7363_v44 }
 0x31a   : > { %4396 = vst [vmem:[#allocation3 + $0x118] sm:$0xf] %v4376_v61  ;;  %v4277_v8 = vpop.permute.xlu0 %4276  ;;  %v7682_v51 = vpop.permute.xlu1 %4969  ;;  %v7756_v1 = vrot.slane %v4500_v29, %v6618_v59  ;;  %v2264_v30 = vcombine.high %v7740_v60, %v7725_v34  ;;  %v7763_v63 = vrot.slane %v1760_v17, %v6966_v35  ;;  %v7773_v29 = vrot.slane %v4484_v4, %v6618_v59 }
 0x31b   : > { %9480 = vst [vmem:[#allocation89_spill] sm:$0xff] %v7682_v51  ;;  %v4371_v50 = vsel %vm1544_vm4, %v7197_v46, %v4277_v8  ;;  %v5003_v46 = vcombine.low %v7009_v9, %v7343_v5  ;;  %v4516_v41 = vcombine.high %v7731_v32, %v7708_v10  ;;  %v7753_v8 = vrot.slane %v2280_v13, %v6966_v35 }
 0x31c   : > { %2444 = vrot.lane.b32.xlu0 %v2228_v12, %s6273_s16  ;;  %2448 = vrot.lane.b32.xlu1 %v2229_v20, %s6274_s17  ;;  %v4372_v23 = vsel %vm1546_vm5, %v4371_v50, %v7570_v33  ;;  %v4987_v33 = vcombine.low %v6904_v56, %v7155_v53  ;;  %v5004_v12 = vcombine.high %v7009_v9, %v7343_v5  ;;  %v9485_v50 = vld [vmem:[#allocation13_spill] sm:$0xff] }
 0x31d   : > { %v7746_v16 = vrot.slane %v5003_v46, %v6618_v59  ;;  %v3563_v55 = vcombine.low %v9485_v50, %v9484_v58  ;;  %v4988_v13 = vcombine.high %v6904_v56, %v7155_v53  ;;  %v3580_v9 = vcombine.high %v9482_v21, %v7363_v44 }
 0x31e   : > { %v4285_v0 = vpop.permute.xlu0 %4284  ;;  %v7717_v18 = vpop.permute.xlu1 %3545  ;;  %v7766_v20 = vrot.slane %v4987_v33, %v6618_v59  ;;  %v7784_v46 = vrot.slane %v3579_v31, %v6618_v59  ;;  %v7791_v56 = vrot.slane %v4516_v41, %v6966_v35  ;;  %v4532_v53 = vcombine.high %v7773_v29, %v7756_v1  ;;  %v9488_v31 = vld [vmem:[#allocation49_spill] sm:$0xff] }
 0x31f   : > { %9481 = vst [vmem:[#allocation90_spill] sm:$0xff] %v7717_v18  ;;  %v4373_v3 = vsel %vm1548_vm6, %v4372_v23, %v4285_v0  ;;  %v9486_v23 = vld [vmem:[#allocation72_spill] sm:$0xff]  ;;  %v7796_v44 = vrot.slane %v5004_v12, %v6618_v59  ;;  %v7799_v33 = vrot.slane %v2264_v30, %v6966_v35  ;;  %v3564_v4 = vcombine.high %v9485_v50, %v9484_v58 }
 0x320   : > { %4395 = vst [vmem:[#allocation3 + $0xc0] sm:$0xf] %v4373_v3  ;;  %1972 = vrot.lane.b32.xlu0 %v7720_v52, %s6272_s15  ;;  %2456 = vrot.lane.b32.xlu1 %v2230_v48, %s6273_s16  ;;  %v5020_v5 = vcombine.high %v7766_v20, %v7746_v16  ;;  %v9487_v0 = vld [vmem:[#allocation28_spill] sm:$0xff]  ;;  %v7804_v21 = vrot.slane %v3563_v55, %v6618_v59 }
 0x321   : > { %v3099_v17 = vcombine.low %v9487_v0, %v9486_v23  ;;  %v7811_v41 = vrot.slane %v4988_v13, %v6618_v59  ;;  %v7816_v30 = vrot.slane %v3580_v9, %v6618_v59  ;;  %v3100_v51 = vcombine.high %v9487_v0, %v9486_v23  ;;  %v9490_v9 = vld [vmem:[#allocation59_spill] sm:$0xff] }
 0x322   : > { %v1514_v61 = vpop.permute.xlu0 %1513  ;;  %v7750_v43 = vpop.permute.xlu1 %3065  ;;  %v3596_v12 = vcombine.high %v7804_v21, %v7784_v46  ;;  %v7826_v18 = vrot.slane %v5020_v5, %v6966_v35  ;;  %v7835_v7 = vrot.slane %v4532_v53, %v6966_v35  ;;  %v3084_v5 = vcombine.high %v9489_v45, %v9488_v31 }
 0x323   : > { %9483 = vst [vmem:[#allocation31_spill] sm:$0xff] %v7750_v43  ;;  %v3083_v43 = vcombine.low %v9489_v45, %v9488_v31  ;;  %v7821_v58 = vrot.slane %v3099_v17, %v6618_v59  ;;  %v5036_v13 = vcombine.high %v7811_v41, %v7796_v44  ;;  %v7838_v17 = vrot.slane %v3564_v4, %v6618_v59 }
 0x324   : > { %2476 = vrot.lane.b32.xlu0 %v7753_v8, %s6272_s15  ;;  %1960 = vrot.lane.b32.xlu1 %v7763_v63, %s6272_s15  ;;  %v1759_v23 = vcombine.low %v7701_v49, %v7686_v39  ;;  %v7860_v45 = vrot.slane %v3100_v51, %v6618_v59  ;;  %v9491_v39 = vld [vmem:[#allocation62_spill] sm:$0xff] }
 0x325   : > { %v7841_v62 = vrot.slane %v3083_v43, %v6618_v59  ;;  %v3612_v0 = vcombine.high %v7838_v17, %v7816_v30  ;;  %v7866_v24 = vrot.slane %v5036_v13, %v6966_v35 }
 0x326   : > { %v2893_v3 = vpop.permute.xlu0 %2892  ;;  %v7788_v48 = vpop.permute.xlu1 %4316  ;;  %v7881_v13 = vrot.slane %v1759_v23, %v6966_v35 }
 0x327   : > { %v3116_v53 = vcombine.high %v7841_v62, %v7821_v58 }
 0x328   : > { %4760 = vrot.lane.b32.xlu0 %v7791_v56, %s6272_s15  ;;  %2464 = vrot.lane.b32.xlu1 %v7799_v33, %s6272_s15  ;;  %v1791_v23 = vcombine.high %v7881_v13, %v9393_v15 }
 0x32a   : > { %v7823_v50 = vpop.permute.xlu0 %4304  ;;  %v1510_v55 = vpop.permute.xlu1 %1509 }
 0x32b   : > { %v1562_v25 = vsel %vm1544_vm4, %v9490_v9, %v1510_v55  ;;  %v7857_v9 = vrot.slane %v3596_v12, %v6966_v35 }
 0x32c   : > { %5264 = vrot.lane.b32.xlu0 %v7826_v18, %s6272_s15  ;;  %4772 = vrot.lane.b32.xlu1 %v7835_v7, %s6272_s15  ;;  %v1563_v4 = vsel %vm1546_vm5, %v1562_v25, %v1514_v61  ;;  %v7871_v25 = vrot.slane %v3084_v5, %v6618_v59 }
 0x32e   : > { %v1498_v43 = vpop.permute.xlu0 %1497  ;;  %v1518_v55 = vpop.permute.xlu1 %1517  ;;  %v3132_v5 = vcombine.high %v7871_v25, %v7860_v45 }
 0x32f   : > { %v1559_v49 = vsel %vm1544_vm4, %v9491_v39, %v1498_v43  ;;  %v1564_v31 = vsel %vm1548_vm6, %v1563_v4, %v1518_v55  ;;  %v7878_v43 = vrot.slane %v3116_v53, %v6966_v35  ;;  %v1775_v4 = vcombine.low %v7664_v27, %v7647_v57  ;;  %v9493_v53 = vld [vmem:[#allocation67_spill] sm:$0xff] }
 0x330   : > { %1576 = vst [vmem:[#allocation3 + $0x38] sm:$0xf] %v1564_v31  ;;  %3840 = vrot.lane.b32.xlu0 %v7857_v9, %s6272_s15  ;;  %5276 = vrot.lane.b32.xlu1 %v7866_v24, %s6272_s15  ;;  %v1560_v61 = vsel %vm1546_vm5, %v1559_v49, %v7615_v26  ;;  %v7889_v39 = vrot.slane %v3612_v0, %v6966_v35  ;;  %v9492_v26 = vld [vmem:[#allocation65_spill] sm:$0xff] }
 0x331   : > { %v2263_v57 = vcombine.low %v7740_v60, %v7725_v34 }
 0x332   : > { %v1506_v51 = vpop.permute.xlu0 %1505  ;;  %v2889_v12 = vpop.permute.xlu1 %2888 }
 0x333   : > { %v1561_v55 = vsel %vm1548_vm6, %v1560_v61, %v1506_v51  ;;  %v2956_v49 = vsel %vm1544_vm4, %v9492_v26, %v2889_v12  ;;  %v7905_v61 = vrot.slane %v3132_v5, %v6966_v35  ;;  %v7908_v12 = vrot.slane %v1775_v4, %v6966_v35 }
 0x334   : > { %1575 = vst [vmem:[#allocation3 + $0x120] sm:$0xf] %v1561_v55  ;;  %3360 = vrot.lane.b32.xlu0 %v7878_v43, %s6272_s15  ;;  %3852 = vrot.lane.b32.xlu1 %v7889_v39, %s6272_s15  ;;  %v2957_v31 = vsel %vm1546_vm5, %v2956_v49, %v2893_v3  ;;  %v1792_v3 = vcombine.high %v7763_v63, %v9393_v15 }
 0x335   : > { %9494 = vst [vmem:[#allocation47_spill] sm:$0xff] %v7908_v12  ;;  %v7919_v5 = vrot.slane %v2263_v57, %v6966_v35  ;;  %v2279_v4 = vcombine.low %v7695_v2, %v7680_v37  ;;  %v4531_v63 = vcombine.low %v7773_v29, %v7756_v1  ;;  %v5035_v29 = vcombine.low %v7811_v41, %v7796_v44 }
 0x336   : > { %v2877_v27 = vpop.permute.xlu0 %2876  ;;  %v2897_v51 = vpop.permute.xlu1 %2896  ;;  %v4515_v44 = vcombine.low %v7731_v32, %v7708_v10 }
 0x337   : > { %v2953_v0 = vsel %vm1544_vm4, %v9493_v53, %v2877_v27  ;;  %v2958_v55 = vsel %vm1548_vm6, %v2957_v31, %v2897_v51  ;;  %9495 = vst [vmem:[#allocation13_spill] sm:$0xff] %v7919_v5  ;;  %v9496_v31 = vld [vmem:[#allocation68_spill] sm:$0xff]  ;;  %v2295_v2 = vcombine.high %v7919_v5, %v9393_v15  ;;  %v1794_v51 = vcombine.high %v7720_v52, %v9393_v15  ;;  %v9531_v5 = vld [vmem:[#allocation11_spill] sm:$0xff] }
 0x338   : > { %1956 = vrot.lane.b32.xlu0 %v1791_v23, %s6274_s17  ;;  %v2982_v34 = vrot.slane %v2958_v55, 4  ;;  %3372 = vrot.lane.b32.xlu1 %v7905_v61, %s6272_s15  ;;  %v2954_v26 = vsel %vm1546_vm5, %v2953_v0, %v7631_v6  ;;  %v1793_v23 = vcombine.high %v7908_v12, %v9393_v15  ;;  %v7939_v55 = vrot.slane %v2279_v4, %v6966_v35 }
 0x339   : > { %v2296_v52 = vcombine.high %v7799_v33, %v9393_v15 }
 0x33a   : > { %v2885_v60 = vpop.permute.xlu0 %2884  ;;  %2998 = vst [vmem:[#allocation3 + $0xf0] sm:$0xf0] %v2982_v34  ;;  %v4313_v27 = vpop.permute.xlu1 %4312  ;;  %9497 = vst [vmem:[#allocation72_spill] sm:$0xff] %v7939_v55  ;;  %v9498_v34 = vld [vmem:[#allocation69_spill] sm:$0xff] }
 0x33b   : > { %v2955_v49 = vsel %vm1548_vm6, %v2954_v26, %v2885_v60  ;;  %v4380_v6 = vsel %vm1544_vm4, %v9496_v31, %v4313_v27  ;;  %v7951_v26 = vrot.slane %v4531_v63, %v6966_v35  ;;  %v5019_v31 = vcombine.low %v7766_v20, %v7746_v16  ;;  %v9503_v16 = vld [vmem:[#allocation34_spill] sm:$0xff] }
 0x33c   : > { %v2981_v53 = vrot.slane %v2955_v49, 4  ;;  %1964 = vrot.lane.b32.xlu0 %v1792_v3, %s6273_s16  ;;  %1968 = vrot.lane.b32.xlu1 %v1793_v23, %s6274_s17  ;;  %v4381_v57 = vsel %vm1546_vm5, %v4380_v6, %v7788_v48  ;;  %v2297_v49 = vcombine.high %v7939_v55, %v9393_v15  ;;  %v7980_v6 = vrot.slane %v4515_v44, %v6966_v35 }
 0x33d   : > { %9499 = vst [vmem:[#allocation28_spill] sm:$0xff] %v7951_v26  ;;  %v4549_v41 = vcombine.high %v7951_v26, %v9393_v15  ;;  %v1811_v20 = vcombine.low %v9503_v16, %v7422_v40 }
 0x33e   : > { %2997 = vst [vmem:[#allocation3 + $0x138] sm:$0xf0] %v2981_v53  ;;  %v4301_v37 = vpop.permute.xlu0 %4300  ;;  %v4321_v0 = vpop.permute.xlu1 %4320  ;;  %v2298_v53 = vcombine.high %v7753_v8, %v9393_v15  ;;  %9502 = vst [vmem:[#allocation59_spill] sm:$0xff] %v7980_v6  ;;  %v3611_v8 = vcombine.low %v7838_v17, %v7816_v30  ;;  %v9506_v30 = vld [vmem:[#allocation16_spill] sm:$0xff] }
 0x33f   : > { %v4377_v60 = vsel %vm1544_vm4, %v9498_v34, %v4301_v37  ;;  %v4382_v1 = vsel %vm1548_vm6, %v4381_v57, %v4321_v0  ;;  %v4550_v37 = vcombine.high %v7835_v7, %v9393_v15  ;;  %v4547_v57 = vcombine.high %v7980_v6, %v9393_v15 }
 0x340   : > { %2460 = vrot.lane.b32.xlu0 %v2295_v2, %s6274_s17  ;;  %4398 = vst [vmem:[#allocation3 + $0xa0] sm:$0xf] %v4382_v1  ;;  %1976 = vrot.lane.b32.xlu1 %v1794_v51, %s6273_s16  ;;  %v4378_v3 = vsel %vm1546_vm5, %v4377_v60, %v7823_v50  ;;  %v7967_v50 = vrot.slane %v5035_v29, %v6966_v35  ;;  %v9505_v60 = vld [vmem:[#allocation52_spill] sm:$0xff] }
 0x341   : > { %v7993_v0 = vrot.slane %v5019_v31, %v6966_v35  ;;  %v5054_v34 = vcombine.high %v7866_v24, %v9393_v15  ;;  %v1795_v17 = vcombine.low %v9506_v30, %v9505_v60  ;;  %v3595_v1 = vcombine.low %v7804_v21, %v7784_v46  ;;  %v9511_v31 = vld [vmem:[#allocation17_spill] sm:$0xff] }
 0x342   : > { %v1538_v48 = vpop.permute.xlu0 %1537  ;;  %v4309_v4 = vpop.permute.xlu1 %4308  ;;  %9500 = vst [vmem:[#allocation49_spill] sm:$0xff] %v7967_v50  ;;  %v5053_v32 = vcombine.high %v7967_v50, %v9393_v15  ;;  %v8008_v29 = vrot.slane %v1811_v20, %v6618_v59  ;;  %v8014_v24 = vrot.slane %v3611_v8, %v6966_v35  ;;  %v3630_v21 = vcombine.high %v7889_v39, %v9393_v15  ;;  %v9513_v8 = vld [vmem:[#allocation30_spill] sm:$0xff] }
 0x343   : > { %v4379_v27 = vsel %vm1548_vm6, %v4378_v3, %v4309_v4  ;;  %9504 = vst [vmem:[#allocation62_spill] sm:$0xff] %v7993_v0  ;;  %v5051_v3 = vcombine.high %v7993_v0, %v9393_v15  ;;  %v9508_v4 = vld [vmem:[#allocation35_spill] sm:$0xff]  ;;  %v8022_v44 = vrot.slane %v1795_v17, %v6618_v59 }
 0x344   : > { %2468 = vrot.lane.b32.xlu0 %v2296_v52, %s6273_s16  ;;  %4397 = vst [vmem:[#allocation3 + $0xd8] sm:$0xf] %v4379_v27  ;;  %2472 = vrot.lane.b32.xlu1 %v2297_v49, %s6274_s17  ;;  %9507 = vst [vmem:[#allocation65_spill] sm:$0xff] %v8014_v24  ;;  %v2315_v49 = vcombine.low %v9508_v4, %v7436_v47 }
 0x345   : > { %v1828_v39 = vcombine.high %v8022_v44, %v8008_v29 }
 0x346   : > { %v7962_v33 = vpop.permute.xlu0 %2916  ;;  %v1526_v23 = vpop.permute.xlu1 %1525 }
 0x348   : > { %4768 = vrot.lane.b32.xlu0 %v4549_v41, %s6274_s17  ;;  %2480 = vrot.lane.b32.xlu1 %v2298_v53, %s6273_s16  ;;  %v9509_v41 = vld [vmem:[#allocation76_spill] sm:$0xff]  ;;  %v9510_v53 = vld [vmem:[#allocation53_spill] sm:$0xff] }
 0x34a   : > { %v7975_v10 = vpop.permute.xlu0 %4328  ;;  %v2905_v63 = vpop.permute.xlu1 %2904 }
 0x34b   : > { %9501 = vst [vmem:[#allocation10_spill] sm:$0xff] %v7975_v10  ;;  %v9518_v10 = vld [vmem:[#allocation32_spill] sm:$0xff] }
 0x34c   : > { %5272 = vrot.lane.b32.xlu0 %v5053_v32, %s6274_s17  ;;  %4776 = vrot.lane.b32.xlu1 %v4550_v37, %s6273_s16  ;;  %v2299_v32 = vcombine.low %v9511_v31, %v9510_v53  ;;  %v9512_v37 = vld [vmem:[#allocation70_spill] sm:$0xff] }
 0x34d   : > { %v4568_v20 = vcombine.high %v9513_v8, %v9512_v37 }
 0x34e   : > { %v1522_v2 = vpop.permute.xlu0 %1521  ;;  %v7997_v51 = vpop.permute.xlu1 %4340 }
 0x34f   : > { %v1565_v7 = vsel %vm1544_vm4, %v7404_v11, %v1522_v2 }
 0x350   : > { %4756 = vrot.lane.b32.xlu0 %v4547_v57, %s6274_s17  ;;  %5280 = vrot.lane.b32.xlu1 %v5054_v34, %s6273_s16  ;;  %v1566_v11 = vsel %vm1546_vm5, %v1565_v7, %v1526_v23  ;;  %v3629_v57 = vcombine.high %v8014_v24, %v9393_v15  ;;  %v8037_v7 = vrot.slane %v3595_v1, %v6966_v35 }
 0x351   : > { %v8040_v34 = vrot.slane %v2315_v49, %v6618_v59  ;;  %v9517_v49 = vld [vmem:[#allocation71_spill] sm:$0xff] }
 0x352   : > { %v1530_v52 = vpop.permute.xlu0 %1529  ;;  %v1534_v46 = vpop.permute.xlu1 %1533  ;;  %9514 = vst [vmem:[#allocation67_spill] sm:$0xff] %v8037_v7  ;;  %v5072_v0 = vcombine.high %v9518_v10, %v9517_v49 }
 0x353   : > { %v1567_v27 = vsel %vm1548_vm6, %v1566_v11, %v1530_v52  ;;  %v1568_v23 = vsel %vm1544_vm4, %v9509_v41, %v1534_v46  ;;  %v9515_v46 = vld [vmem:[#allocation46_spill] sm:$0xff]  ;;  %v8052_v41 = vrot.slane %v2299_v32, %v6618_v59 }
 0x354   : > { %1577 = vst [vmem:[#allocation3 + $0xf8] sm:$0xf] %v1567_v27  ;;  %5260 = vrot.lane.b32.xlu0 %v5051_v3, %s6274_s17  ;;  %3856 = vrot.lane.b32.xlu1 %v3630_v21, %s6273_s16  ;;  %v1569_v52 = vsel %vm1546_vm5, %v1568_v23, %v1538_v48  ;;  %v3150_v3 = vcombine.high %v7905_v61, %v9393_v15  ;;  %v9516_v21 = vld [vmem:[#allocation12_spill] sm:$0xff]  ;;  %v9520_v48 = vld [vmem:[#allocation14_spill] sm:$0xff] }
 0x355   : > { %v4552_v1 = vcombine.high %v9516_v21, %v9515_v46  ;;  %v2332_v32 = vcombine.high %v8052_v41, %v8040_v34 }
 0x356   : > { %v2901_v2 = vpop.permute.xlu0 %2900  ;;  %v1542_v11 = vpop.permute.xlu1 %1541 }
 0x357   : > { %v2959_v17 = vsel %vm1544_vm4, %v7426_v14, %v2901_v2  ;;  %v1570_v27 = vsel %vm1548_vm6, %v1569_v52, %v1542_v11  ;;  %v9519_v14 = vld [vmem:[#allocation48_spill] sm:$0xff]  ;;  %v8063_v52 = vrot.slane %v4568_v20, %v6618_v59  ;;  %v8078_v20 = vrot.slane %v5072_v0, %v6618_v59 }
 0x358   : > { %3848 = vrot.lane.b32.xlu0 %v3629_v57, %s6274_s17  ;;  %1578 = vst [vmem:[#allocation3 + $0x100] sm:$0xf] %v1570_v27  ;;  %3376 = vrot.lane.b32.xlu1 %v3150_v3, %s6273_s16  ;;  %v5056_v23 = vcombine.high %v9520_v48, %v9519_v14  ;;  %v2960_v2 = vsel %vm1546_vm5, %v2959_v17, %v2905_v63 }
 0x359   : > { %v3627_v57 = vcombine.high %v8037_v7, %v9393_v15  ;;  %v8069_v3 = vrot.slane %v1828_v39, %v6966_v35  ;;  %v8075_v63 = vrot.slane %v4552_v1, %v6618_v59  ;;  %v3131_v17 = vcombine.low %v7871_v25, %v7860_v45  ;;  %v9521_v39 = vld [vmem:[#allocation73_spill] sm:$0xff] }
 0x35a   : > { %v2909_v61 = vpop.permute.xlu0 %2908  ;;  %v2913_v27 = vpop.permute.xlu1 %2912  ;;  %v8089_v1 = vrot.slane %v5056_v23, %v6618_v59  ;;  %v8096_v45 = vrot.slane %v2332_v32, %v6966_v35  ;;  %v9523_v25 = vld [vmem:[#allocation77_spill] sm:$0xff]  ;;  %v9525_v23 = vld [vmem:[#allocation15_spill] sm:$0xff] }
 0x35b   : > { %v2961_v11 = vsel %vm1548_vm6, %v2960_v2, %v2909_v61  ;;  %v2962_v24 = vsel %vm1544_vm4, %v7443_v22, %v2913_v27  ;;  %v9522_v61 = vld [vmem:[#allocation33_spill] sm:$0xff]  ;;  %v4548_v22 = vcombine.high %v7791_v56, %v9393_v15  ;;  %v4600_v0 = vcombine.high %v8075_v63, %v8063_v52  ;;  %v9524_v56 = vld [vmem:[#allocation50_spill] sm:$0xff] }
 0x35c   : > { %v2983_v6 = vrot.slane %v2961_v11, 4  ;;  %3836 = vrot.lane.b32.xlu0 %v3627_v57, %s6274_s17  ;;  %1984 = vrot.lane.b32.xlu1 %v8069_v3, %s6272_s15  ;;  %v3648_v2 = vcombine.high %v9522_v61, %v9521_v39  ;;  %v2963_v57 = vsel %vm1546_vm5, %v2962_v24, %v7962_v33  ;;  %v3632_v50 = vcombine.high %v9525_v23, %v9524_v56 }
 0x35d   : > { %v5104_v26 = vcombine.high %v8089_v1, %v8078_v20  ;;  %v3115_v33 = vcombine.low %v7841_v62, %v7821_v58 }
 0x35e   : > { %2999 = vst [vmem:[#allocation3 + $0x18] sm:$0xf0] %v2983_v6  ;;  %v4337_v11 = vpop.permute.xlu0 %4336  ;;  %v2921_v27 = vpop.permute.xlu1 %2920  ;;  %v8111_v24 = vrot.slane %v3648_v2, %v6618_v59  ;;  %v8127_v2 = vrot.slane %v4600_v0, %v6966_v35 }
 0x35f   : > { %v4386_v6 = vsel %vm1544_vm4, %v9523_v25, %v4337_v11  ;;  %v2964_v7 = vsel %vm1548_vm6, %v2963_v57, %v2921_v27  ;;  %v5052_v11 = vcombine.high %v7826_v18, %v9393_v15  ;;  %v9528_v57 = vld [vmem:[#allocation74_spill] sm:$0xff]  ;;  %v9529_v27 = vld [vmem:[#allocation29_spill] sm:$0xff]  ;;  %v1812_v25 = vcombine.high %v9503_v16, %v7422_v40 }
 0x360   : > { %4764 = vrot.lane.b32.xlu0 %v4548_v22, %s6273_s16  ;;  %v2984_v55 = vrot.slane %v2964_v7, 4  ;;  %2488 = vrot.lane.b32.xlu1 %v8096_v45, %s6272_s15  ;;  %v8118_v22 = vrot.slane %v3131_v17, %v6966_v35  ;;  %v3168_v7 = vcombine.high %v9529_v27, %v9528_v57  ;;  %v4387_v62 = vsel %vm1546_vm5, %v4386_v6, %v7997_v51  ;;  %v9530_v17 = vld [vmem:[#allocation51_spill] sm:$0xff] }
 0x361   : > { %v8132_v18 = vrot.slane %v3632_v50, %v6618_v59  ;;  %v3152_v12 = vcombine.high %v9531_v5, %v9530_v17  ;;  %v1796_v40 = vcombine.high %v9506_v30, %v9505_v60  ;;  %v8143_v51 = vrot.slane %v3115_v33, %v6966_v35 }
 0x362   : > { %v8113_v32 = vpop.permute.xlu0 %4324  ;;  %9527 = vst [vmem:[#allocation69_spill] sm:$0xff] %v8118_v22  ;;  %3000 = vst [vmem:[#allocation3 + $0xc8] sm:$0xf0] %v2984_v55  ;;  %v4345_v58 = vpop.permute.xlu1 %4344  ;;  %v3149_v16 = vcombine.high %v8118_v22, %v9393_v15  ;;  %v8148_v0 = vrot.slane %v3168_v7, %v6618_v59  ;;  %v1826_v6 = vrot.slane %v1812_v25, %v6618_v59 }
 0x363   : > { %9526 = vst [vmem:[#allocation68_spill] sm:$0xff] %v8113_v32  ;;  %v4388_v32 = vsel %vm1548_vm6, %v4387_v62, %v4345_v58  ;;  %9532 = vst [vmem:[#allocation34_spill] sm:$0xff] %v8143_v51  ;;  %v3680_v50 = vcombine.high %v8132_v18, %v8111_v24  ;;  %v8152_v30 = vrot.slane %v5104_v26, %v6966_v35 }
 0x364   : > { %5268 = vrot.lane.b32.xlu0 %v5052_v11, %s6273_s16  ;;  %4400 = vst [vmem:[#allocation3 + $0x130] sm:$0xf] %v4388_v32  ;;  %4796 = vrot.lane.b32.xlu1 %v8127_v2, %s6272_s15  ;;  %v8156_v32 = vrot.slane %v3152_v12, %v6618_v59  ;;  %v1810_v33 = vrot.slane %v1796_v40, %v6618_v59 }
 0x365   : > { %v2316_v11 = vcombine.high %v9508_v4, %v7436_v47  ;;  %v3147_v25 = vcombine.high %v8143_v51, %v9393_v15  ;;  %v8170_v12 = vrot.slane %v3680_v50, %v6966_v35  ;;  %v2300_v40 = vcombine.high %v9511_v31, %v9510_v53 }
 0x366   : > { %v2941_v55 = vpop.permute.xlu0 %2940  ;;  %v2929_v60 = vpop.permute.xlu1 %2928  ;;  %v3200_v26 = vcombine.high %v8156_v32, %v8148_v0  ;;  %v1843_v62 = vcombine.low %v1810_v33, %v1826_v6 }
 0x367   : > { %v2330_v47 = vrot.slane %v2316_v11, %v6618_v59  ;;  %v2314_v31 = vrot.slane %v2300_v40, %v6618_v59 }
 0x368   : > { %3368 = vrot.lane.b32.xlu0 %v3149_v16, %s6274_s17  ;;  %5300 = vrot.lane.b32.xlu1 %v8152_v30, %s6272_s15  ;;  %v3628_v16 = vcombine.high %v7857_v9, %v9393_v15  ;;  %v8183_v22 = vrot.slane %v3200_v26, %v6966_v35  ;;  %v8186_v53 = vrot.slane %v1843_v62, %v6966_v35 }
 0x369   : > { %v4567_v9 = vcombine.low %v9513_v8, %v9512_v37  ;;  %v4551_v37 = vcombine.low %v9516_v21, %v9515_v46 }
 0x36a   : > { %v8163_v7 = vpop.permute.xlu0 %4352  ;;  %v4365_v58 = vpop.permute.xlu1 %4364 }
 0x36b   : > { %9533 = vst [vmem:[#allocation52_spill] sm:$0xff] %v8163_v7  ;;  %v1844_v7 = vcombine.high %v1810_v33, %v1826_v6 }
 0x36c   : > { %3356 = vrot.lane.b32.xlu0 %v3147_v25, %s6274_s17  ;;  %3876 = vrot.lane.b32.xlu1 %v8170_v12, %s6272_s15  ;;  %v3148_v25 = vcombine.high %v7878_v43, %v9393_v15  ;;  %v8210_v43 = vrot.slane %v4567_v9, %v6618_v59  ;;  %v5055_v9 = vcombine.low %v9520_v48, %v9519_v14 }
 0x36d   : > { %v1858_v40 = vrot.slane %v1844_v7, %v6966_v35  ;;  %v4599_v14 = vcombine.low %v8075_v63, %v8063_v52 }
 0x36e   : > { %v2925_v4 = vpop.permute.xlu0 %2924  ;;  %v2937_v51 = vpop.permute.xlu1 %2936 }
 0x36f   : > { %v2965_v50 = vsel %vm1544_vm4, %v7515_v42, %v2925_v4  ;;  %v2968_v11 = vsel %vm1544_vm4, %v7519_v19, %v2937_v51  ;;  %v2347_v42 = vcombine.low %v2314_v31, %v2330_v47  ;;  %v1861_v51 = vcombine.high %v8186_v53, %v9393_v15 }
 0x370   : > { %3844 = vrot.lane.b32.xlu0 %v3628_v16, %s6273_s16  ;;  %3396 = vrot.lane.b32.xlu1 %v8183_v22, %s6272_s15  ;;  %v2966_v6 = vsel %vm1546_vm5, %v2965_v50, %v2929_v60  ;;  %v2969_v26 = vsel %vm1546_vm5, %v2968_v11, %v2941_v55  ;;  %v5071_v55 = vcombine.low %v9518_v10, %v9517_v49 }
 0x371   : > { %v2348_v16 = vcombine.high %v2314_v31, %v2330_v47  ;;  %v1862_v21 = vcombine.high %v1858_v40, %v9393_v15  ;;  %v8218_v50 = vrot.slane %v2347_v42, %v6966_v35  ;;  %v8221_v11 = vrot.slane %v4551_v37, %v6618_v59 }
 0x372   : > { %v2933_v33 = vpop.permute.xlu0 %2932  ;;  %v2945_v62 = vpop.permute.xlu1 %2944  ;;  %v8232_v47 = vrot.slane %v5071_v55, %v6618_v59  ;;  %v3647_v31 = vcombine.low %v9522_v61, %v9521_v39  ;;  %v3167_v61 = vcombine.low %v9529_v27, %v9528_v57  ;;  %v3151_v57 = vcombine.low %v9531_v5, %v9530_v17 }
 0x373   : > { %v2967_v19 = vsel %vm1548_vm6, %v2966_v6, %v2933_v33  ;;  %v2970_v8 = vsel %vm1548_vm6, %v2969_v26, %v2945_v62  ;;  %v4584_v49 = vcombine.high %v8221_v11, %v8210_v43  ;;  %v2362_v6 = vrot.slane %v2348_v16, %v6966_v35 }
 0x374   : > { %v2985_v60 = vrot.slane %v2967_v19, 4  ;;  %3364 = vrot.lane.b32.xlu0 %v3148_v25, %s6273_s16  ;;  %v2986_v4 = vrot.slane %v2970_v8, 4  ;;  %1992 = vrot.lane.b32.xlu1 %v1861_v51, %s6274_s17  ;;  %v2365_v33 = vcombine.high %v8218_v50, %v9393_v15  ;;  %v8243_v25 = vrot.slane %v5055_v9, %v6618_v59 }
 0x375   : > { %v3631_v26 = vcombine.low %v9525_v23, %v9524_v56  ;;  %v8253_v63 = vrot.slane %v3647_v31, %v6618_v59  ;;  %v8260_v56 = vrot.slane %v4584_v49, %v6966_v35  ;;  %v5103_v23 = vcombine.low %v8089_v1, %v8078_v20 }
 0x376   : > { %3001 = vst [vmem:[#allocation3 + $0x70] sm:$0xf0] %v2985_v60  ;;  %v8214_v7 = vpop.permute.xlu0 %4348  ;;  %3002 = vst [vmem:[#allocation3 + $0x20] sm:$0xf0] %v2986_v4  ;;  %v4361_v46 = vpop.permute.xlu1 %4360  ;;  %v5088_v52 = vcombine.high %v8243_v25, %v8232_v47  ;;  %v2366_v19 = vcombine.high %v2362_v6, %v9393_v15  ;;  %v8266_v51 = vrot.slane %v4599_v14, %v6966_v35 }
 0x377   : > { %9534 = vst [vmem:[#allocation16_spill] sm:$0xff] %v8214_v7  ;;  %v4392_v10 = vsel %vm1544_vm4, %v7555_v28, %v4361_v46  ;;  %v8279_v1 = vrot.slane %v3167_v61, %v6618_v59  ;;  %v3679_v8 = vcombine.low %v8132_v18, %v8111_v24  ;;  %v8291_v4 = vrot.slane %v5103_v23, %v6966_v35 }
 0x378   : > { %1996 = vrot.lane.b32.xlu0 %v1858_v40, %s6272_s15  ;;  %2000 = vrot.lane.b32.xlu1 %v1862_v21, %s6273_s16  ;;  %v4393_v28 = vsel %vm1546_vm5, %v4392_v10, %v4365_v58  ;;  %v8269_v40 = vrot.slane %v3631_v26, %v6618_v59  ;;  %v8282_v37 = vrot.slane %v5088_v52, %v6966_v35 }
 0x379   : > { %v4617_v17 = vcombine.high %v8266_v51, %v9393_v15  ;;  %v8294_v55 = vrot.slane %v3151_v57, %v6618_v59  ;;  %v5121_v10 = vcombine.high %v8291_v4, %v9393_v15  ;;  %v8311_v49 = vrot.slane %v3679_v8, %v6966_v35  ;;  %v9535_v57 = vld [vmem:[#allocation88_spill] sm:$0xff] }
 0x37a   : > { %v1949_v42 = vpop.permute.xlu0 %1948  ;;  %v4369_v48 = vpop.permute.xlu1 %4368  ;;  %v3664_v20 = vcombine.high %v8269_v40, %v8253_v63  ;;  %v2331_v52 = vcombine.low %v8052_v41, %v8040_v34  ;;  %v1860_v41 = vcombine.high %v8069_v3, %v9393_v15  ;;  %v4583_v3 = vcombine.low %v8221_v11, %v8210_v43 }
 0x37b   : > { %v4394_v39 = vsel %vm1548_vm6, %v4393_v28, %v4369_v48  ;;  %v3184_v24 = vcombine.high %v8294_v55, %v8279_v1  ;;  %v5087_v43 = vcombine.low %v8243_v25, %v8232_v47  ;;  %v3663_v47 = vcombine.low %v8269_v40, %v8253_v63  ;;  %v9538_v40 = vld [vmem:[#allocation79_spill] sm:$0xff] }
 0x37c   : > { %2500 = vrot.lane.b32.xlu0 %v2362_v6, %s6272_s15  ;;  %4402 = vst [vmem:[#allocation3 + $0xe8] sm:$0xf] %v4394_v39  ;;  %2496 = vrot.lane.b32.xlu1 %v2365_v33, %s6274_s17  ;;  %v8305_v46 = vrot.slane %v3664_v20, %v6966_v35  ;;  %v3697_v33 = vcombine.high %v8311_v49, %v9393_v15 }
 0x37d   : > { %v3183_v63 = vcombine.low %v8294_v55, %v8279_v1  ;;  %v9543_v1 = vld [vmem:[#allocation80_spill] sm:$0xff]  ;;  %v9544_v55 = vld [vmem:[#allocation38_spill] sm:$0xff] }
 0x37e   : > { %v8257_v58 = vpop.permute.xlu0 %2452  ;;  %v1937_v62 = vpop.permute.xlu1 %1936 }
 0x380   : > { %4784 = vrot.lane.b32.xlu0 %v8260_v56, %s6272_s15  ;;  %2504 = vrot.lane.b32.xlu1 %v2366_v19, %s6273_s16  ;;  %v4618_v19 = vcombine.high %v8127_v2, %v9393_v15 }
 0x382   : > { %v1933_v27 = vpop.permute.xlu0 %1932  ;;  %v2441_v60 = vpop.permute.xlu1 %2440 }
 0x383   : > { %v2027_v5 = vsel %vm1544_vm4, %v7607_v36, %v1933_v27  ;;  %v1827_v36 = vcombine.low %v8022_v44, %v8008_v29  ;;  %v8319_v44 = vrot.slane %v3184_v24, %v6966_v35  ;;  %v8350_v27 = vrot.slane %v2331_v52, %v6966_v35 }
 0x384   : > { %5288 = vrot.lane.b32.xlu0 %v8282_v37, %s6272_s15  ;;  %4792 = vrot.lane.b32.xlu1 %v4617_v17, %s6274_s17  ;;  %v2028_v18 = vsel %vm1546_vm5, %v2027_v5, %v1937_v62  ;;  %v2384_v52 = vcombine.high %v9544_v55, %v9543_v1 }
 0x385   : > { %v8322_v14 = vrot.slane %v1827_v36, %v6966_v35  ;;  %v2363_v24 = vcombine.high %v8350_v27, %v9393_v15 }
 0x386   : > { %v1941_v16 = vpop.permute.xlu0 %1940  ;;  %v1945_v21 = vpop.permute.xlu1 %1944 }
 0x387   : > { %v2029_v9 = vsel %vm1548_vm6, %v2028_v18, %v1941_v16  ;;  %v2030_v31 = vsel %vm1544_vm4, %v7623_v54, %v1945_v21  ;;  %v2364_v18 = vcombine.high %v8096_v45, %v9393_v15  ;;  %v8380_v16 = vrot.slane %v4583_v3, %v6966_v35 }
 0x388   : > { %v2059_v6 = vrot.slane %v2029_v9, 4  ;;  %3864 = vrot.lane.b32.xlu0 %v8305_v46, %s6272_s15  ;;  %5296 = vrot.lane.b32.xlu1 %v5121_v10, %s6274_s17  ;;  %v2031_v48 = vsel %vm1546_vm5, %v2030_v31, %v1949_v42  ;;  %v8398_v21 = vrot.slane %v5087_v43, %v6966_v35  ;;  %v9539_v10 = vld [vmem:[#allocation36_spill] sm:$0xff]  ;;  %v8456_v3 = vrot.slane %v2384_v52, %v6618_v59 }
 0x389   : > { %v4615_v45 = vcombine.high %v8380_v16, %v9393_v15  ;;  %v1880_v31 = vcombine.high %v9539_v10, %v9538_v40 }
 0x38a   : > { %2075 = vst [vmem:[#allocation3 + $0xb0] sm:$0xf0] %v2059_v6  ;;  %v2437_v29 = vpop.permute.xlu0 %2436  ;;  %v1953_v28 = vpop.permute.xlu1 %1952  ;;  %9537 = vst [vmem:[#allocation76_spill] sm:$0xff] %v8398_v21 }
 0x38b   : > { %v2531_v54 = vsel %vm1544_vm4, %v7635_v38, %v2437_v29  ;;  %v2032_v26 = vsel %vm1548_vm6, %v2031_v48, %v1953_v28  ;;  %v1859_v38 = vcombine.high %v8322_v14, %v9393_v15  ;;  %v5119_v29 = vcombine.high %v8398_v21, %v9393_v15 }
 0x38c   : > { %3384 = vrot.lane.b32.xlu0 %v8319_v44, %s6272_s15  ;;  %v2060_v39 = vrot.slane %v2032_v26, 4  ;;  %3872 = vrot.lane.b32.xlu1 %v3697_v33, %s6274_s17  ;;  %v2532_v61 = vsel %vm1546_vm5, %v2531_v54, %v2441_v60  ;;  %v5122_v60 = vcombine.high %v8152_v30, %v9393_v15  ;;  %v4616_v30 = vcombine.high %v8260_v56, %v9393_v15  ;;  %v9541_v33 = vld [vmem:[#allocation54_spill] sm:$0xff] }
 0x38d   : > { %v8415_v28 = vrot.slane %v3663_v47, %v6966_v35  ;;  %v3698_v54 = vcombine.high %v8170_v12, %v9393_v15  ;;  %v9542_v26 = vld [vmem:[#allocation18_spill] sm:$0xff]  ;;  %v8435_v12 = vrot.slane %v3183_v63, %v6966_v35  ;;  %v3218_v63 = vcombine.high %v8183_v22, %v9393_v15 }
 0x38e   : > { %v2445_v42 = vpop.permute.xlu0 %2444  ;;  %2076 = vst [vmem:[#allocation3 + $0xd0] sm:$0xf0] %v2060_v39  ;;  %v2449_v23 = vpop.permute.xlu1 %2448  ;;  %v1864_v39 = vcombine.high %v9542_v26, %v9541_v33 }
 0x38f   : > { %v2533_v62 = vsel %vm1548_vm6, %v2532_v61, %v2445_v42  ;;  %v2534_v20 = vsel %vm1544_vm4, %v9535_v57, %v2449_v23  ;;  %9540 = vst [vmem:[#allocation53_spill] sm:$0xff] %v8415_v28  ;;  %v8428_v61 = vrot.slane %v1880_v31, %v6618_v59  ;;  %9545 = vst [vmem:[#allocation17_spill] sm:$0xff] %v8435_v12  ;;  %v9546_v23 = vld [vmem:[#allocation56_spill] sm:$0xff] }
 0x390   : > { %2555 = vst [vmem:[#allocation3 + $0x80] sm:$0xf] %v2533_v62  ;;  %1980 = vrot.lane.b32.xlu0 %v1859_v38, %s6274_s17  ;;  %4800 = vrot.lane.b32.xlu1 %v4618_v19, %s6273_s16  ;;  %v2535_v2 = vsel %vm1546_vm5, %v2534_v20, %v8257_v58  ;;  %v3199_v58 = vcombine.low %v8156_v32, %v8148_v0  ;;  %v9547_v62 = vld [vmem:[#allocation20_spill] sm:$0xff] }
 0x391   : > { %v5120_v32 = vcombine.high %v8282_v37, %v9393_v15  ;;  %v3695_v38 = vcombine.high %v8415_v28, %v9393_v15  ;;  %v2368_v19 = vcombine.high %v9547_v62, %v9546_v23  ;;  %v1879_v57 = vcombine.low %v9539_v10, %v9538_v40  ;;  %v9550_v40 = vld [vmem:[#allocation55_spill] sm:$0xff]  ;;  %v9551_v10 = vld [vmem:[#allocation21_spill] sm:$0xff] }
 0x392   : > { %v8345_v34 = vpop.permute.xlu0 %1972  ;;  %v2457_v8 = vpop.permute.xlu1 %2456  ;;  %v8387_v56 = vrot.slane %v3199_v58, %v6966_v35  ;;  %v9549_v58 = vld [vmem:[#allocation39_spill] sm:$0xff]  ;;  %v4619_v31 = vcombine.low %v9551_v10, %v9550_v40 }
 0x393   : > { %v2536_v5 = vsel %vm1548_vm6, %v2535_v2, %v2457_v8  ;;  %v8446_v8 = vrot.slane %v1864_v39, %v6618_v59  ;;  %v1863_v2 = vcombine.low %v9542_v26, %v9541_v33  ;;  %v8469_v47 = vrot.slane %v1879_v57, %v6618_v59  ;;  %v9552_v26 = vld [vmem:[#allocation82_spill] sm:$0xff]  ;;  %v9553_v39 = vld [vmem:[#allocation41_spill] sm:$0xff] }
 0x394   : > { %1988 = vrot.lane.b32.xlu0 %v1860_v41, %s6273_s16  ;;  %2556 = vst [vmem:[#allocation3 + $0x108] sm:$0xf] %v2536_v5  ;;  %5304 = vrot.lane.b32.xlu1 %v5122_v60, %s6273_s16  ;;  %9536 = vst [vmem:[#allocation35_spill] sm:$0xff] %v8387_v56  ;;  %v3217_v37 = vcombine.high %v8387_v56, %v9393_v15  ;;  %v3696_v41 = vcombine.high %v8305_v46, %v9393_v15  ;;  %v9567_v56 = vld [vmem:[#allocation19_spill] sm:$0xff] }
 0x395   : > { %v2367_v60 = vcombine.low %v9547_v62, %v9546_v23  ;;  %v2383_v5 = vcombine.low %v9544_v55, %v9543_v1  ;;  %v1912_v46 = vcombine.high %v8446_v8, %v8428_v61  ;;  %v5139_v1 = vcombine.low %v9553_v39, %v9552_v26 }
 0x396   : > { %v8361_v17 = vpop.permute.xlu0 %2476  ;;  %v8367_v36 = vpop.permute.xlu1 %1960 }
 0x397   : > { %v8487_v33 = vrot.slane %v2383_v5, %v6618_v59 }
 0x398   : > { %2484 = vrot.lane.b32.xlu0 %v2363_v24, %s6274_s17  ;;  %4788 = vrot.lane.b32.xlu1 %v4616_v30, %s6273_s16  ;;  %v9548_v24 = vld [vmem:[#allocation81_spill] sm:$0xff] }
 0x399   : > { %v4635_v30 = vcombine.low %v9549_v58, %v9548_v24  ;;  %v4636_v62 = vcombine.high %v9549_v58, %v9548_v24  ;;  %v4620_v24 = vcombine.high %v9551_v10, %v9550_v40 }
 0x39a   : > { %v8375_v11 = vpop.permute.xlu0 %4760  ;;  %v8382_v0 = vpop.permute.xlu1 %2464 }
 0x39b   : > { %v8493_v22 = vrot.slane %v4635_v30, %v6618_v59  ;;  %v8536_v10 = vrot.slane %v4636_v62, %v6618_v59 }
 0x39c   : > { %2492 = vrot.lane.b32.xlu0 %v2364_v18, %s6273_s16  ;;  %5292 = vrot.lane.b32.xlu1 %v5120_v32, %s6273_s16  ;;  %v3215_v18 = vcombine.high %v8435_v12, %v9393_v15  ;;  %v8466_v32 = vrot.slane %v2368_v19, %v6618_v59 }
 0x39e   : > { %v8393_v25 = vpop.permute.xlu0 %5264  ;;  %v8400_v9 = vpop.permute.xlu1 %4772 }
 0x3a0   : > { %4780 = vrot.lane.b32.xlu0 %v4615_v45, %s6274_s17  ;;  %3392 = vrot.lane.b32.xlu1 %v3217_v37, %s6274_s17 }
 0x3a2   : > { %v8410_v6 = vpop.permute.xlu0 %3840  ;;  %v8417_v48 = vpop.permute.xlu1 %5276 }
 0x3a4   : > { %5284 = vrot.lane.b32.xlu0 %v5119_v29, %s6274_s17  ;;  %3880 = vrot.lane.b32.xlu1 %v3698_v54, %s6273_s16  ;;  %v8481_v29 = vrot.slane %v1863_v2, %v6618_v59  ;;  %v8484_v54 = vrot.slane %v2367_v60, %v6618_v59  ;;  %v8510_v2 = vrot.slane %v4619_v31, %v6618_v59  ;;  %v9555_v60 = vld [vmem:[#allocation23_spill] sm:$0xff] }
 0x3a5   : > { %v9558_v31 = vld [vmem:[#allocation43_spill] sm:$0xff] }
 0x3a6   : > { %v8430_v42 = vpop.permute.xlu0 %3360  ;;  %v8441_v20 = vpop.permute.xlu1 %3852  ;;  %v1896_v23 = vcombine.high %v8481_v29, %v8469_v47  ;;  %v2400_v58 = vcombine.high %v8484_v54, %v8487_v33 }
 0x3a8   : > { %3860 = vrot.lane.b32.xlu0 %v3695_v38, %s6274_s17  ;;  %3868 = vrot.lane.b32.xlu1 %v3696_v41, %s6273_s16  ;;  %v8500_v38 = vrot.slane %v1912_v46, %v6966_v35  ;;  %v3216_v41 = vcombine.high %v8319_v44, %v9393_v15  ;;  %v9556_v46 = vld [vmem:[#allocation47_spill] sm:$0xff]  ;;  %v5140_v44 = vcombine.high %v9553_v39, %v9552_v26 }
 0x3aa   : > { %v1957_v43 = vpop.permute.xlu0 %1956  ;;  %v8471_v45 = vpop.permute.xlu1 %3372 }
 0x3ab   : > { %v2033_v37 = vsel %vm1544_vm4, %v7881_v13, %v1957_v43  ;;  %v2416_v13 = vcombine.high %v8466_v32, %v8456_v3 }
 0x3ac   : > { %3380 = vrot.lane.b32.xlu0 %v3215_v18, %s6274_s17  ;;  %3400 = vrot.lane.b32.xlu1 %v3218_v63, %s6273_s16  ;;  %v2034_v55 = vsel %vm1546_vm5, %v2033_v37, %v8367_v36  ;;  %v9554_v36 = vld [vmem:[#allocation57_spill] sm:$0xff]  ;;  %v4652_v18 = vcombine.high %v8510_v2, %v8493_v22  ;;  %v8528_v37 = vrot.slane %v5139_v1, %v6618_v59  ;;  %v9557_v63 = vld [vmem:[#allocation84_spill] sm:$0xff] }
 0x3ad   : > { %v5123_v5 = vcombine.low %v9555_v60, %v9554_v36  ;;  %v8533_v40 = vrot.slane %v2416_v13, %v6966_v35  ;;  %v8543_v1 = vrot.slane %v1896_v23, %v6966_v35  ;;  %v9560_v13 = vld [vmem:[#allocation60_spill] sm:$0xff]  ;;  %v8559_v23 = vrot.slane %v5140_v44, %v6618_v59 }
 0x3ae   : > { %v1965_v52 = vpop.permute.xlu0 %1964  ;;  %v1969_v19 = vpop.permute.xlu1 %1968 }
 0x3af   : > { %v2035_v57 = vsel %vm1548_vm6, %v2034_v55, %v1965_v52  ;;  %v2036_v30 = vsel %vm1544_vm4, %v9556_v46, %v1969_v19  ;;  %v3715_v55 = vcombine.low %v9558_v31, %v9557_v63  ;;  %v9559_v19 = vld [vmem:[#allocation13_spill] sm:$0xff]  ;;  %v8548_v46 = vrot.slane %v5123_v5, %v6618_v59 }
 0x3b0   : > { %v2061_v43 = vrot.slane %v2035_v57, 4  ;;  %2020 = vrot.lane.b32.xlu0 %v8500_v38, %s6272_s15  ;;  %3388 = vrot.lane.b32.xlu1 %v3216_v41, %s6273_s16  ;;  %v2037_v39 = vsel %vm1546_vm5, %v2036_v30, %v8345_v34  ;;  %v5124_v41 = vcombine.high %v9555_v60, %v9554_v36  ;;  %v8556_v34 = vrot.slane %v4620_v24, %v6618_v59 }
 0x3b1   : > { %v5156_v36 = vcombine.high %v8548_v46, %v8528_v37  ;;  %v8566_v60 = vrot.slane %v3715_v55, %v6618_v59  ;;  %v8571_v24 = vrot.slane %v4652_v18, %v6966_v35  ;;  %v8579_v55 = vrot.slane %v2400_v58, %v6966_v35  ;;  %v9562_v18 = vld [vmem:[#allocation72_spill] sm:$0xff] }
 0x3b2   : > { %2077 = vst [vmem:[#allocation3 + $0x10] sm:$0xf0] %v2061_v43  ;;  %v2461_v52 = vpop.permute.xlu0 %2460  ;;  %v1977_v26 = vpop.permute.xlu1 %1976  ;;  %v9561_v43 = vld [vmem:[#allocation25_spill] sm:$0xff]  ;;  %v4668_v44 = vcombine.high %v8556_v34, %v8536_v10  ;;  %v1895_v58 = vcombine.low %v8481_v29, %v8469_v47 }
 0x3b3   : > { %v2537_v57 = vsel %vm1544_vm4, %v9559_v19, %v2461_v52  ;;  %v3699_v62 = vcombine.low %v9561_v43, %v9560_v13  ;;  %v2038_v7 = vsel %vm1548_vm6, %v2037_v39, %v1977_v26  ;;  %v8582_v19 = vrot.slane %v5124_v41, %v6618_v59 }
 0x3b4   : > { %2524 = vrot.lane.b32.xlu0 %v8533_v40, %s6272_s15  ;;  %v2062_v30 = vrot.slane %v2038_v7, 4  ;;  %2008 = vrot.lane.b32.xlu1 %v8543_v1, %s6272_s15  ;;  %v2538_v5 = vsel %vm1546_vm5, %v2537_v57, %v8382_v0  ;;  %v3716_v7 = vcombine.high %v9558_v31, %v9557_v63  ;;  %v3700_v63 = vcombine.high %v9561_v43, %v9560_v13  ;;  %v9563_v13 = vld [vmem:[#allocation85_spill] sm:$0xff] }
 0x3b5   : > { %v8585_v0 = vrot.slane %v3699_v62, %v6618_v59  ;;  %v5172_v31 = vcombine.high %v8582_v19, %v8559_v23  ;;  %v9564_v43 = vld [vmem:[#allocation37_spill] sm:$0xff]  ;;  %v8612_v29 = vrot.slane %v4668_v44, %v6966_v35 }
 0x3b6   : > { %v2469_v52 = vpop.permute.xlu0 %2468  ;;  %2078 = vst [vmem:[#allocation3 + $0x48] sm:$0xf0] %v2062_v30  ;;  %v2473_v26 = vpop.permute.xlu1 %2472  ;;  %v8602_v30 = vrot.slane %v5156_v36, %v6966_v35  ;;  %v8620_v36 = vrot.slane %v3700_v63, %v6618_v59 }
 0x3b7   : > { %v2539_v39 = vsel %vm1548_vm6, %v2538_v5, %v2469_v52  ;;  %v2540_v57 = vsel %vm1544_vm4, %v9562_v18, %v2473_v26  ;;  %v3732_v41 = vcombine.high %v8585_v0, %v8566_v60  ;;  %v8605_v5 = vrot.slane %v3716_v7, %v6618_v59  ;;  %v9565_v18 = vld [vmem:[#allocation28_spill] sm:$0xff]  ;;  %v9566_v7 = vld [vmem:[#allocation63_spill] sm:$0xff] }
 0x3b8   : > { %2557 = vst [vmem:[#allocation3 + $0x138] sm:$0xf] %v2539_v39  ;;  %4808 = vrot.lane.b32.xlu0 %v8571_v24, %s6272_s15  ;;  %2512 = vrot.lane.b32.xlu1 %v8579_v55, %s6272_s15  ;;  %v3236_v52 = vcombine.high %v9564_v43, %v9563_v13  ;;  %v2541_v47 = vsel %vm1546_vm5, %v2540_v57, %v8361_v17 }
 0x3b9   : > { %v3220_v28 = vcombine.high %v9567_v56, %v9566_v7  ;;  %v8627_v44 = vrot.slane %v3732_v41, %v6966_v35  ;;  %v8630_v57 = vrot.slane %v1895_v58, %v6966_v35  ;;  %v9568_v41 = vld [vmem:[#allocation49_spill] sm:$0xff] }
 0x3ba   : > { %v4769_v62 = vpop.permute.xlu0 %4768  ;;  %v2481_v26 = vpop.permute.xlu1 %2480  ;;  %v8635_v63 = vrot.slane %v3236_v52, %v6618_v59 }
 0x3bb   : > { %v2542_v39 = vsel %vm1548_vm6, %v2541_v47, %v2481_v26  ;;  %v4854_v12 = vsel %vm1544_vm4, %v9565_v18, %v4769_v62  ;;  %v3748_v62 = vcombine.high %v8620_v36, %v8605_v5  ;;  %v8648_v58 = vrot.slane %v3220_v28, %v6618_v59 }
 0x3bc   : > { %5312 = vrot.lane.b32.xlu0 %v8602_v30, %s6272_s15  ;;  %2558 = vst [vmem:[#allocation3 + $0xf0] sm:$0xf] %v2542_v39  ;;  %4820 = vrot.lane.b32.xlu1 %v8612_v29, %s6272_s15  ;;  %v4855_v47 = vsel %vm1546_vm5, %v4854_v12, %v8400_v9  ;;  %v8640_v39 = vrot.slane %v5172_v31, %v6966_v35 }
 0x3bd   : > { %v2399_v9 = vcombine.low %v8484_v54, %v8487_v33  ;;  %v1927_v31 = vcombine.high %v8630_v57, %v9393_v15 }
 0x3be   : > { %v5273_v17 = vpop.permute.xlu0 %5272  ;;  %v4777_v26 = vpop.permute.xlu1 %4776 }
 0x3bf   : > { %v4856_v18 = vsel %vm1548_vm6, %v4855_v47, %v4777_v26  ;;  %v5358_v21 = vsel %vm1544_vm4, %v9568_v41, %v5273_v17  ;;  %v1911_v17 = vcombine.low %v8446_v8, %v8428_v61  ;;  %v3268_v26 = vcombine.high %v8648_v58, %v8635_v63 }
 0x3c0   : > { %3888 = vrot.lane.b32.xlu0 %v8627_v44, %s6272_s15  ;;  %v4884_v52 = vrot.slane %v4856_v18, 4  ;;  %5324 = vrot.lane.b32.xlu1 %v8640_v39, %s6272_s15  ;;  %v5359_v47 = vsel %vm1546_vm5, %v5358_v21, %v8417_v48  ;;  %v8663_v18 = vrot.slane %v3748_v62, %v6966_v35  ;;  %v1928_v8 = vcombine.high %v8543_v1, %v9393_v15 }
 0x3c1   : > { %v8672_v33 = vrot.slane %v2399_v9, %v6966_v35  ;;  %v8675_v21 = vrot.slane %v3268_v26, %v6966_v35  ;;  %v8678_v48 = vrot.slane %v1911_v17, %v6966_v35  ;;  %v4667_v62 = vcombine.low %v8556_v34, %v8536_v10  ;;  %v9569_v26 = vld [vmem:[#allocation65_spill] sm:$0xff] }
 0x3c2   : > { %v4757_v12 = vpop.permute.xlu0 %4756  ;;  %4900 = vst [vmem:[#allocation3 + $0x118] sm:$0xf0] %v4884_v52  ;;  %v5281_v28 = vpop.permute.xlu1 %5280  ;;  %v2415_v9 = vcombine.low %v8466_v32, %v8456_v3  ;;  %v5171_v3 = vcombine.low %v8582_v19, %v8559_v23  ;;  %v4651_v23 = vcombine.low %v8510_v2, %v8493_v22 }
 0x3c3   : > { %v5360_v54 = vsel %vm1548_vm6, %v5359_v47, %v5281_v28  ;;  %v2431_v1 = vcombine.high %v8672_v33, %v9393_v15  ;;  %v1929_v28 = vcombine.high %v8678_v48, %v9393_v15 }
 0x3c4   : > { %2004 = vrot.lane.b32.xlu0 %v1927_v31, %s6274_s17  ;;  %5380 = vst [vmem:[#allocation3 + $0x78] sm:$0xf] %v5360_v54  ;;  %3900 = vrot.lane.b32.xlu1 %v8663_v18, %s6272_s15 }
 0x3c6   : > { %v5261_v61 = vpop.permute.xlu0 %5260  ;;  %v3857_v41 = vpop.permute.xlu1 %3856 }
 0x3c8   : > { %2012 = vrot.lane.b32.xlu0 %v1928_v8, %s6273_s16  ;;  %3420 = vrot.lane.b32.xlu1 %v8675_v21, %s6272_s15  ;;  %v2432_v8 = vcombine.high %v8579_v55, %v9393_v15 }
 0x3ca   : > { %v3849_v52 = vpop.permute.xlu0 %3848  ;;  %v3377_v31 = vpop.permute.xlu1 %3376 }
 0x3cb   : > { %v3934_v17 = vsel %vm1544_vm4, %v9569_v26, %v3849_v52  ;;  %v5421_v10 = vld [vmem:[#allocation3 + $0x78] sm:$0xf]  ;;  %v8704_v52 = vrot.slane %v4667_v62, %v6966_v35 }
 0x3cc   : > { %v3935_v47 = vsel %vm1546_vm5, %v3934_v17, %v8441_v20  ;;  %2508 = vrot.lane.b32.xlu0 %v2431_v1, %s6274_s17  ;;  %2016 = vrot.lane.b32.xlu1 %v1929_v28, %s6274_s17  ;;  %v9571_v20 = vld [vmem:[#allocation59_spill] sm:$0xff]  ;;  %v8713_v17 = vrot.slane %v2415_v9, %v6966_v35  ;;  %v9574_v62 = vld [vmem:[#allocation62_spill] sm:$0xff] }
 0x3cd   : > { %v3936_v34 = vsel %vm1548_vm6, %v3935_v47, %v3857_v41  ;;  %5899 = vmatprep.subr.msk.mxu0 %vm5438_vm7, %v5421_v10  ;;  %9570 = vst [vmem:[#allocation70_spill] sm:$0xff] %v8704_v52  ;;  %v4851_v1 = vsel %vm1544_vm4, %v9571_v20, %v4757_v12  ;;  %v1930_v41 = vcombine.high %v8500_v38, %v9393_v15 }
 0x3ce   : > { %v3964_v32 = vrot.slane %v3936_v34, 4  ;;  %v3837_v54 = vpop.permute.xlu0 %3836  ;;  %v8708_v26 = vpop.permute.xlu1 %1984  ;;  %9572 = vst [vmem:[#allocation30_spill] sm:$0xff] %v8713_v17  ;;  %v4852_v55 = vsel %vm1546_vm5, %v4851_v1, %v8375_v11  ;;  %v4685_v12 = vcombine.high %v8704_v52, %v9393_v15  ;;  %v8724_v38 = vrot.slane %v5171_v3, %v6966_v35 }
 0x3cf   : > { %v5355_v9 = vsel %vm1544_vm4, %v9574_v62, %v5261_v61  ;;  %v2433_v22 = vcombine.high %v8713_v17, %v9393_v15  ;;  %v5155_v11 = vcombine.low %v8548_v46, %v8528_v37  ;;  %v8742_v3 = vrot.slane %v4651_v23, %v6966_v35  ;;  %v9576_v37 = vld [vmem:[#allocation87_spill] sm:$0xff]  ;;  %v9577_v46 = vld [vmem:[#allocation42_spill] sm:$0xff] }
 0x3d0   : > { %3980 = vst [vmem:[#allocation3 + $0x110] sm:$0xf0] %v3964_v32  ;;  %2516 = vrot.lane.b32.xlu0 %v2432_v8, %s6273_s16  ;;  %2024 = vrot.lane.b32.xlu1 %v1930_v41, %s6273_s16  ;;  %9573 = vst [vmem:[#allocation46_spill] sm:$0xff] %v8724_v38  ;;  %v5356_v10 = vsel %vm1546_vm5, %v5355_v9, %v8393_v25  ;;  %v5189_v34 = vcombine.high %v8724_v38, %v9393_v15  ;;  %v9580_v9 = vld [vmem:[#allocation58_spill] sm:$0xff] }
 0x3d1   : > { %9575 = vst [vmem:[#allocation12_spill] sm:$0xff] %v8742_v3  ;;  %v2434_v20 = vcombine.high %v8533_v40, %v9393_v15  ;;  %v3747_v25 = vcombine.low %v8620_v36, %v8605_v5  ;;  %v4704_v1 = vcombine.high %v9577_v46, %v9576_v37  ;;  %v4683_v23 = vcombine.high %v8742_v3, %v9393_v15  ;;  %v9579_v40 = vld [vmem:[#allocation69_spill] sm:$0xff]  ;;  %v9581_v5 = vld [vmem:[#allocation24_spill] sm:$0xff] }
 0x3d2   : > { %v4765_v19 = vpop.permute.xlu0 %4764  ;;  %v8728_v28 = vpop.permute.xlu1 %2488  ;;  %v4686_v62 = vcombine.high %v8612_v29, %v9393_v15  ;;  %v4688_v36 = vcombine.high %v9581_v5, %v9580_v9  ;;  %v3235_v52 = vcombine.low %v9564_v43, %v9563_v13  ;;  %v9595_v13 = vld [vmem:[#allocation40_spill] sm:$0xff] }
 0x3d3   : > { %v4853_v47 = vsel %vm1548_vm6, %v4852_v55, %v4765_v19  ;;  %v8758_v55 = vrot.slane %v5155_v11, %v6966_v35  ;;  %v8776_v11 = vrot.slane %v4704_v1, %v6618_v59 }
 0x3d4   : > { %v4883_v2 = vrot.slane %v4853_v47, 4  ;;  %4816 = vrot.lane.b32.xlu0 %v4685_v12, %s6274_s17  ;;  %2520 = vrot.lane.b32.xlu1 %v2433_v22, %s6274_s17  ;;  %v8792_v1 = vrot.slane %v4688_v36, %v6618_v59 }
 0x3d5   : > { %9578 = vst [vmem:[#allocation71_spill] sm:$0xff] %v8758_v55 }
 0x3d6   : > { %4899 = vst [vmem:[#allocation3 + $0xc0] sm:$0xf0] %v4883_v2  ;;  %v5269_v61 = vpop.permute.xlu0 %5268  ;;  %v8744_v32 = vpop.permute.xlu1 %4796  ;;  %v3731_v2 = vcombine.low %v8585_v0, %v8566_v60  ;;  %v5190_v60 = vcombine.high %v8640_v39, %v9393_v15  ;;  %v4736_v39 = vcombine.high %v8792_v1, %v8776_v11 }
 0x3d7   : > { %v5357_v8 = vsel %vm1548_vm6, %v5356_v10, %v5269_v61  ;;  %v5187_v10 = vcombine.high %v8758_v55, %v9393_v15  ;;  %v8781_v61 = vrot.slane %v3747_v25, %v6966_v35  ;;  %v5413_v25 = vld [vmem:[#allocation3 + $0x118] sm:$0xff] }
 0x3d8   : > { %5379 = vst [vmem:[#allocation3 + $0x58] sm:$0xf] %v5357_v8  ;;  %5320 = vrot.lane.b32.xlu0 %v5189_v34, %s6274_s17  ;;  %2528 = vrot.lane.b32.xlu1 %v2434_v20, %s6273_s16  ;;  %v9584_v34 = vld [vmem:[#allocation44_spill] sm:$0xff] }
 0x3d9   : > { %9582 = vst [vmem:[#allocation32_spill] sm:$0xff] %v8781_v61 }
 0x3da   : > { %v3369_v41 = vpop.permute.xlu0 %3368  ;;  %v8760_v19 = vpop.permute.xlu1 %5300 }
 0x3db   : > { %v3454_v12 = vsel %vm1544_vm4, %v9579_v40, %v3369_v41  ;;  %v9587_v40 = vld [vmem:[#allocation26_spill] sm:$0xff] }
 0x3dc   : > { %v3455_v47 = vsel %vm1546_vm5, %v3454_v12, %v8471_v45  ;;  %4804 = vrot.lane.b32.xlu0 %v4683_v23, %s6274_s17  ;;  %4824 = vrot.lane.b32.xlu1 %v4686_v62, %s6273_s16  ;;  %v9583_v45 = vld [vmem:[#allocation89_spill] sm:$0xff]  ;;  %v3766_v62 = vcombine.high %v8663_v18, %v9393_v15 }
 0x3dd   : > { %v3456_v22 = vsel %vm1548_vm6, %v3455_v47, %v3377_v31  ;;  %v5208_v8 = vcombine.high %v9584_v34, %v9583_v45  ;;  %v9585_v31 = vld [vmem:[#allocation67_spill] sm:$0xff]  ;;  %v9586_v23 = vld [vmem:[#allocation61_spill] sm:$0xff] }
 0x3de   : > { %3476 = vst [vmem:[#allocation3 + $0x110] sm:$0xf] %v3456_v22  ;;  %v3357_v29 = vpop.permute.xlu0 %3356  ;;  %v3931_v20 = vsel %vm1544_vm4, %v9585_v31, %v3837_v54  ;;  %v8787_v41 = vpop.permute.xlu1 %3876  ;;  %v5192_v12 = vcombine.high %v9587_v40, %v9586_v23  ;;  %v5412_v54 = vld [vmem:[#allocation3 + $0xc0] sm:$0xff]  ;;  %v3765_v22 = vcombine.high %v8781_v61, %v9393_v15 }
 0x3df   : > { %v5420_v0 = vld [vmem:[#allocation3 + $0x58] sm:$0xf]  ;;  %v3932_v36 = vsel %vm1546_vm5, %v3931_v20, %v8410_v6  ;;  %v8811_v31 = vrot.slane %v5208_v8, %v6618_v59  ;;  %v9593_v61 = vld [vmem:[#allocation27_spill] sm:$0xff] }
 0x3e0   : > { %5308 = vrot.lane.b32.xlu0 %v5187_v10, %s6274_s17  ;;  %5900 = vmatpush1.msk.msra.mxu0 %vm5438_vm7, %v5420_v0  ;;  %v8808_v10 = vrot.slane %v3731_v2, %v6966_v35  ;;  %v9590_v0 = vld [vmem:[#allocation45_spill] sm:$0xff]  ;;  %v8822_v3 = vrot.slane %v5192_v12, %v6618_v59  ;;  %v9592_v2 = vld [vmem:[#allocation64_spill] sm:$0xff] }
 0x3e1   : > { %5328 = vrot.lane.b32.xlu1 %v5190_v60, %s6273_s16  ;;  %5487 = vmatprep.subr.mxu0 %v5413_v25  ;;  %v9589_v60 = vld [vmem:[#allocation90_spill] sm:$0xff]  ;;  %v3768_v8 = vcombine.high %v9593_v61, %v9592_v2 }
 0x3e2   : > { %5488 = vmatpush1.msra.mxu0 %v5412_v54  ;;  %v3845_v47 = vpop.permute.xlu0 %3844  ;;  %9588 = vst [vmem:[#allocation48_spill] sm:$0xff] %v8808_v10  ;;  %v3784_v18 = vcombine.high %v9590_v0, %v9589_v60  ;;  %v9591_v25 = vld [vmem:[#allocation34_spill] sm:$0xff]  ;;  %v8817_v54 = vpop.permute.xlu1 %3396  ;;  %v3763_v12 = vcombine.high %v8808_v10, %v9393_v15 }
 0x3e3   : > { %v3451_v55 = vsel %vm1544_vm4, %v9591_v25, %v3357_v29  ;;  %v3933_v6 = vsel %vm1548_vm6, %v3932_v36, %v3845_v47  ;;  %v8832_v47 = vrot.slane %v4736_v39, %v6966_v35  ;;  %v9594_v25 = vld [vmem:[#allocation31_spill] sm:$0xff]  ;;  %v9596_v39 = vld [vmem:[#allocation66_spill] sm:$0xff] }
 0x3e4   : > { %v3963_v20 = vrot.slane %v3933_v6, 4  ;;  %3896 = vrot.lane.b32.xlu0 %v3765_v22, %s6274_s17  ;;  %v3452_v29 = vsel %vm1546_vm5, %v3451_v55, %v8430_v42  ;;  %v5240_v22 = vcombine.high %v8822_v3, %v8811_v31  ;;  %v3304_v43 = vcombine.high %v9595_v13, %v9594_v25 }
 0x3e5   : > { %3904 = vrot.lane.b32.xlu1 %v3766_v62, %s6273_s16  ;;  %v5405_v38 = vld [vmem:[#allocation3 + $0x110] sm:$0xff]  ;;  %v8839_v62 = vrot.slane %v3784_v18, %v6618_v59  ;;  %v3219_v42 = vcombine.low %v9567_v56, %v9566_v7  ;;  %v8848_v55 = vrot.slane %v3768_v8, %v6618_v59  ;;  %v8855_v18 = vrot.slane %v3235_v52, %v6618_v59 }
 0x3e6   : > { %3979 = vst [vmem:[#allocation3 + $0x128] sm:$0xf0] %v3963_v20  ;;  %5489 = vmatprep.subr.mxu0 %v5405_v38  ;;  %v3365_v36 = vpop.permute.xlu0 %3364  ;;  %v1993_v38 = vpop.permute.xlu1 %1992  ;;  %v9597_v20 = vld [vmem:[#allocation22_spill] sm:$0xff]  ;;  %v4684_v8 = vcombine.high %v8571_v24, %v9393_v15  ;;  %v8870_v17 = vrot.slane %v5240_v22, %v6966_v35  ;;  %v5188_v22 = vcombine.high %v8602_v30, %v9393_v15  ;;  %v5397_v30 = vld [vmem:[#allocation3 + $0x108] sm:$0xff] }
 0x3e7   : > { %v3453_v6 = vsel %vm1548_vm6, %v3452_v29, %v3365_v36  ;;  %v3288_v10 = vcombine.high %v9597_v20, %v9596_v39  ;;  %v3267_v29 = vcombine.low %v8648_v58, %v8635_v63  ;;  %v2042_v56 = vsel %vm1544_vm4, %v8186_v53, %v1993_v38 }
 0x3e8   : > { %3475 = vst [vmem:[#allocation3 + $0x128] sm:$0xf] %v3453_v6  ;;  %3884 = vrot.lane.b32.xlu0 %v3763_v12, %s6274_s17  ;;  %v3816_v36 = vcombine.high %v8848_v55, %v8839_v62  ;;  %v8866_v12 = vrot.slane %v3304_v43, %v6618_v59  ;;  %v8873_v63 = vrot.slane %v3219_v42, %v6618_v59 }
 0x3e9   : > { %4844 = vrot.lane.b32.xlu1 %v8832_v47, %s6272_s15  ;;  %v8878_v24 = vrot.slane %v3288_v10, %v6618_v59  ;;  %v8887_v42 = vrot.slane %v3267_v29, %v6966_v35 }
 0x3ea   : > { %v1997_v7 = vpop.permute.xlu0 %1996  ;;  %v2001_v6 = vpop.permute.xlu1 %2000  ;;  %v3251_v43 = vcombine.low %v8873_v63, %v8855_v18 }
 0x3eb   : > { %v2043_v52 = vsel %vm1546_vm5, %v2042_v56, %v1997_v7  ;;  %v4735_v56 = vcombine.low %v8792_v1, %v8776_v11  ;;  %v3336_v10 = vcombine.high %v8878_v24, %v8866_v12  ;;  %v5396_v11 = vld [vmem:[#allocation3 + $0x80] sm:$0xff]  ;;  %v4703_v1 = vcombine.low %v9577_v46, %v9576_v37 }
 0x3ec   : > { %v2044_v53 = vsel %vm1548_vm6, %v2043_v52, %v2001_v6  ;;  %4812 = vrot.lane.b32.xlu0 %v4684_v8, %s6273_s16  ;;  %v8894_v8 = vrot.slane %v3816_v36, %v6966_v35  ;;  %v5389_v36 = vld [vmem:[#allocation3 + $0xd0] sm:$0xff] }
 0x3ed   : > { %v2064_v58 = vrot.slane %v2044_v53, 4  ;;  %5348 = vrot.lane.b32.xlu1 %v8870_v17, %s6272_s15  ;;  %v3285_v53 = vcombine.high %v8887_v42, %v9393_v15 }
 0x3ee   : > { %v2501_v38 = vpop.permute.xlu0 %2500  ;;  %v2497_v7 = vpop.permute.xlu1 %2496 }
 0x3ef   : > { %2080 = vst [vmem:[#allocation3 + $0x38] sm:$0xf0] %v2064_v58  ;;  %v5404_v6 = vld [vmem:[#allocation3 + $0x128] sm:$0xff]  ;;  %v2546_v52 = vsel %vm1544_vm4, %v8218_v50, %v2497_v7  ;;  %v8908_v50 = vrot.slane %v3251_v43, %v6966_v35  ;;  %v8913_v58 = vld [vmem:[%s9262_s3] sm:$0xff]  ;;  %v8919_v7 = vrot.slane %v3336_v10, %v6966_v35  ;;  %v8922_v43 = vrot.slane %v4735_v56, %v6966_v35 }
 0x3f0   : > { %5316 = vrot.lane.b32.xlu0 %v5188_v22, %s6273_s16  ;;  %5490 = vmatpush1.msra.mxu0 %v5404_v6  ;;  %v5239_v22 = vcombine.low %v8822_v3, %v8811_v31  ;;  %v2547_v37 = vsel %vm1546_vm5, %v2546_v52, %v2501_v38  ;;  %v5388_v6 = vld [vmem:[#allocation3 + $0xb0] sm:$0xff]  ;;  %v4711_v3 = vrot.slane %v4703_v1, %v6618_v59 }
 0x3f1   : > { %3924 = vrot.lane.b32.xlu1 %v8894_v8, %s6272_s15  ;;  %5491 = vmatprep.subr.mxu0 %v5397_v30  ;;  %v4687_v30 = vcombine.low %v9581_v5, %v9580_v9  ;;  %v5207_v31 = vcombine.low %v9584_v34, %v9583_v45  ;;  %v3283_v9 = vcombine.high %v8908_v50, %v9393_v15 }
 0x3f2   : > { %5492 = vmatpush1.msra.mxu0 %v5396_v11  ;;  %v8903_v29 = vpop.permute.xlu0 %4784  ;;  %v2505_v46 = vpop.permute.xlu1 %2504  ;;  %v3815_v5 = vcombine.low %v8848_v55, %v8839_v62  ;;  %v4753_v10 = vcombine.high %v8922_v43, %v9393_v15  ;;  %v8945_v52 = vrot.slane %v5239_v22, %v6966_v35  ;;  %v5191_v45 = vcombine.low %v9587_v40, %v9586_v23 }
 0x3f3   : > { %5493 = vmatprep.subr.mxu0 %v5389_v36  ;;  %v2548_v11 = vsel %vm1548_vm6, %v2547_v37, %v2505_v46  ;;  %v4695_v1 = vrot.slane %v4687_v30, %v6618_v59  ;;  %v5215_v36 = vrot.slane %v5207_v31, %v6618_v59  ;;  %v3783_v62 = vcombine.low %v9590_v0, %v9589_v60 }
 0x3f4   : > { %3416 = vrot.lane.b32.xlu0 %v3285_v53, %s6274_s17  ;;  %5494 = vmatpush1.msra.mxu0 %v5388_v6  ;;  %2560 = vst [vmem:[#allocation3 + $0xc8] sm:$0xf] %v2548_v11  ;;  %v3764_v53 = vcombine.high %v8627_v44, %v9393_v15  ;;  %v5257_v37 = vcombine.high %v8945_v52, %v9393_v15 }
 0x3f5   : > { %3444 = vrot.lane.b32.xlu1 %v8919_v7, %s6272_s15  ;;  %5901 = vmatmul.mubr.msk.f32.vlgmr.msra.gmra.mxu0 %vm5434_vm8, %v8913_v58  ;;  %v4720_v34 = vcombine.high %v4695_v1, %v4711_v3  ;;  %v8962_v23 = vrot.slane %v3815_v5, %v6966_v35  ;;  %v5199_v40 = vrot.slane %v5191_v45, %v6618_v59 }
 0x3f6   : > { %v8935_v38 = vpop.permute.xlu0 %5288  ;;  %5669 = vmatprep.mubr.f32.mxu0 %v9393_v15  ;;  %v4793_v56 = vpop.permute.xlu1 %4792  ;;  %v3767_v46 = vcombine.low %v9593_v61, %v9592_v2  ;;  %v3791_v0 = vrot.slane %v3783_v62, %v6618_v59  ;;  %v4719_v2 = vcombine.low %v4695_v1, %v4711_v3 }
 0x3f7   : > { %v5224_v60 = vcombine.high %v5199_v40, %v5215_v36  ;;  %v4734_v6 = vrot.slane %v4720_v34, %v6966_v35  ;;  %v3833_v11 = vcombine.high %v8962_v23, %v9393_v15  ;;  %v4860_v61 = vsel %vm1544_vm4, %v8266_v51, %v4793_v56 }
 0x3f8   : > { %3404 = vrot.lane.b32.xlu0 %v3283_v9, %s6274_s17  ;;  %v3775_v31 = vrot.slane %v3767_v46, %v6618_v59  ;;  %v4861_v45 = vsel %vm1546_vm5, %v4860_v61, %v8744_v32  ;;  %v8995_v1 = vrot.slane %v4719_v2, %v6966_v35  ;;  %v5223_v32 = vcombine.low %v5199_v40, %v5215_v36 }
 0x3f9   : > { %4840 = vrot.lane.b32.xlu1 %v4753_v10, %s6274_s17  ;;  %v5238_v10 = vrot.slane %v5224_v60, %v6966_v35  ;;  %v5258_v36 = vcombine.high %v8870_v17, %v9393_v15 }
 0x3fa   : > { %v8955_v55 = vpop.permute.xlu0 %3864  ;;  %v5297_v22 = vpop.permute.xlu1 %5296  ;;  %v3800_v9 = vcombine.high %v3775_v31, %v3791_v0  ;;  %v3799_v40 = vcombine.low %v3775_v31, %v3791_v0  ;;  %v4751_v17 = vcombine.high %v8995_v1, %v9393_v15  ;;  %v4752_v0 = vcombine.high %v4734_v6, %v9393_v15 }
 0x3fb   : > { %v5364_v51 = vsel %vm1544_vm4, %v8291_v4, %v5297_v22 }
 0x3fc   : > { %3892 = vrot.lane.b32.xlu0 %v3764_v53, %s6273_s16  ;;  %v4754_v53 = vcombine.high %v8832_v47, %v9393_v15  ;;  %v9002_v4 = vrot.slane %v3800_v9, %v6966_v35  ;;  %v5365_v22 = vsel %vm1546_vm5, %v5364_v51, %v8760_v19 }
 0x3fd   : > { %5344 = vrot.lane.b32.xlu1 %v5257_v37, %s6274_s17 }
 0x3fe   : > { %v8970_v44 = vpop.permute.xlu0 %3384  ;;  %v8973_v30 = vpop.permute.xlu1 %3872 }
 0x400   : > { %4832 = vrot.lane.b32.xlu0 %v4734_v6, %s6272_s15 }
 0x401   : > { %3920 = vrot.lane.b32.xlu1 %v3833_v11, %s6274_s17 }
 0x402   : > { %v1981_v5 = vpop.permute.xlu0 %1980  ;;  %v4801_v34 = vpop.permute.xlu1 %4800 }
 0x403   : > { %v2039_v62 = vsel %vm1544_vm4, %v8322_v14, %v1981_v5  ;;  %v4862_v3 = vsel %vm1548_vm6, %v4861_v45, %v4801_v34  ;;  %v3303_v14 = vcombine.low %v9595_v13, %v9594_v25  ;;  %v3287_v25 = vcombine.low %v9597_v20, %v9596_v39 }
 0x404   : > { %5336 = vrot.lane.b32.xlu0 %v5238_v10, %s6272_s15  ;;  %v4886_v56 = vrot.slane %v4862_v3, 4  ;;  %v2040_v47 = vsel %vm1546_vm5, %v2039_v62, %v8708_v26  ;;  %v9021_v39 = vrot.slane %v5223_v32, %v6966_v35  ;;  %v3335_v20 = vcombine.low %v8878_v24, %v8866_v12 }
 0x405   : > { %4848 = vrot.lane.b32.xlu1 %v4754_v53, %s6273_s16  ;;  %v9016_v19 = vrot.slane %v3303_v14, %v6618_v59  ;;  %v9029_v31 = vrot.slane %v3287_v25, %v6618_v59  ;;  %v5256_v45 = vcombine.high %v5238_v10, %v9393_v15  ;;  %v3940_v32 = vsel %vm1544_vm4, %v8311_v49, %v8973_v30 }
 0x406   : > { %v1989_v37 = vpop.permute.xlu0 %1988  ;;  %4902 = vst [vmem:[#allocation3 + $0xa0] sm:$0xf0] %v4886_v56  ;;  %v5305_v46 = vpop.permute.xlu1 %5304  ;;  %v5255_v24 = vcombine.high %v9021_v39, %v9393_v15  ;;  %v9045_v34 = vrot.slane %v3335_v20, %v6966_v35  ;;  %v9600_v20 = vld [vmem:[#allocation53_spill] sm:$0xff] }
 0x407   : > { %v2041_v60 = vsel %vm1548_vm6, %v2040_v47, %v1989_v37  ;;  %v5366_v13 = vsel %vm1548_vm6, %v5365_v22, %v5305_v46  ;;  %v3319_v9 = vcombine.low %v9029_v31, %v9016_v19  ;;  %v3941_v46 = vsel %vm1546_vm5, %v3940_v32, %v8787_v41 }
 0x408   : > { %v2063_v26 = vrot.slane %v2041_v60, 4  ;;  %3912 = vrot.lane.b32.xlu0 %v9002_v4, %s6272_s15  ;;  %5382 = vst [vmem:[#allocation3 + $0x40] sm:$0xf] %v5366_v13  ;;  %v3353_v56 = vcombine.high %v9045_v34, %v9393_v15  ;;  %v3252_v41 = vcombine.high %v8873_v63, %v8855_v18  ;;  %v3320_v63 = vcombine.high %v9029_v31, %v9016_v19 }
 0x409   : > { %5352 = vrot.lane.b32.xlu1 %v5258_v36, %s6273_s16  ;;  %v9053_v51 = vrot.slane %v3319_v9, %v6966_v35  ;;  %v9598_v36 = vld [vmem:[#allocation76_spill] sm:$0xff] }
 0x40a   : > { %2079 = vst [vmem:[#allocation3 + $0x120] sm:$0xf0] %v2063_v26  ;;  %v2485_v11 = vpop.permute.xlu0 %2484  ;;  %v4789_v61 = vpop.permute.xlu1 %4788 }
 0x40b   : > { %v2543_v2 = vsel %vm1544_vm4, %v8350_v27, %v2485_v11  ;;  %v9040_v27 = vrot.slane %v3799_v40, %v6966_v35 }
 0x40c   : > { %4828 = vrot.lane.b32.xlu0 %v4751_v17, %s6274_s17  ;;  %v2544_v5 = vsel %vm1546_vm5, %v2543_v2, %v8728_v28  ;;  %v9601_v2 = vld [vmem:[#allocation35_spill] sm:$0xff] }
 0x40d   : > { %4836 = vrot.lane.b32.xlu1 %v4752_v0, %s6273_s16  ;;  %v3831_v53 = vcombine.high %v9040_v27, %v9393_v15 }
 0x40e   : > { %v2493_v12 = vpop.permute.xlu0 %2492  ;;  %v5293_v6 = vpop.permute.xlu1 %5292 }
 0x40f   : > { %v2545_v59 = vsel %vm1548_vm6, %v2544_v5, %v2493_v12  ;;  %v5423_v62 = vld [vmem:[#allocation3 + $0x40] sm:$0xf] }
 0x410   : > { %2559 = vst [vmem:[#allocation3 + $0x18] sm:$0xf] %v2545_v59  ;;  %5332 = vrot.lane.b32.xlu0 %v5255_v24, %s6274_s17  ;;  %5902 = vmatprep.subr.msk.mxu1 %vm5438_vm7, %v5423_v62  ;;  %v3266_v24 = vrot.slane %v3252_v41, %v6966_v35  ;;  %v9602_v59 = vld [vmem:[#allocation83_spill] sm:$0xff]  ;;  %v9603_v62 = vld [vmem:[#allocation17_spill] sm:$0xff] }
 0x411   : > { %5340 = vrot.lane.b32.xlu1 %v5256_v45, %s6273_s16 }
 0x412   : > { %v4781_v28 = vpop.permute.xlu0 %4780  ;;  %v3393_v3 = vpop.permute.xlu1 %3392 }
 0x413   : > { %v4857_v10 = vsel %vm1544_vm4, %v8380_v16, %v4781_v28  ;;  %v3351_v16 = vcombine.high %v9053_v51, %v9393_v15  ;;  %v3460_v0 = vsel %vm1544_vm4, %v9601_v2, %v3393_v3 }
 0x414   : > { %v4858_v14 = vsel %vm1546_vm5, %v4857_v10, %v8903_v29  ;;  %3908 = vrot.lane.b32.xlu0 %v3831_v53, %s6274_s17  ;;  %v3834_v29 = vcombine.high %v8894_v8, %v9393_v15  ;;  %v9599_v8 = vld [vmem:[#allocation75_spill] sm:$0xff]  ;;  %v3334_v53 = vrot.slane %v3320_v63, %v6966_v35  ;;  %v3284_v35 = vcombine.high %v3266_v24, %v9393_v15 }
 0x415   : > { %v4859_v47 = vsel %vm1548_vm6, %v4858_v14, %v4789_v61  ;;  %3440 = vrot.lane.b32.xlu1 %v3353_v56, %s6274_s17  ;;  %v4204_v11 = vcombine.high %v9599_v8, %v9393_v15  ;;  %v3832_v61 = vcombine.high %v9002_v4, %v9393_v15  ;;  %v3461_v4 = vsel %vm1546_vm5, %v3460_v0, %v8817_v54  ;;  %v5415_v54 = vld [vmem:[#allocation3 + $0xa0] sm:$0xff] }
 0x416   : > { %v4885_v37 = vrot.slane %v4859_v47, 4  ;;  %v5285_v22 = vpop.permute.xlu0 %5284  ;;  %v3881_v60 = vpop.permute.xlu1 %3880  ;;  %v3286_v56 = vcombine.high %v8675_v21, %v9393_v15 }
 0x417   : > { %v5361_v49 = vsel %vm1544_vm4, %v9598_v36, %v5285_v22  ;;  %v3942_v30 = vsel %vm1548_vm6, %v3941_v46, %v3881_v60  ;;  %v3352_v46 = vcombine.high %v3334_v53, %v9393_v15  ;;  %v5399_v36 = vld [vmem:[#allocation3 + $0xf0] sm:$0xff] }
 0x418   : > { %4901 = vst [vmem:[#allocation3 + $0xd8] sm:$0xf0] %v4885_v37  ;;  %v5362_v25 = vsel %vm1546_vm5, %v5361_v49, %v8935_v38  ;;  %3428 = vrot.lane.b32.xlu0 %v3351_v16, %s6274_s17  ;;  %v3966_v13 = vrot.slane %v3942_v30, 4  ;;  %v5398_v49 = vld [vmem:[#allocation3 + $0x138] sm:$0xff] }
 0x419   : > { %v5363_v26 = vsel %vm1548_vm6, %v5362_v25, %v5293_v6  ;;  %3928 = vrot.lane.b32.xlu1 %v3834_v29, %s6273_s16  ;;  %v5391_v25 = vld [vmem:[#allocation3 + $0x48] sm:$0xff] }
 0x41a   : > { %5381 = vst [vmem:[#allocation3 + $0x30] sm:$0xf] %v5363_v26  ;;  %v3861_v40 = vpop.permute.xlu0 %3860  ;;  %3982 = vst [vmem:[#allocation3 + $0x98] sm:$0xf0] %v3966_v13  ;;  %v3869_v17 = vpop.permute.xlu1 %3868  ;;  %v6275_v13 = vmov 0   ;;  %v5390_v26 = vld [vmem:[#allocation3 + $0x10] sm:$0xff] }
 0x41b   : > { %v3937_v38 = vsel %vm1544_vm4, %v9600_v20, %v3861_v40  ;;  %6164 = vset.pattern.permute.xlu0 %v6275_v13 }
 0x41c   : > { %v3938_v9 = vsel %vm1546_vm5, %v3937_v38, %v8955_v55  ;;  %4332 = vrot.lane.b32.xlu0 %v4204_v11, %s6273_s16  ;;  %v4272_v55 = vcombine.high %v9602_v59, %v9393_v15 }
 0x41d   : > { %v3939_v18 = vsel %vm1548_vm6, %v3938_v9, %v3869_v17  ;;  %3916 = vrot.lane.b32.xlu1 %v3832_v61, %s6273_s16 }
 0x41e   : > { %v3965_v5 = vrot.slane %v3939_v18, 4  ;;  %v3381_v12 = vpop.permute.xlu0 %3380  ;;  %v3401_v6 = vpop.permute.xlu1 %3400 }
 0x41f   : > { %v3462_v45 = vsel %vm1548_vm6, %v3461_v4, %v3401_v6  ;;  %v3457_v28 = vsel %vm1544_vm4, %v9603_v62, %v3381_v12  ;;  %v5414_v32 = vld [vmem:[#allocation3 + $0xd8] sm:$0xff] }
 0x420   : > { %3981 = vst [vmem:[#allocation3 + $0x8] sm:$0xf0] %v3965_v5  ;;  %3408 = vrot.lane.b32.xlu0 %v3266_v24, %s6272_s15  ;;  %3478 = vst [vmem:[#allocation3 + $0x98] sm:$0xf] %v3462_v45  ;;  %v3458_v10 = vsel %vm1546_vm5, %v3457_v28, %v8970_v44  ;;  %v3354_v44 = vcombine.high %v8919_v7, %v9393_v15  ;;  %v5428_v7 = vld [vmem:[%s9263_s4] sm:$0xff]  ;;  %v9604_v62 = vld [vmem:[#allocation30_spill] sm:$0xff] }
 0x421   : > { %4356 = vrot.lane.b32.xlu1 %v4272_v55, %s6273_s16  ;;  %v5422_v19 = vld [vmem:[#allocation3 + $0x30] sm:$0xf] }
 0x422   : > { %5903 = vmatpush1.msk.msra.mxu1 %vm5438_vm7, %v5422_v19  ;;  %v2021_v31 = vpop.permute.xlu0 %2020  ;;  %v3389_v3 = vpop.permute.xlu1 %3388 }
 0x423   : > { %5558 = vmatprep.subr.mxu1 %v5415_v54  ;;  %v3459_v14 = vsel %vm1548_vm6, %v3458_v10, %v3389_v3  ;;  %v9605_v54 = vld [vmem:[#allocation70_spill] sm:$0xff] }
 0x424   : > { %3432 = vrot.lane.b32.xlu0 %v3334_v53, %s6272_s15  ;;  %5559 = vmatpush1.msra.mxu1 %v5414_v32  ;;  %3477 = vst [vmem:[#allocation3 + $0x8] sm:$0xf] %v3459_v14  ;;  %v9606_v32 = vld [vmem:[#allocation46_spill] sm:$0xff] }
 0x425   : > { %3424 = vrot.lane.b32.xlu1 %v3286_v56, %s6273_s16 }
 0x426   : > { %v2525_v47 = vpop.permute.xlu0 %2524  ;;  %v2009_v37 = vpop.permute.xlu1 %2008 }
 0x427   : > { %v5407_v22 = vld [vmem:[#allocation3 + $0x98] sm:$0xff] }
 0x428   : > { %3412 = vrot.lane.b32.xlu0 %v3284_v35, %s6273_s16  ;;  %5560 = vmatprep.subr.mxu1 %v5407_v22 }
 0x429   : > { %3448 = vrot.lane.b32.xlu1 %v3354_v44, %s6273_s16 }
 0x42a   : > { %v9122_v21 = vpop.permute.xlu0 %4808  ;;  %v2513_v16 = vpop.permute.xlu1 %2512 }
 0x42b   : > { %v5406_v60 = vld [vmem:[#allocation3 + $0x8] sm:$0xff] }
 0x42c   : > { %5561 = vmatpush1.msra.mxu1 %v5406_v60  ;;  %5431 = vperm.xlu0 %6164, %v5428_v7  }
 0x42d   : > { %3436 = vrot.lane.b32.xlu1 %v3352_v46, %s6273_s16  ;;  %5562 = vmatprep.subr.mxu1 %v5399_v36  ;;  %v9607_v36 = vld [vmem:[#allocation32_spill] sm:$0xff] }
 0x42e   : > { %v9126_v29 = vpop.permute.xlu0 %5312  ;;  %v4821_v30 = vpop.permute.xlu1 %4820  ;;  %5563 = vmatpush1.msra.mxu1 %v5398_v49 }
 0x42f   : > { %5564 = vmatprep.subr.mxu1 %v5391_v25 }
 0x430   : > { %5565 = vmatpush1.msra.mxu1 %v5390_v26  ;;  %v9608_v26 = vld [vmem:[#allocation12_spill] sm:$0xff] }
 0x431   : > { %5904 = vmatmul.mubr.msk.f32.vlgmr.msra.gmra.mxu1 %vm5434_vm8, %v8913_v58 }
 0x432   : > { %v9131_v41 = vpop.permute.xlu0 %3888  ;;  %v5325_v40 = vpop.permute.xlu1 %5324  ;;  %5740 = vmatprep.mubr.f32.mxu1 %v9393_v15 }
 0x436   : > { %v2005_v8 = vpop.permute.xlu0 %2004  ;;  %v3901_v11 = vpop.permute.xlu1 %3900 }
 0x437   : > { %v2045_v17 = vsel %vm1544_vm4, %v8630_v57, %v2005_v8 }
 0x438   : > { %v2046_v20 = vsel %vm1546_vm5, %v2045_v17, %v2009_v37 }
 0x43a   : > { %v2013_v38 = vpop.permute.xlu0 %2012  ;;  %v9139_v61 = vpop.permute.xlu1 %3420 }
 0x43b   : > { %v2047_v2 = vsel %vm1548_vm6, %v2046_v20, %v2013_v38 }
 0x43c   : > { %v2065_v0 = vrot.slane %v2047_v2, 4  ;;  %v9609_v2 = vld [vmem:[#allocation71_spill] sm:$0xff] }
 0x43e   : > { %2081 = vst [vmem:[#allocation3 + $0xf8] sm:$0xf0] %v2065_v0  ;;  %v2509_v9 = vpop.permute.xlu0 %2508  ;;  %v2017_v18 = vpop.permute.xlu1 %2016 }
 0x43f   : > { %v2549_v63 = vsel %vm1544_vm4, %v8672_v33, %v2509_v9  ;;  %v2048_v15 = vsel %vm1544_vm4, %v8678_v48, %v2017_v18 }
 0x440   : > { %v2550_v5 = vsel %vm1546_vm5, %v2549_v63, %v2513_v16  ;;  %v2049_v24 = vsel %vm1546_vm5, %v2048_v15, %v2021_v31 }
 0x442   : > { %v2517_v57 = vpop.permute.xlu0 %2516  ;;  %v2025_v12 = vpop.permute.xlu1 %2024 }
 0x443   : > { %v2551_v4 = vsel %vm1548_vm6, %v2550_v5, %v2517_v57  ;;  %v2050_v6 = vsel %vm1548_vm6, %v2049_v24, %v2025_v12 }
 0x444   : > { %2561 = vst [vmem:[#allocation3 + $0x70] sm:$0xf] %v2551_v4  ;;  %v2066_v59 = vrot.slane %v2050_v6, 4  ;;  %v9610_v4 = vld [vmem:[#allocation48_spill] sm:$0xff] }
 0x446   : > { %v4817_v55 = vpop.permute.xlu0 %4816  ;;  %2082 = vst [vmem:[#allocation3 + $0x100] sm:$0xf0] %v2066_v59  ;;  %v2521_v45 = vpop.permute.xlu1 %2520 }
 0x447   : > { %v2552_v33 = vsel %vm1544_vm4, %v9604_v62, %v2521_v45  ;;  %v4866_v53 = vsel %vm1544_vm4, %v9605_v54, %v4817_v55 }
 0x448   : > { %v2553_v19 = vsel %vm1546_vm5, %v2552_v33, %v2525_v47  ;;  %v4867_v56 = vsel %vm1546_vm5, %v4866_v53, %v4821_v30 }
 0x44a   : > { %v5321_v28 = vpop.permute.xlu0 %5320  ;;  %v2529_v48 = vpop.permute.xlu1 %2528 }
 0x44b   : > { %v2554_v31 = vsel %vm1548_vm6, %v2553_v19, %v2529_v48  ;;  %v5370_v14 = vsel %vm1544_vm4, %v9606_v32, %v5321_v28 }
 0x44c   : > { %2562 = vst [vmem:[#allocation3 + $0x20] sm:$0xf] %v2554_v31  ;;  %v5371_v47 = vsel %vm1546_vm5, %v5370_v14, %v5325_v40 }
 0x44e   : > { %v4805_v3 = vpop.permute.xlu0 %4804  ;;  %v4825_v10 = vpop.permute.xlu1 %4824 }
 0x44f   : > { %v4868_v35 = vsel %vm1548_vm6, %v4867_v56, %v4825_v10  ;;  %v4863_v8 = vsel %vm1544_vm4, %v9608_v26, %v4805_v3 }
 0x450   : > { %v4888_v37 = vrot.slane %v4868_v35, 4  ;;  %v4864_v20 = vsel %vm1546_vm5, %v4863_v8, %v9122_v21 }
 0x452   : > { %v5309_v44 = vpop.permute.xlu0 %5308  ;;  %4904 = vst [vmem:[#allocation3 + $0x130] sm:$0xf0] %v4888_v37 }
 0x453   : > { %v5329_v22 = vpop.permute.xlu1 %5328  ;;  %v5367_v0 = vsel %vm1544_vm4, %v9609_v2, %v5309_v44 }
 0x454   : > { %v5372_v16 = vsel %vm1548_vm6, %v5371_v47, %v5329_v22  ;;  %v5368_v63 = vsel %vm1546_vm5, %v5367_v0, %v9126_v29 }
 0x455   : > { %5384 = vst [vmem:[#allocation3] sm:$0xf] %v5372_v16 }
 0x456   : > { %v3897_v46 = vpop.permute.xlu0 %3896 }
 0x457   : > { %v3905_v60 = vpop.permute.xlu1 %3904  ;;  %v3946_v49 = vsel %vm1544_vm4, %v9607_v36, %v3897_v46 }
 0x458   : > { %v3947_v7 = vsel %vm1546_vm5, %v3946_v49, %v3901_v11 }
 0x459   : > { %v3948_v30 = vsel %vm1548_vm6, %v3947_v7, %v3905_v60  ;;  %v5417_v45 = vld [vmem:[#allocation3 + $0x130] sm:$0xff] }
 0x45a   : > { %v3968_v25 = vrot.slane %v3948_v30, 4  ;;  %v3885_v13 = vpop.permute.xlu0 %3884 }
 0x45b   : > { %v4845_v17 = vpop.permute.xlu1 %4844  ;;  %v3943_v6 = vsel %vm1544_vm4, %v9610_v4, %v3885_v13 }
 0x45c   : > { %3984 = vst [vmem:[#allocation3 + $0x90] sm:$0xf0] %v3968_v25  ;;  %v5425_v40 = vld [vmem:[#allocation3] sm:$0xf]  ;;  %v3944_v29 = vsel %vm1546_vm5, %v3943_v6, %v9131_v41  ;;  %v9614_v6 = vld [vmem:[#allocation16_spill] sm:$0xff] }
 0x45d   : > { %5905 = vmatprep.subr.msk.mxu0 %vm5438_vm7, %v5425_v40  ;;  %v9612_v40 = vld [vmem:[#allocation78_spill] sm:$0xff] }
 0x45e   : > { %v4813_v38 = vpop.permute.xlu0 %4812 }
 0x45f   : > { %v5349_v11 = vpop.permute.xlu1 %5348  ;;  %v4865_v9 = vsel %vm1548_vm6, %v4864_v20, %v4813_v38 }
 0x460   : > { %v4887_v18 = vrot.slane %v4865_v9, 4 }
 0x462   : > { %4903 = vst [vmem:[#allocation3 + $0x68] sm:$0xf0] %v4887_v18  ;;  %v5317_v15 = vpop.permute.xlu0 %5316  ;;  %v9613_v18 = vld [vmem:[#allocation10_spill] sm:$0xff] }
 0x463   : > { %v3925_v5 = vpop.permute.xlu1 %3924  ;;  %v5369_v57 = vsel %vm1548_vm6, %v5368_v63, %v5317_v15 }
 0x464   : > { %5383 = vst [vmem:[#allocation3 + $0x28] sm:$0xf] %v5369_v57 }
 0x466   : > { %v9177_v12 = vpop.permute.xlu0 %3416 }
 0x467   : > { %v9179_v21 = vpop.permute.xlu1 %3444 }
 0x46a   : > { %v9181_v24 = vpop.permute.xlu0 %3404 }
 0x46b   : > { %v4841_v59 = vpop.permute.xlu1 %4840  ;;  %v5424_v55 = vld [vmem:[#allocation3 + $0x28] sm:$0xf] }
 0x46c   : > { %5906 = vmatpush1.msk.msra.mxu0 %vm5438_vm7, %v5424_v55  ;;  %v4872_v53 = vsel %vm1544_vm4, %v8922_v43, %v4841_v59 }
 0x46d   : > { %5629 = vmatprep.subr.mxu0 %v5417_v45  ;;  %v4873_v3 = vsel %vm1546_vm5, %v4872_v53, %v4845_v17  ;;  %v9611_v17 = vld [vmem:[#allocation68_spill] sm:$0xff] }
 0x46e   : > { %v3893_v62 = vpop.permute.xlu0 %3892  ;;  %v4383_v20 = vsel %vm1544_vm4, %v9612_v40, %v9611_v17 }
 0x46f   : > { %v5345_v33 = vpop.permute.xlu1 %5344  ;;  %v3945_v28 = vsel %vm1548_vm6, %v3944_v29, %v3893_v62 }
 0x470   : > { %v3967_v48 = vrot.slane %v3945_v28, 4  ;;  %v5376_v56 = vsel %vm1544_vm4, %v8945_v52, %v5345_v33  ;;  %v9616_v33 = vld [vmem:[#allocation52_spill] sm:$0xff] }
 0x471   : > { %v5377_v35 = vsel %vm1546_vm5, %v5376_v56, %v5349_v11 }
 0x472   : > { %3983 = vst [vmem:[#allocation3 + $0xa8] sm:$0xf0] %v3967_v48  ;;  %v4833_v19 = vpop.permute.xlu0 %4832  ;;  %v3466_v48 = vsel %vm1544_vm4, %v8887_v42, %v9177_v12 }
 0x473   : > { %v3921_v54 = vpop.permute.xlu1 %3920 }
 0x474   : > { %v3952_v26 = vsel %vm1544_vm4, %v8962_v23, %v3921_v54  ;;  %v4384_v23 = vsel %vm1546_vm5, %v4383_v20, %v9613_v18 }
 0x476   : > { %v5337_v31 = vpop.permute.xlu0 %5336 }
 0x477   : > { %v4849_v10 = vpop.permute.xlu1 %4848 }
 0x478   : > { %v4874_v41 = vsel %vm1548_vm6, %v4873_v3, %v4849_v10 }
 0x479   : > { %v4890_v32 = vrot.slane %v4874_v41, 4  ;;  %v3463_v41 = vsel %vm1544_vm4, %v8908_v50, %v9181_v24 }
 0x47a   : > { %v3913_v14 = vpop.permute.xlu0 %3912 }
 0x47b   : > { %4906 = vst [vmem:[#allocation3 + $0xe8] sm:$0xf0] %v4890_v32  ;;  %v5353_v37 = vpop.permute.xlu1 %5352 }
 0x47c   : > { %v5378_v44 = vsel %vm1548_vm6, %v5377_v35, %v5353_v37 }
 0x47d   : > { %5386 = vst [vmem:[#allocation3 + $0x60] sm:$0xf] %v5378_v44 }
 0x47e   : > { %v4829_v22 = vpop.permute.xlu0 %4828 }
 0x47f   : > { %v4837_v43 = vpop.permute.xlu1 %4836  ;;  %v4869_v47 = vsel %vm1544_vm4, %v8995_v1, %v4829_v22 }
 0x480   : > { %v4870_v16 = vsel %vm1546_vm5, %v4869_v47, %v4833_v19  ;;  %v5401_v47 = vld [vmem:[#allocation3 + $0xc8] sm:$0xff] }
 0x481   : > { %v4871_v52 = vsel %vm1548_vm6, %v4870_v16, %v4837_v43  ;;  %v5400_v16 = vld [vmem:[#allocation3 + $0x18] sm:$0xff] }
 0x482   : > { %v4889_v46 = vrot.slane %v4871_v52, 4  ;;  %v5333_v60 = vpop.permute.xlu0 %5332  ;;  %v5419_v15 = vld [vmem:[#allocation3 + $0xe8] sm:$0xff]  ;;  %v5393_v52 = vld [vmem:[#allocation3 + $0x38] sm:$0xff] }
 0x483   : > { %v5341_v36 = vpop.permute.xlu1 %5340  ;;  %v5373_v49 = vsel %vm1544_vm4, %v9021_v39, %v5333_v60  ;;  %v3953_v39 = vsel %vm1546_vm5, %v3952_v26, %v3925_v5  ;;  %v5403_v60 = vld [vmem:[#allocation3 + $0x20] sm:$0xff] }
 0x484   : > { %4905 = vst [vmem:[#allocation3 + $0x50] sm:$0xf0] %v4889_v46  ;;  %v5374_v7 = vsel %vm1546_vm5, %v5373_v49, %v5337_v31  ;;  %v5427_v30 = vld [vmem:[#allocation3 + $0x60] sm:$0xf]  ;;  %v3467_v31 = vsel %vm1546_vm5, %v3466_v48, %v9139_v61 }
 0x485   : > { %v5375_v25 = vsel %vm1548_vm6, %v5374_v7, %v5341_v36  ;;  %5908 = vmatprep.subr.msk.mxu1 %vm5438_vm7, %v5427_v30  ;;  %v5392_v46 = vld [vmem:[#allocation3 + $0x120] sm:$0xff]  ;;  %v5402_v36 = vld [vmem:[#allocation3 + $0x70] sm:$0xff]  ;;  %v5394_v7 = vld [vmem:[#allocation3 + $0xf8] sm:$0xff] }
 0x486   : > { %5385 = vst [vmem:[#allocation3 + $0xb8] sm:$0xf] %v5375_v25  ;;  %v3909_v1 = vpop.permute.xlu0 %3908  ;;  %v5395_v49 = vld [vmem:[#allocation3 + $0x100] sm:$0xff] }
 0x487   : > { %v3441_v13 = vpop.permute.xlu1 %3440  ;;  %v3949_v2 = vsel %vm1544_vm4, %v9040_v27, %v3909_v1  ;;  %v9615_v27 = vld [vmem:[#allocation86_spill] sm:$0xff] }
 0x488   : > { %v3950_v4 = vsel %vm1546_vm5, %v3949_v2, %v3913_v14  ;;  %v4389_v59 = vsel %vm1544_vm4, %v9615_v27, %v9614_v6  ;;  %v3472_v10 = vsel %vm1544_vm4, %v9045_v34, %v3441_v13 }
 0x489   : > { %v4390_v28 = vsel %vm1546_vm5, %v4389_v59, %v9616_v33  ;;  %v3473_v32 = vsel %vm1546_vm5, %v3472_v10, %v9179_v21 }
 0x48a   : > { %v3429_v8 = vpop.permute.xlu0 %3428 }
 0x48b   : > { %v3929_v38 = vpop.permute.xlu1 %3928  ;;  %v3469_v37 = vsel %vm1544_vm4, %v9053_v51, %v3429_v8 }
 0x48c   : > { %v3954_v0 = vsel %vm1548_vm6, %v3953_v39, %v3929_v38 }
 0x48d   : > { %v3970_v11 = vrot.slane %v3954_v0, 4  ;;  %v5426_v9 = vld [vmem:[#allocation3 + $0xb8] sm:$0xf] }
 0x48e   : > { %5909 = vmatpush1.msk.msra.mxu1 %vm5438_vm7, %v5426_v9  ;;  %v4333_v63 = vpop.permute.xlu0 %4332 }
 0x48f   : > { %3986 = vst [vmem:[#allocation3 + $0x88] sm:$0xf0] %v3970_v11  ;;  %v3917_v57 = vpop.permute.xlu1 %3916  ;;  %v4385_v5 = vsel %vm1548_vm6, %v4384_v23, %v4333_v63  ;;  %5700 = vmatprep.subr.mxu1 %v5419_v15 }
 0x490   : > { %v3951_v55 = vsel %vm1548_vm6, %v3950_v4, %v3917_v57  ;;  %4399 = vst [vmem:[#allocation3 + $0x68] sm:$0xf] %v4385_v5 }
 0x491   : > { %v3969_v45 = vrot.slane %v3951_v55, 4 }
 0x492   : > { %v3409_v29 = vpop.permute.xlu0 %3408 }
 0x493   : > { %3985 = vst [vmem:[#allocation3 + $0xe0] sm:$0xf0] %v3969_v45  ;;  %v4357_v62 = vpop.permute.xlu1 %4356  ;;  %v3464_v42 = vsel %vm1546_vm5, %v3463_v41, %v3409_v29 }
 0x494   : > { %v4391_v19 = vsel %vm1548_vm6, %v4390_v28, %v4357_v62 }
 0x495   : > { %4401 = vst [vmem:[#allocation3 + $0x50] sm:$0xf] %v4391_v19 }
 0x496   : > { %v3433_v54 = vpop.permute.xlu0 %3432 }
 0x497   : > { %v3425_v53 = vpop.permute.xlu1 %3424  ;;  %v5416_v3 = vld [vmem:[#allocation3 + $0x68] sm:$0xff]  ;;  %v3470_v50 = vsel %vm1546_vm5, %v3469_v37, %v3433_v54 }
 0x498   : > { %v3468_v56 = vsel %vm1548_vm6, %v3467_v31, %v3425_v53  ;;  %5630 = vmatpush1.msra.mxu0 %v5416_v3 }
 0x499   : > { %3480 = vst [vmem:[#allocation3 + $0x90] sm:$0xf] %v3468_v56 }
 0x49a   : > { %v3413_v12 = vpop.permute.xlu0 %3412 }
 0x49b   : > { %v3449_v14 = vpop.permute.xlu1 %3448  ;;  %v3465_v61 = vsel %vm1548_vm6, %v3464_v42, %v3413_v12 }
 0x49c   : > { %v3474_v35 = vsel %vm1548_vm6, %v3473_v32, %v3449_v14  ;;  %3479 = vst [vmem:[#allocation3 + $0xa8] sm:$0xf] %v3465_v61  ;;  %v5418_v34 = vld [vmem:[#allocation3 + $0x50] sm:$0xff] }
 0x49d   : > { %3482 = vst [vmem:[#allocation3 + $0x88] sm:$0xf] %v3474_v35  ;;  %5701 = vmatpush1.msra.mxu1 %v5418_v34 }
 0x49f   : > { %v3437_v24 = vpop.permute.xlu1 %3436 }
 0x4a0   : > { %v3471_v44 = vsel %vm1548_vm6, %v3470_v50, %v3437_v24  ;;  %v5409_v22 = vld [vmem:[#allocation3 + $0x90] sm:$0xff] }
 0x4a1   : > { %3481 = vst [vmem:[#allocation3 + $0xe0] sm:$0xf] %v3471_v44  ;;  %5631 = vmatprep.subr.mxu0 %v5409_v22 }
 0x4a3   : > { %v5408_v21 = vld [vmem:[#allocation3 + $0xa8] sm:$0xff] }
 0x4a4   : > { %5632 = vmatpush1.msra.mxu0 %v5408_v21  ;;  %v5411_v43 = vld [vmem:[#allocation3 + $0x88] sm:$0xff] }
 0x4a5   : > { %5702 = vmatprep.subr.mxu1 %v5411_v43  ;;  %5633 = vmatprep.subr.mxu0 %v5401_v47 }
 0x4a6   : > { %5634 = vmatpush1.msra.mxu0 %v5400_v16 }
 0x4a7   : > { %5635 = vmatprep.subr.mxu0 %v5393_v52  ;;  %v5432_v30 = vpop.permute.xlu0 %5431 }
 0x4a8   : > { %5636 = vmatpush1.msra.mxu0 %v5392_v46  ;;  %v5410_v51 = vld [vmem:[#allocation3 + $0xe0] sm:$0xff] }
 0x4a9   : > { %5703 = vmatpush1.msra.mxu1 %v5410_v51  ;;  %5907 = vmatmul.mubr.msk.f32.vlgmr.msra.gmra.mxu0 %vm5434_vm8, %v8913_v58 }
 0x4aa   : > { %5704 = vmatprep.subr.mxu1 %v5403_v60 }
 0x4ab   : > { %5705 = vmatpush1.msra.mxu1 %v5402_v36 }
 0x4ac   : > { %5706 = vmatprep.subr.mxu1 %v5395_v49 }
 0x4ad   : > { %5707 = vmatpush1.msra.mxu1 %v5394_v7 }
 0x4ae   : > { %5910 = vmatmul.mubr.msk.f32.vlgmr.msra.gmra.mxu1 %vm5434_vm8, %v8913_v58 }
 0x4b5   : > { %v5529_v25 = vpop.f32.mrf.mxu0 }
 0x4b6   : > { %v5530_v1 = vadd.f32 %v5529_v25, %v5432_v30 }
 0x4b7   : > { %v5531_v13 = vpop.f32.mrf.mxu0 }
 0x4b8   : > { %v5747_v26 = vmax.f32 %v5530_v1, 0.0  ;;  %v5532_v8 = vadd.f32 %v5531_v13, %v5432_v30 }
 0x4ba   : > { %5755 = vst [vmem:[%s254_s26] sm:$0xff] %v5747_v26  ;;  %v5748_v17 = vmax.f32 %v5532_v8, 0.0 }
 0x4bc   : > { %5756 = vst [vmem:[%s254_s26 + $0x8] sm:$0xff] %v5748_v17 }
 0x4f1   : > { %v5600_v40 = vpop.f32.mrf.mxu1 }
 0x4f2   : > { %v5601_v20 = vadd.f32 %v5600_v40, %v5432_v30 }
 0x4f3   : > { %v5602_v39 = vpop.f32.mrf.mxu1 }
 0x4f4   : > { %v5749_v38 = vmax.f32 %v5601_v20, 0.0  ;;  %v5603_v2 = vadd.f32 %v5602_v39, %v5432_v30 }
 0x4f6   : > { %5757 = vst [vmem:[%s254_s26 + $0x10] sm:$0xff] %v5749_v38  ;;  %v5750_v58 = vmax.f32 %v5603_v2, 0.0 }
 0x4f8   : > { %5758 = vst [vmem:[%s254_s26 + $0x18] sm:$0xff] %v5750_v58 }
 0x569   : > { %v5671_v0 = vpop.f32.mrf.mxu0 }
 0x56a   : > { %v5672_v11 = vadd.f32 %v5671_v0, %v5432_v30 }
 0x56b   : > { %v5673_v9 = vpop.f32.mrf.mxu0 }
 0x56c   : > { %v5751_v18 = vmax.f32 %v5672_v11, 0.0  ;;  %v5674_v23 = vadd.f32 %v5673_v9, %v5432_v30 }
 0x56e   : > { %5759 = vst [vmem:[%s254_s26 + $0x20] sm:$0xff] %v5751_v18  ;;  %v5752_v63 = vmax.f32 %v5674_v23, 0.0  ;;  %v5742_v15 = vpop.f32.mrf.mxu1 }
 0x56f   : > { %v5743_v57 = vadd.f32 %v5742_v15, %v5432_v30 }
 0x570   : > { %5760 = vst [vmem:[%s254_s26 + $0x28] sm:$0xff] %v5752_v63  ;;  %v5744_v4 = vpop.f32.mrf.mxu1 }
 0x571   : > { %v5753_v5 = vmax.f32 %v5743_v57, 0.0  ;;  %v5745_v6 = vadd.f32 %v5744_v4, %v5432_v30 }
 0x573   : > { %5761 = vst [vmem:[%s254_s26 + $0x30] sm:$0xff] %v5753_v5  ;;  %v5754_v27 = vmax.f32 %v5745_v6, 0.0 }
 0x575   : > { %5762 = vst [vmem:[%s254_s26 + $0x38] sm:$0xff] %v5754_v27 }
 0x576 PF: > { %s17_s18 = sadd.s32 1, %s6260_s18  }
 0x577   : > { %p14_p2 = scmp.ge.s32.totalorder %s17_s18, 4  }
 0x579   :  { %16 = sbr.rel (!%p14_p2) target bundleno = 2 (0x2), region = 85 }
 0x57e   :  { %5784 = vsyncpa [#allocation5], 1 }
 0x57f   :  { %5786 = vsyncpa [#allocation5 + $0x1], 1 }
 0x580   :  { %5787 = vsyncpa [#allocation7], 1 }

</bundles_post_ra>
